<compile_context>
chip_gen: v7x
topology: tpu7x:2x2x1
jax: 0.10.0
libtpu: 0.0.40
codegen_flags: <defaults>
</compile_context>

<pallas_src>
import functools

import jax
import jax.numpy as jnp
from jax.experimental import pallas as pl
from jax.experimental.pallas import tpu as pltpu


def _sigmoid_mul_kernel(gate_ref, x_ref, o_ref, *, cb):
    # gate_ref: (1, C, 1)  -- full per-channel gate (x453), resident across C steps
    # x_ref:    (1, Cb, S) -- activation block (x449); C on sublanes, S on lanes
    # o_ref:    (1, Cb, S)
    c0 = pl.multiple_of(pl.program_id(1) * cb, 8)
    g = jax.nn.sigmoid(gate_ref[:, pl.ds(c0, cb), :])     # EUP sigmoid, (1, Cb, 1)
    o_ref[...] = (g * x_ref[...]).astype(o_ref.dtype)     # VPU mul, broadcast over S


def _num_tensorcores_per_chip():
    """Best-effort count of TensorCores one pallas_call can shard a grid over."""
    try:
        dev = jax.devices()[0]
    except Exception:
        return 1
    n = getattr(dev, "num_cores", None)
    if isinstance(n, int) and n > 0:
        return n
    kind = str(getattr(dev, "device_kind", "")).lower()
    # Dual-TensorCore / megacore chips.
    if any(tag in kind for tag in ("v3", "v4", "v5p", "v7")):
        return 2
    return 1


def _pick_channel_block(N, C, S, itemsize, num_cores):
    """Pick a channel tile Cb (divisor of C, multiple of 8, or full C).

    Accounts for lane padding (S -> ceil(S/128)*128) in the VMEM estimate and
    only splits C when the batch axis can't feed all TensorCores by itself.
    """
    lane = 128
    padded_s = pl.cdiv(S, lane) * lane

    def buffer_bytes(cb):  # actual VMEM bytes of one (1, cb, S) buffer
        return cb * padded_s * itemsize

    # Split across C only when batch alone can't occupy every TensorCore.
    min_blocks = num_cores if N < num_cores else 1
    # ~2 MiB padded per buffer: x2 (in+out) x2 (double-buffer) + resident gate
    # stays comfortably inside the scoped-VMEM default, incl. v7x.
    target_bytes = 2 * 1024 * 1024
    want_blocks = max(min_blocks, pl.cdiv(buffer_bytes(C), target_bytes))

    for nblk in range(want_blocks, C + 1):
        if C % nblk:
            continue
        cb = C // nblk
        if cb == C or cb % 8 == 0:
            return cb
    # Fallback: no 8-aligned divisor -> run the whole channel axis as one block.
    return C


def sigmoid_mul(x453, x449):
    """Computes sigmoid(x453) * x449 with NCHW inputs (PyTorch semantics).

    x453: (N, C, 1, 1) float32
    x449: (N, C, H, W) float32
    returns: (N, C, H, W) float32
    """
    N, C, H, W = x449.shape
    assert x453.shape == (N, C, 1, 1)
    S = H * W

    # Pure reshapes on the NCHW layout -- no transpose, no extra HBM copies.
    x_ncs = x449.reshape(N, C, S)
    g_ncs = x453.reshape(N, C, 1)

    num_cores = _num_tensorcores_per_chip()
    Cb = _pick_channel_block(N, C, S, x449.dtype.itemsize, num_cores)
    n_cblocks = C // Cb

    kernel = functools.partial(_sigmoid_mul_kernel, cb=Cb)

    out_ncs = pl.pallas_call(
        kernel,
        out_shape=jax.ShapeDtypeStruct((N, C, S), x449.dtype),
        grid=(N, n_cblocks),
        in_specs=[
            # Gate: full channel axis, constant index across the C grid axis ->
            # one DMA per batch element, resident while channel blocks iterate.
            pl.BlockSpec((1, C, 1), lambda b, c: (b, 0, 0)),
            pl.BlockSpec((1, Cb, S), lambda b, c: (b, c, 0)),
        ],
        out_specs=pl.BlockSpec((1, Cb, S), lambda b, c: (b, c, 0)),
        compiler_params=pltpu.CompilerParams(
            dimension_semantics=("parallel", "parallel"),
        ),
    )(g_ncs, x_ncs)

    # Reshape back to NCHW (pure view-style reshape, no copy).
    return out_ncs.reshape(N, C, H, W)


if __name__ == "__main__":
    key = jax.random.PRNGKey(0)
    k1, k2 = jax.random.split(key)

    # Shapes consistent with the module's forward (already small).
    N, C, H, W = 1, 1536, 7, 7
    x449 = jax.random.normal(k1, (N, C, H, W), dtype=jnp.float32)
    x453 = jax.random.normal(k2, (N, C, 1, 1), dtype=jnp.float32)

    out = sigmoid_mul(x453, x449)
    jax.block_until_ready(out)

    # Reference check in plain JAX (same semantics as the PyTorch module).
    ref = jax.nn.sigmoid(x453) * x449
    assert out.shape == (N, C, H, W)
    assert jnp.allclose(out, ref, atol=1e-6, rtol=1e-6)

    print("KERNEL_OK")
</pallas_src>

<mosaic_0001>
module attributes {stable_mosaic.version = 11 : i64} {
  func.func @_sigmoid_mul_kernel(%arg0: i32, %arg1: i32, %arg2: memref<1x1536x1xf32, #tpu.memory_space<vmem>>, %arg3: memref<1x1536x49xf32, #tpu.memory_space<vmem>>, %arg4: memref<1x1536x49xf32, #tpu.memory_space<vmem>>) attributes {dimension_semantics = [#tpu.dimension_semantics<parallel>, #tpu.dimension_semantics<parallel>], iteration_bounds = array<i64: 1, 1>, scalar_prefetch = 0 : i64, scratch_operands = 0 : i64, tpu.core_type = #tpu.core_type<tc>, window_params = [{transform_indices = @transform_0, window_bounds = array<i64: 1, 1536, 1>}, {transform_indices = @transform_1, window_bounds = array<i64: 1, 1536, 49>}, {transform_indices = @transform_2, window_bounds = array<i64: 1, 1536, 49>}]} {
    %c1536_i32 = arith.constant 1536 : i32
    %0 = arith.muli %arg1, %c1536_i32 : i32
    %1 = tpu.assume_multiple %0, 8 : i32
    %c0 = arith.constant 0 : index
    %2 = arith.index_cast %1 : i32 to index
    %c0_0 = arith.constant 0 : index
    %3 = vector.load %arg2[%c0, %2, %c0_0] : memref<1x1536x1xf32, #tpu.memory_space<vmem>>, vector<1x1536x1xf32>
    %4 = arith.negf %3 : vector<1x1536x1xf32>
    %5 = math.exp %4 : vector<1x1536x1xf32>
    %cst = arith.constant 1.000000e+00 : f32
    %6 = vector.broadcast %cst : f32 to vector<1x1536x1xf32>
    %7 = arith.addf %6, %5 : vector<1x1536x1xf32>
    %8 = arith.divf %6, %7 : vector<1x1536x1xf32>
    %c0_1 = arith.constant 0 : index
    %c0_2 = arith.constant 0 : index
    %c0_3 = arith.constant 0 : index
    %9 = vector.load %arg3[%c0_1, %c0_2, %c0_3] : memref<1x1536x49xf32, #tpu.memory_space<vmem>>, vector<1x1536x49xf32>
    %10 = vector.broadcast %8 : vector<1x1536x1xf32> to vector<1x1536x49xf32>
    %11 = arith.mulf %10, %9 : vector<1x1536x49xf32>
    %c0_4 = arith.constant 0 : index
    %c0_5 = arith.constant 0 : index
    %c0_6 = arith.constant 0 : index
    %12 = vector.load %arg4[%c0_4, %c0_5, %c0_6] : memref<1x1536x49xf32, #tpu.memory_space<vmem>>, vector<1x1536x49xf32>
    tpu.vector_store %arg4[%c0_4, %c0_5, %c0_6], %11 {strides = array<i32>} : memref<1x1536x49xf32, #tpu.memory_space<vmem>>, vector<1x1536x49xf32>,
    return
  }
  func.func @transform_0(%arg0: i32, %arg1: i32) -> (i32, i32, i32) {
    %c0_i32 = arith.constant 0 : i32
    %c0_i32_0 = arith.constant 0 : i32
    %c0_i32_1 = arith.constant 0 : i32
    return %arg0, %c0_i32, %c0_i32_0 : i32, i32, i32
  }
  func.func @transform_1(%arg0: i32, %arg1: i32) -> (i32, i32, i32) {
    %c0_i32 = arith.constant 0 : i32
    %c0_i32_0 = arith.constant 0 : i32
    return %arg0, %arg1, %c0_i32 : i32, i32, i32
  }
  func.func @transform_2(%arg0: i32, %arg1: i32) -> (i32, i32, i32) {
    %c0_i32 = arith.constant 0 : i32
    %c0_i32_0 = arith.constant 0 : i32
    return %arg0, %arg1, %c0_i32 : i32, i32, i32
  }
}

</mosaic_0001>

<bundles_post_ra>
// kernel: tpu_custom_call.1
= control target key start
LH: loop header
LB: loop body
LE: loop exit
PB: predicated region body
PF: predicated region fallthrough
CT: control target
= control target key end

     0   :  { %v3861_v0 = vmov 0   ;;  %vm2701_vm0 = vcmask 400384   ;;  %s5845_s0 = inlined_call_operand.vmem [shape: f32[1,1536,1], index: 0, kind: input, shape index: {}]   ;;  %s5846_s1 = inlined_call_operand.vmem [shape: f32[1,1536,49], index: 1, kind: input, shape index: {}]   ;;  %s5847_s2 = inlined_call_operand.vmem [shape: f32[1,1536,49], index: 2, kind: output, shape index: {}]  }
   0x1   :  { %3092 = vset.pattern.permute.xlu1 %v3861_v0  ;;  %3091 = vset.pattern.permute.xlu0 %v3861_v0  ;;  %v15_v1 = vld [vmem:[%s5845_s0 + $0x10] sm:$0xff]  ;;  %v13_v2 = vld [vmem:[%s5845_s0] sm:$0xff]  ;;  %v16_v3 = vld [vmem:[%s5845_s0 + $0x18] sm:$0xff] }
   0x2   :  { %v2900_v4 = vmul.f32 -1.442695, %v15_v1  ;;  %v2898_v5 = vmul.f32 -1.442695, %v13_v2  ;;  %v2901_v6 = vmul.f32 -1.442695, %v16_v3 }
   0x3   :  { %v14_v7 = vld [vmem:[%s5845_s0 + $0x8] sm:$0xff]  ;;  %v17_v9 = vld [vmem:[%s5845_s0 + $0x20] sm:$0xff]  ;;  %v20_v13 = vld [vmem:[%s5845_s0 + $0x38] sm:$0xff] }
   0x4   :  { %v18_v8 = vld [vmem:[%s5845_s0 + $0x28] sm:$0xff]  ;;  %3093 = vpow2.f32 %v2900_v4  ;;  %v2899_v10 = vmul.f32 -1.442695, %v14_v7  ;;  %v2902_v12 = vmul.f32 -1.442695, %v17_v9  ;;  %v19_v14 = vld [vmem:[%s5845_s0 + $0x30] sm:$0xff] }
   0x5   :  { %v2903_v11 = vmul.f32 -1.442695, %v18_v8  ;;  %3095 = vpow2.f32 %v2898_v5  ;;  %v22_v15 = vld [vmem:[%s5845_s0 + $0x48] sm:$0xff]  ;;  %v2905_v16 = vmul.f32 -1.442695, %v20_v13  ;;  %v21_v18 = vld [vmem:[%s5845_s0 + $0x40] sm:$0xff] }
   0x6   :  { %3097 = vpow2.f32 %v2901_v6  ;;  %v2904_v17 = vmul.f32 -1.442695, %v19_v14  ;;  %v24_v19 = vld [vmem:[%s5845_s0 + $0x58] sm:$0xff]  ;;  %v2907_v20 = vmul.f32 -1.442695, %v22_v15  ;;  %v23_v21 = vld [vmem:[%s5845_s0 + $0x50] sm:$0xff] }
   0x7   :  { %3099 = vpow2.f32 %v2899_v10  ;;  %v2906_v22 = vmul.f32 -1.442695, %v21_v18  ;;  %v26_v23 = vld [vmem:[%s5845_s0 + $0x68] sm:$0xff]  ;;  %v2909_v24 = vmul.f32 -1.442695, %v24_v19  ;;  %v25_v46 = vld [vmem:[%s5845_s0 + $0x60] sm:$0xff] }
   0x8   :  { %3101 = vpow2.f32 %v2903_v11  ;;  %v2908_v25 = vmul.f32 -1.442695, %v23_v21  ;;  %v2911_v26 = vmul.f32 -1.442695, %v26_v23  ;;  %v28_v49 = vld [vmem:[%s5845_s0 + $0x78] sm:$0xff]  ;;  %v27_v52 = vld [vmem:[%s5845_s0 + $0x70] sm:$0xff] }
   0x9   :  { %3103 = vpow2.f32 %v2902_v12  ;;  %v2910_v55 = vmul.f32 -1.442695, %v25_v46  ;;  %v30_v56 = vld [vmem:[%s5845_s0 + $0x88] sm:$0xff]  ;;  %v2913_v59 = vmul.f32 -1.442695, %v28_v49  ;;  %v29_v60 = vld [vmem:[%s5845_s0 + $0x80] sm:$0xff] }
   0xa   :  { %3105 = vpow2.f32 %v2905_v16  ;;  %v2912_v62 = vmul.f32 -1.442695, %v27_v52  ;;  %v32_v63 = vld [vmem:[%s5845_s0 + $0x98] sm:$0xff]  ;;  %v2915_v1 = vmul.f32 -1.442695, %v30_v56  ;;  %v31_v2 = vld [vmem:[%s5845_s0 + $0x90] sm:$0xff] }
   0xb   :  { %3107 = vpow2.f32 %v2904_v17  ;;  %v2914_v4 = vmul.f32 -1.442695, %v29_v60  ;;  %v34_v5 = vld [vmem:[%s5845_s0 + $0xa8] sm:$0xff]  ;;  %v2917_v7 = vmul.f32 -1.442695, %v32_v63  ;;  %v33_v8 = vld [vmem:[%s5845_s0 + $0xa0] sm:$0xff] }
   0xc   :  { %3109 = vpow2.f32 %v2907_v20  ;;  %v2916_v10 = vmul.f32 -1.442695, %v31_v2  ;;  %v36_v11 = vld [vmem:[%s5845_s0 + $0xb8] sm:$0xff]  ;;  %v2919_v13 = vmul.f32 -1.442695, %v34_v5  ;;  %v35_v14 = vld [vmem:[%s5845_s0 + $0xb0] sm:$0xff] }
   0xd   :  { %3111 = vpow2.f32 %v2906_v22  ;;  %v2918_v16 = vmul.f32 -1.442695, %v33_v8  ;;  %v38_v17 = vld [vmem:[%s5845_s0 + $0xc8] sm:$0xff]  ;;  %v2921_v19 = vmul.f32 -1.442695, %v36_v11  ;;  %v37_v20 = vld [vmem:[%s5845_s0 + $0xc0] sm:$0xff] }
   0xe   :  { %v3094_v27 = vpop.eup %3093  ;;  %3113 = vpow2.f32 %v2909_v24  ;;  %v2920_v22 = vmul.f32 -1.442695, %v35_v14  ;;  %v2923_v24 = vmul.f32 -1.442695, %v38_v17 }
   0xf   :  { %v3096_v28 = vpop.eup %3095  ;;  %v783_v29 = vadd.f32 1.0, %v3094_v27  ;;  %3115 = vpow2.f32 %v2908_v25 }
  0x10   :  { %v3098_v30 = vpop.eup %3097  ;;  %v781_v31 = vadd.f32 1.0, %v3096_v28  ;;  %3117 = vpow2.f32 %v2911_v26  ;;  %v2922_v26 = vmul.f32 -1.442695, %v37_v20 }
  0x11   :  { %v3100_v32 = vpop.eup %3099  ;;  %3119 = vrcp.f32 %v783_v29  ;;  %v784_v33 = vadd.f32 1.0, %v3098_v30 }
  0x12   :  { %v3102_v34 = vpop.eup %3101  ;;  %3121 = vrcp.f32 %v781_v31  ;;  %v782_v35 = vadd.f32 1.0, %v3100_v32 }
  0x13   :  { %v3104_v36 = vpop.eup %3103  ;;  %3123 = vrcp.f32 %v784_v33  ;;  %v786_v37 = vadd.f32 1.0, %v3102_v34 }
  0x14   :  { %v3106_v38 = vpop.eup %3105  ;;  %3125 = vrcp.f32 %v782_v35  ;;  %v785_v39 = vadd.f32 1.0, %v3104_v36 }
  0x15   :  { %v3108_v40 = vpop.eup %3107  ;;  %3127 = vrcp.f32 %v786_v37  ;;  %v788_v41 = vadd.f32 1.0, %v3106_v38 }
  0x16   :  { %v3110_v42 = vpop.eup %3109  ;;  %3129 = vrcp.f32 %v785_v39  ;;  %v787_v43 = vadd.f32 1.0, %v3108_v40 }
  0x17   :  { %v3112_v44 = vpop.eup %3111  ;;  %3131 = vrcp.f32 %v788_v41  ;;  %v790_v45 = vadd.f32 1.0, %v3110_v42 }
  0x18   :  { %v3114_v47 = vpop.eup %3113  ;;  %3133 = vrcp.f32 %v787_v43  ;;  %v789_v48 = vadd.f32 1.0, %v3112_v44 }
  0x19   :  { %v3116_v50 = vpop.eup %3115  ;;  %3135 = vrcp.f32 %v790_v45  ;;  %v792_v51 = vadd.f32 1.0, %v3114_v47  ;;  %v40_v47 = vld [vmem:[%s5845_s0 + $0xd8] sm:$0xff] }
  0x1a   :  { %v3118_v53 = vpop.eup %3117  ;;  %3137 = vrcp.f32 %v789_v48  ;;  %v791_v54 = vadd.f32 1.0, %v3116_v50  ;;  %v39_v50 = vld [vmem:[%s5845_s0 + $0xd0] sm:$0xff]  ;;  %v2925_v56 = vmul.f32 -1.442695, %v40_v47 }
  0x1b   :  { %v3120_v57 = vpop.eup %3119  ;;  %3139 = vrcp.f32 %v792_v51  ;;  %v794_v58 = vadd.f32 1.0, %v3118_v53  ;;  %v42_v53 = vld [vmem:[%s5845_s0 + $0xe8] sm:$0xff]  ;;  %v2924_v60 = vmul.f32 -1.442695, %v39_v50 }
  0x1c   :  { %v3122_v61 = vpop.eup %3121  ;;  %1561 = vperm.xlu1 %3092, %v3120_v57   ;;  %3141 = vrcp.f32 %v791_v54  ;;  %v41_v57 = vld [vmem:[%s5845_s0 + $0xe0] sm:$0xff]  ;;  %v2927_v63 = vmul.f32 -1.442695, %v42_v53 }
  0x1d   :  { %v3124_v0 = vpop.eup %3123  ;;  %1551 = vperm.xlu0 %3091, %v3122_v61   ;;  %3143 = vrcp.f32 %v794_v58  ;;  %v44_v61 = vld [vmem:[%s5845_s0 + $0xf8] sm:$0xff]  ;;  %v2926_v2 = vmul.f32 -1.442695, %v41_v57 }
  0x1e   :  { %v3126_v3 = vpop.eup %3125  ;;  %3145 = vpow2.f32 %v2910_v55  ;;  %v2929_v5 = vmul.f32 -1.442695, %v44_v61 }
  0x1f   :  { %v3128_v6 = vpop.eup %3127  ;;  %3147 = vpow2.f32 %v2913_v59 }
  0x20   :  { %v3130_v9 = vpop.eup %3129  ;;  %1566 = vperm.xlu1 %3092, %v3124_v0   ;;  %3149 = vpow2.f32 %v2912_v62  ;;  %v43_v0 = vld [vmem:[%s5845_s0 + $0xf0] sm:$0xff] }
  0x21   :  { %v3132_v12 = vpop.eup %3131  ;;  %1556 = vperm.xlu0 %3091, %v3126_v3   ;;  %3151 = vpow2.f32 %v2915_v1  ;;  %v46_v3 = vld [vmem:[%s5845_s0 + $0x108] sm:$0xff]  ;;  %v2928_v8 = vmul.f32 -1.442695, %v43_v0 }
  0x22   :  { %v3134_v15 = vpop.eup %3133  ;;  %3153 = vpow2.f32 %v2914_v4  ;;  %v2931_v11 = vmul.f32 -1.442695, %v46_v3 }
  0x23   :  { %v3136_v18 = vpop.eup %3135  ;;  %3155 = vpow2.f32 %v2917_v7 }
  0x24   :  { %v3138_v21 = vpop.eup %3137  ;;  %1576 = vperm.xlu1 %3092, %v3128_v6   ;;  %3157 = vpow2.f32 %v2916_v10  ;;  %v45_v6 = vld [vmem:[%s5845_s0 + $0x100] sm:$0xff] }
  0x25   :  { %v3140_v23 = vpop.eup %3139  ;;  %1571 = vperm.xlu0 %3091, %v3130_v9   ;;  %3159 = vpow2.f32 %v2919_v13  ;;  %v48_v9 = vld [vmem:[%s5845_s0 + $0x118] sm:$0xff]  ;;  %v2930_v14 = vmul.f32 -1.442695, %v45_v6 }
  0x26   :  { %v3142_v25 = vpop.eup %3141  ;;  %3161 = vpow2.f32 %v2918_v16  ;;  %v2933_v17 = vmul.f32 -1.442695, %v48_v9 }
  0x27   :  { %v3144_v27 = vpop.eup %3143  ;;  %3163 = vpow2.f32 %v2921_v19 }
  0x28   :  { %v3146_v28 = vpop.eup %3145  ;;  %1586 = vperm.xlu1 %3092, %v3132_v12   ;;  %3165 = vpow2.f32 %v2920_v22  ;;  %v47_v12 = vld [vmem:[%s5845_s0 + $0x110] sm:$0xff] }
  0x29   :  { %v3148_v29 = vpop.eup %3147  ;;  %1581 = vperm.xlu0 %3091, %v3134_v15   ;;  %v793_v30 = vadd.f32 1.0, %v3146_v28  ;;  %3167 = vpow2.f32 %v2923_v24  ;;  %v50_v15 = vld [vmem:[%s5845_s0 + $0x128] sm:$0xff]  ;;  %v2932_v20 = vmul.f32 -1.442695, %v47_v12 }
  0x2a   :  { %v3150_v31 = vpop.eup %3149  ;;  %v796_v32 = vadd.f32 1.0, %v3148_v29  ;;  %3169 = vpow2.f32 %v2922_v26 }
  0x2b   :  { %v3152_v33 = vpop.eup %3151  ;;  %3171 = vrcp.f32 %v793_v30  ;;  %v795_v34 = vadd.f32 1.0, %v3150_v31 }
  0x2c   :  { %v3154_v35 = vpop.eup %3153  ;;  %1596 = vperm.xlu1 %3092, %v3136_v18   ;;  %3173 = vrcp.f32 %v796_v32  ;;  %v798_v36 = vadd.f32 1.0, %v3152_v33  ;;  %v49_v18 = vld [vmem:[%s5845_s0 + $0x120] sm:$0xff] }
  0x2d   :  { %v3156_v37 = vpop.eup %3155  ;;  %1591 = vperm.xlu0 %3091, %v3138_v21   ;;  %3175 = vrcp.f32 %v795_v34  ;;  %v797_v38 = vadd.f32 1.0, %v3154_v35  ;;  %v52_v21 = vld [vmem:[%s5845_s0 + $0x138] sm:$0xff] }
  0x2e   :  { %v3158_v39 = vpop.eup %3157  ;;  %3177 = vrcp.f32 %v798_v36  ;;  %v800_v40 = vadd.f32 1.0, %v3156_v37 }
  0x2f   :  { %v3160_v41 = vpop.eup %3159  ;;  %3179 = vrcp.f32 %v797_v38  ;;  %v799_v42 = vadd.f32 1.0, %v3158_v39 }
  0x30   :  { %v3162_v43 = vpop.eup %3161  ;;  %1606 = vperm.xlu1 %3092, %v3140_v23   ;;  %3181 = vrcp.f32 %v800_v40  ;;  %v802_v44 = vadd.f32 1.0, %v3160_v41  ;;  %v2935_v23 = vmul.f32 -1.442695, %v50_v15 }
  0x31   :  { %v3164_v45 = vpop.eup %3163  ;;  %1601 = vperm.xlu0 %3091, %v3142_v25   ;;  %3183 = vrcp.f32 %v799_v42  ;;  %v801_v46 = vadd.f32 1.0, %v3162_v43  ;;  %v2934_v25 = vmul.f32 -1.442695, %v49_v18 }
  0x32   :  { %v3166_v48 = vpop.eup %3165  ;;  %3185 = vrcp.f32 %v802_v44  ;;  %v804_v49 = vadd.f32 1.0, %v3164_v45 }
  0x33   :  { %v3168_v51 = vpop.eup %3167  ;;  %3187 = vrcp.f32 %v801_v46  ;;  %v803_v52 = vadd.f32 1.0, %v3166_v48  ;;  %v51_v48 = vld [vmem:[%s5845_s0 + $0x130] sm:$0xff] }
  0x34   :  { %v3170_v54 = vpop.eup %3169  ;;  %1616 = vperm.xlu1 %3092, %v3144_v27   ;;  %3189 = vrcp.f32 %v804_v49  ;;  %v806_v55 = vadd.f32 1.0, %v3168_v51  ;;  %v2937_v27 = vmul.f32 -1.442695, %v52_v21  ;;  %v54_v51 = vld [vmem:[%s5845_s0 + $0x148] sm:$0xff]  ;;  %v2936_v57 = vmul.f32 -1.442695, %v51_v48 }
  0x35   :  { %v3172_v58 = vpop.eup %3171  ;;  %3191 = vrcp.f32 %v803_v52  ;;  %v805_v59 = vadd.f32 1.0, %v3170_v54  ;;  %v53_v54 = vld [vmem:[%s5845_s0 + $0x140] sm:$0xff]  ;;  %v2939_v61 = vmul.f32 -1.442695, %v54_v51 }
  0x36   :  { %v3174_v62 = vpop.eup %3173  ;;  %1611 = vperm.xlu0 %3091, %v3172_v58   ;;  %3193 = vrcp.f32 %v806_v55  ;;  %v56_v58 = vld [vmem:[%s5845_s0 + $0x158] sm:$0xff]  ;;  %v2938_v0 = vmul.f32 -1.442695, %v53_v54 }
  0x37   :  { %v3176_v1 = vpop.eup %3175  ;;  %3195 = vrcp.f32 %v805_v59  ;;  %v2941_v3 = vmul.f32 -1.442695, %v56_v58 }
  0x38   :  { %v3178_v4 = vpop.eup %3177  ;;  %1626 = vperm.xlu1 %3092, %v3174_v62   ;;  %3197 = vpow2.f32 %v2925_v56  ;;  %v55_v62 = vld [vmem:[%s5845_s0 + $0x150] sm:$0xff] }
  0x39   :  { %v3180_v7 = vpop.eup %3179  ;;  %3199 = vpow2.f32 %v2924_v60  ;;  %v2940_v6 = vmul.f32 -1.442695, %v55_v62 }
  0x3a   :  { %v3182_v10 = vpop.eup %3181  ;;  %1621 = vperm.xlu0 %3091, %v3176_v1   ;;  %3201 = vpow2.f32 %v2927_v63  ;;  %v58_v1 = vld [vmem:[%s5845_s0 + $0x168] sm:$0xff] }
  0x3b   :  { %v3184_v13 = vpop.eup %3183  ;;  %3203 = vpow2.f32 %v2926_v2  ;;  %v2943_v9 = vmul.f32 -1.442695, %v58_v1 }
  0x3c   :  { %v3186_v16 = vpop.eup %3185  ;;  %1636 = vperm.xlu1 %3092, %v3178_v4   ;;  %3205 = vpow2.f32 %v2929_v5  ;;  %v57_v4 = vld [vmem:[%s5845_s0 + $0x160] sm:$0xff] }
  0x3d   :  { %v3188_v19 = vpop.eup %3187  ;;  %3207 = vpow2.f32 %v2928_v8  ;;  %v2942_v12 = vmul.f32 -1.442695, %v57_v4 }
  0x3e   :  { %v3190_v22 = vpop.eup %3189  ;;  %1631 = vperm.xlu0 %3091, %v3180_v7   ;;  %3209 = vpow2.f32 %v2931_v11  ;;  %v60_v7 = vld [vmem:[%s5845_s0 + $0x178] sm:$0xff] }
  0x3f   :  { %v3192_v24 = vpop.eup %3191  ;;  %3211 = vpow2.f32 %v2930_v14  ;;  %v2945_v15 = vmul.f32 -1.442695, %v60_v7 }
  0x40   :  { %v3194_v26 = vpop.eup %3193  ;;  %1646 = vperm.xlu1 %3092, %v3182_v10   ;;  %3213 = vpow2.f32 %v2933_v17  ;;  %v59_v10 = vld [vmem:[%s5845_s0 + $0x170] sm:$0xff] }
  0x41   :  { %v3196_v28 = vpop.eup %3195  ;;  %3215 = vpow2.f32 %v2932_v20  ;;  %v2944_v18 = vmul.f32 -1.442695, %v59_v10 }
  0x42   :  { %v3198_v29 = vpop.eup %3197  ;;  %1641 = vperm.xlu0 %3091, %v3184_v13   ;;  %3217 = vpow2.f32 %v2935_v23  ;;  %v62_v13 = vld [vmem:[%s5845_s0 + $0x188] sm:$0xff] }
  0x43   :  { %v3200_v30 = vpop.eup %3199  ;;  %v808_v31 = vadd.f32 1.0, %v3198_v29  ;;  %3219 = vpow2.f32 %v2934_v25  ;;  %v2947_v21 = vmul.f32 -1.442695, %v62_v13 }
  0x44   :  { %v3202_v32 = vpop.eup %3201  ;;  %1656 = vperm.xlu1 %3092, %v3186_v16   ;;  %v807_v33 = vadd.f32 1.0, %v3200_v30  ;;  %3221 = vpow2.f32 %v2937_v27  ;;  %v61_v16 = vld [vmem:[%s5845_s0 + $0x180] sm:$0xff] }
  0x45   :  { %v3204_v34 = vpop.eup %3203  ;;  %3223 = vrcp.f32 %v808_v31  ;;  %v810_v35 = vadd.f32 1.0, %v3202_v32 }
  0x46   :  { %v3206_v36 = vpop.eup %3205  ;;  %1651 = vperm.xlu0 %3091, %v3188_v19   ;;  %3225 = vrcp.f32 %v807_v33  ;;  %v809_v37 = vadd.f32 1.0, %v3204_v34  ;;  %v64_v19 = vld [vmem:[%s5845_s0 + $0x198] sm:$0xff] }
  0x47   :  { %v3208_v38 = vpop.eup %3207  ;;  %3227 = vrcp.f32 %v810_v35  ;;  %v812_v39 = vadd.f32 1.0, %v3206_v36 }
  0x48   :  { %v3210_v40 = vpop.eup %3209  ;;  %1666 = vperm.xlu1 %3092, %v3190_v22   ;;  %3229 = vrcp.f32 %v809_v37  ;;  %v811_v41 = vadd.f32 1.0, %v3208_v38  ;;  %v63_v22 = vld [vmem:[%s5845_s0 + $0x190] sm:$0xff] }
  0x49   :  { %v3212_v42 = vpop.eup %3211  ;;  %3231 = vrcp.f32 %v812_v39  ;;  %v814_v43 = vadd.f32 1.0, %v3210_v40 }
  0x4a   :  { %v3214_v44 = vpop.eup %3213  ;;  %1661 = vperm.xlu0 %3091, %v3192_v24   ;;  %3233 = vrcp.f32 %v811_v41  ;;  %v813_v45 = vadd.f32 1.0, %v3212_v42  ;;  %v2946_v24 = vmul.f32 -1.442695, %v61_v16 }
  0x4b   :  { %v3216_v46 = vpop.eup %3215  ;;  %3235 = vrcp.f32 %v814_v43  ;;  %v816_v47 = vadd.f32 1.0, %v3214_v44 }
  0x4c   :  { %v3218_v49 = vpop.eup %3217  ;;  %1676 = vperm.xlu1 %3092, %v3194_v26   ;;  %3237 = vrcp.f32 %v813_v45  ;;  %v815_v50 = vadd.f32 1.0, %v3216_v46  ;;  %v2949_v26 = vmul.f32 -1.442695, %v64_v19 }
  0x4d   :  { %v3220_v52 = vpop.eup %3219  ;;  %3239 = vrcp.f32 %v816_v47  ;;  %v818_v53 = vadd.f32 1.0, %v3218_v49  ;;  %v66_v49 = vld [vmem:[%s5845_s0 + $0x1a8] sm:$0xff] }
  0x4e   :  { %v3222_v55 = vpop.eup %3221  ;;  %1671 = vperm.xlu0 %3091, %v3196_v28   ;;  %3241 = vrcp.f32 %v815_v50  ;;  %v817_v56 = vadd.f32 1.0, %v3220_v52  ;;  %v2948_v28 = vmul.f32 -1.442695, %v63_v22  ;;  %v65_v52 = vld [vmem:[%s5845_s0 + $0x1a0] sm:$0xff]  ;;  %v2951_v58 = vmul.f32 -1.442695, %v66_v49 }
  0x4f   :  { %v3224_v59 = vpop.eup %3223  ;;  %3243 = vrcp.f32 %v818_v53  ;;  %v820_v60 = vadd.f32 1.0, %v3222_v55  ;;  %v68_v55 = vld [vmem:[%s5845_s0 + $0x1b8] sm:$0xff]  ;;  %v2950_v62 = vmul.f32 -1.442695, %v65_v52 }
  0x50   :  { %v3226_v63 = vpop.eup %3225  ;;  %1686 = vperm.xlu1 %3092, %v3224_v59   ;;  %3245 = vrcp.f32 %v817_v56  ;;  %v67_v59 = vld [vmem:[%s5845_s0 + $0x1b0] sm:$0xff]  ;;  %v2953_v1 = vmul.f32 -1.442695, %v68_v55 }
  0x51   :  { %v3228_v2 = vpop.eup %3227  ;;  %3247 = vrcp.f32 %v820_v60  ;;  %v2952_v4 = vmul.f32 -1.442695, %v67_v59 }
  0x52   :  { %v3230_v5 = vpop.eup %3229  ;;  %1681 = vperm.xlu0 %3091, %v3226_v63   ;;  %3249 = vpow2.f32 %v2936_v57  ;;  %v70_v63 = vld [vmem:[%s5845_s0 + $0x1c8] sm:$0xff] }
  0x53   :  { %v3232_v8 = vpop.eup %3231  ;;  %3251 = vpow2.f32 %v2939_v61  ;;  %v2955_v7 = vmul.f32 -1.442695, %v70_v63 }
  0x54   :  { %v3234_v11 = vpop.eup %3233  ;;  %1696 = vperm.xlu1 %3092, %v3228_v2   ;;  %3253 = vpow2.f32 %v2938_v0  ;;  %v69_v2 = vld [vmem:[%s5845_s0 + $0x1c0] sm:$0xff] }
  0x55   :  { %v3236_v14 = vpop.eup %3235  ;;  %3255 = vpow2.f32 %v2941_v3  ;;  %v2954_v10 = vmul.f32 -1.442695, %v69_v2 }
  0x56   :  { %v3238_v17 = vpop.eup %3237  ;;  %1691 = vperm.xlu0 %3091, %v3230_v5   ;;  %3257 = vpow2.f32 %v2940_v6  ;;  %v72_v5 = vld [vmem:[%s5845_s0 + $0x1d8] sm:$0xff] }
  0x57   :  { %v3240_v20 = vpop.eup %3239  ;;  %3259 = vpow2.f32 %v2943_v9  ;;  %v2957_v13 = vmul.f32 -1.442695, %v72_v5 }
  0x58   :  { %v3242_v23 = vpop.eup %3241  ;;  %1706 = vperm.xlu1 %3092, %v3232_v8   ;;  %3261 = vpow2.f32 %v2942_v12  ;;  %v71_v8 = vld [vmem:[%s5845_s0 + $0x1d0] sm:$0xff] }
  0x59   :  { %v3244_v25 = vpop.eup %3243  ;;  %3263 = vpow2.f32 %v2945_v15  ;;  %v2956_v16 = vmul.f32 -1.442695, %v71_v8 }
  0x5a   :  { %v3246_v27 = vpop.eup %3245  ;;  %1701 = vperm.xlu0 %3091, %v3234_v11   ;;  %3265 = vpow2.f32 %v2944_v18  ;;  %v74_v11 = vld [vmem:[%s5845_s0 + $0x1e8] sm:$0xff] }
  0x5b   :  { %v3248_v29 = vpop.eup %3247  ;;  %3267 = vpow2.f32 %v2947_v21  ;;  %v2959_v19 = vmul.f32 -1.442695, %v74_v11 }
  0x5c   :  { %v3250_v30 = vpop.eup %3249  ;;  %1716 = vperm.xlu1 %3092, %v3236_v14   ;;  %3269 = vpow2.f32 %v2946_v24  ;;  %v73_v14 = vld [vmem:[%s5845_s0 + $0x1e0] sm:$0xff] }
  0x5d   :  { %v3252_v31 = vpop.eup %3251  ;;  %v819_v32 = vadd.f32 1.0, %v3250_v30  ;;  %3271 = vpow2.f32 %v2949_v26  ;;  %v2958_v22 = vmul.f32 -1.442695, %v73_v14 }
  0x5e   :  { %v3254_v33 = vpop.eup %3253  ;;  %1711 = vperm.xlu0 %3091, %v3238_v17   ;;  %v822_v34 = vadd.f32 1.0, %v3252_v31  ;;  %3273 = vpow2.f32 %v2948_v28  ;;  %v76_v17 = vld [vmem:[%s5845_s0 + $0x1f8] sm:$0xff] }
  0x5f   :  { %v3256_v35 = vpop.eup %3255  ;;  %3275 = vrcp.f32 %v819_v32  ;;  %v821_v36 = vadd.f32 1.0, %v3254_v33 }
  0x60   :  { %v3258_v37 = vpop.eup %3257  ;;  %1726 = vperm.xlu1 %3092, %v3240_v20   ;;  %3277 = vrcp.f32 %v822_v34  ;;  %v824_v38 = vadd.f32 1.0, %v3256_v35  ;;  %v75_v20 = vld [vmem:[%s5845_s0 + $0x1f0] sm:$0xff] }
  0x61   :  { %v3260_v39 = vpop.eup %3259  ;;  %3279 = vrcp.f32 %v821_v36  ;;  %v823_v40 = vadd.f32 1.0, %v3258_v37 }
  0x62   :  { %v3262_v41 = vpop.eup %3261  ;;  %1721 = vperm.xlu0 %3091, %v3242_v23   ;;  %3281 = vrcp.f32 %v824_v38  ;;  %v826_v42 = vadd.f32 1.0, %v3260_v39  ;;  %v78_v23 = vld [vmem:[%s5845_s0 + $0x208] sm:$0xff] }
  0x63   :  { %v3264_v43 = vpop.eup %3263  ;;  %3283 = vrcp.f32 %v823_v40  ;;  %v825_v44 = vadd.f32 1.0, %v3262_v41 }
  0x64   :  { %v3266_v45 = vpop.eup %3265  ;;  %1736 = vperm.xlu1 %3092, %v3244_v25   ;;  %3285 = vrcp.f32 %v826_v42  ;;  %v828_v46 = vadd.f32 1.0, %v3264_v43  ;;  %v2961_v25 = vmul.f32 -1.442695, %v76_v17 }
  0x65   :  { %v3268_v47 = vpop.eup %3267  ;;  %3287 = vrcp.f32 %v825_v44  ;;  %v827_v48 = vadd.f32 1.0, %v3266_v45 }
  0x66   :  { %v3270_v50 = vpop.eup %3269  ;;  %1731 = vperm.xlu0 %3091, %v3246_v27   ;;  %3289 = vrcp.f32 %v828_v46  ;;  %v830_v51 = vadd.f32 1.0, %v3268_v47  ;;  %v2960_v27 = vmul.f32 -1.442695, %v75_v20 }
  0x67   :  { %v3272_v53 = vpop.eup %3271  ;;  %3291 = vrcp.f32 %v827_v48  ;;  %v829_v54 = vadd.f32 1.0, %v3270_v50  ;;  %v77_v50 = vld [vmem:[%s5845_s0 + $0x200] sm:$0xff] }
  0x68   :  { %v3274_v56 = vpop.eup %3273  ;;  %1746 = vperm.xlu1 %3092, %v3248_v29   ;;  %3293 = vrcp.f32 %v830_v51  ;;  %v832_v57 = vadd.f32 1.0, %v3272_v53  ;;  %v2963_v29 = vmul.f32 -1.442695, %v78_v23  ;;  %v80_v53 = vld [vmem:[%s5845_s0 + $0x218] sm:$0xff]  ;;  %v2962_v59 = vmul.f32 -1.442695, %v77_v50 }
  0x69   :  { %v3276_v60 = vpop.eup %3275  ;;  %3295 = vrcp.f32 %v829_v54  ;;  %v831_v61 = vadd.f32 1.0, %v3274_v56  ;;  %v79_v56 = vld [vmem:[%s5845_s0 + $0x210] sm:$0xff]  ;;  %v2965_v63 = vmul.f32 -1.442695, %v80_v53 }
  0x6a   :  { %v3278_v0 = vpop.eup %3277  ;;  %1741 = vperm.xlu0 %3091, %v3276_v60   ;;  %3297 = vrcp.f32 %v832_v57  ;;  %v82_v60 = vld [vmem:[%s5845_s0 + $0x228] sm:$0xff]  ;;  %v2964_v2 = vmul.f32 -1.442695, %v79_v56  ;;  %v1359_v50 = vld [vmem:[%s5846_s1 + $0x10] sm:$0xff] }
  0x6b   :  { %v3280_v3 = vpop.eup %3279  ;;  %3299 = vrcp.f32 %v831_v61  ;;  %v2967_v5 = vmul.f32 -1.442695, %v82_v60  ;;  %v91_v56 = vld [vmem:[%s5845_s0 + $0x270] sm:$0xff]  ;;  %v94_v60 = vld [vmem:[%s5845_s0 + $0x288] sm:$0xff] }
  0x6c   :  { %v3282_v6 = vpop.eup %3281  ;;  %1756 = vperm.xlu1 %3092, %v3278_v0   ;;  %3301 = vpow2.f32 %v2951_v58  ;;  %v81_v0 = vld [vmem:[%s5845_s0 + $0x220] sm:$0xff] }
  0x6d   :  { %v3284_v9 = vpop.eup %3283  ;;  %3303 = vpow2.f32 %v2950_v62  ;;  %v2966_v8 = vmul.f32 -1.442695, %v81_v0 }
  0x6e   :  { %v3286_v12 = vpop.eup %3285  ;;  %1751 = vperm.xlu0 %3091, %v3280_v3   ;;  %3305 = vpow2.f32 %v2953_v1  ;;  %v84_v3 = vld [vmem:[%s5845_s0 + $0x238] sm:$0xff] }
  0x6f   :  { %v3288_v15 = vpop.eup %3287  ;;  %3307 = vpow2.f32 %v2952_v4  ;;  %v2969_v11 = vmul.f32 -1.442695, %v84_v3 }
  0x70   :  { %v3290_v18 = vpop.eup %3289  ;;  %1766 = vperm.xlu1 %3092, %v3282_v6   ;;  %3309 = vpow2.f32 %v2955_v7  ;;  %v83_v6 = vld [vmem:[%s5845_s0 + $0x230] sm:$0xff] }
  0x71   :  { %v3292_v21 = vpop.eup %3291  ;;  %3311 = vpow2.f32 %v2954_v10  ;;  %v2968_v14 = vmul.f32 -1.442695, %v83_v6 }
  0x72   :  { %v3294_v24 = vpop.eup %3293  ;;  %1761 = vperm.xlu0 %3091, %v3284_v9   ;;  %3313 = vpow2.f32 %v2957_v13  ;;  %v86_v9 = vld [vmem:[%s5845_s0 + $0x248] sm:$0xff] }
  0x73   :  { %v3296_v26 = vpop.eup %3295  ;;  %3315 = vpow2.f32 %v2956_v16  ;;  %v2971_v17 = vmul.f32 -1.442695, %v86_v9 }
  0x74   :  { %v3298_v28 = vpop.eup %3297  ;;  %1776 = vperm.xlu1 %3092, %v3286_v12   ;;  %3317 = vpow2.f32 %v2959_v19  ;;  %v85_v12 = vld [vmem:[%s5845_s0 + $0x240] sm:$0xff] }
  0x75   :  { %v3300_v30 = vpop.eup %3299  ;;  %3319 = vpow2.f32 %v2958_v22  ;;  %v2970_v20 = vmul.f32 -1.442695, %v85_v12  ;;  %v95_v12 = vld [vmem:[%s5845_s0 + $0x290] sm:$0xff] }
  0x76   :  { %v3302_v31 = vpop.eup %3301  ;;  %1771 = vperm.xlu0 %3091, %v3288_v15   ;;  %3321 = vpow2.f32 %v2961_v25  ;;  %v88_v15 = vld [vmem:[%s5845_s0 + $0x258] sm:$0xff] }
  0x77   :  { %v3304_v32 = vpop.eup %3303  ;;  %v834_v33 = vadd.f32 1.0, %v3302_v31  ;;  %3323 = vpow2.f32 %v2960_v27  ;;  %v2973_v23 = vmul.f32 -1.442695, %v88_v15 }
  0x78   :  { %v3306_v34 = vpop.eup %3305  ;;  %1786 = vperm.xlu1 %3092, %v3290_v18   ;;  %v833_v35 = vadd.f32 1.0, %v3304_v32  ;;  %3325 = vpow2.f32 %v2963_v29  ;;  %v87_v18 = vld [vmem:[%s5845_s0 + $0x250] sm:$0xff] }
  0x79   :  { %v3308_v36 = vpop.eup %3307  ;;  %3327 = vrcp.f32 %v834_v33  ;;  %v836_v37 = vadd.f32 1.0, %v3306_v34 }
  0x7a   :  { %v3310_v38 = vpop.eup %3309  ;;  %1781 = vperm.xlu0 %3091, %v3292_v21   ;;  %3329 = vrcp.f32 %v833_v35  ;;  %v835_v39 = vadd.f32 1.0, %v3308_v36  ;;  %v90_v21 = vld [vmem:[%s5845_s0 + $0x268] sm:$0xff] }
  0x7b   :  { %v3312_v40 = vpop.eup %3311  ;;  %3331 = vrcp.f32 %v836_v37  ;;  %v838_v41 = vadd.f32 1.0, %v3310_v38 }
  0x7c   :  { %v3314_v42 = vpop.eup %3313  ;;  %1796 = vperm.xlu1 %3092, %v3294_v24   ;;  %3333 = vrcp.f32 %v835_v39  ;;  %v837_v43 = vadd.f32 1.0, %v3312_v40  ;;  %v89_v24 = vld [vmem:[%s5845_s0 + $0x260] sm:$0xff] }
  0x7d   :  { %v3316_v44 = vpop.eup %3315  ;;  %3335 = vrcp.f32 %v838_v41  ;;  %v840_v45 = vadd.f32 1.0, %v3314_v42 }
  0x7e   :  { %v3318_v46 = vpop.eup %3317  ;;  %1791 = vperm.xlu0 %3091, %v3296_v26   ;;  %3337 = vrcp.f32 %v837_v43  ;;  %v839_v47 = vadd.f32 1.0, %v3316_v44  ;;  %v2972_v26 = vmul.f32 -1.442695, %v87_v18 }
  0x7f   :  { %v3320_v48 = vpop.eup %3319  ;;  %3339 = vrcp.f32 %v840_v45  ;;  %v842_v49 = vadd.f32 1.0, %v3318_v46 }
  0x80   :  { %v3322_v51 = vpop.eup %3321  ;;  %1806 = vperm.xlu1 %3092, %v3298_v28   ;;  %3341 = vrcp.f32 %v839_v47  ;;  %v841_v52 = vadd.f32 1.0, %v3320_v48  ;;  %v2975_v28 = vmul.f32 -1.442695, %v90_v21  ;;  %v97_v21 = vld [vmem:[%s5845_s0 + $0x2a0] sm:$0xff] }
  0x81   :  { %v3324_v54 = vpop.eup %3323  ;;  %3343 = vrcp.f32 %v842_v49  ;;  %v844_v55 = vadd.f32 1.0, %v3322_v51 }
  0x82   :  { %v3326_v57 = vpop.eup %3325  ;;  %1801 = vperm.xlu0 %3091, %v3300_v30   ;;  %3345 = vrcp.f32 %v841_v52  ;;  %v843_v58 = vadd.f32 1.0, %v3324_v54  ;;  %v2974_v30 = vmul.f32 -1.442695, %v89_v24  ;;  %v92_v52 = vld [vmem:[%s5845_s0 + $0x278] sm:$0xff]  ;;  %v1357_v54 = vld [vmem:[%s5846_s1] sm:$0xff]  ;;  %v1362_v24 = vld [vmem:[%s5846_s1 + $0x28] sm:$0xff] }
  0x83   :  { %v3328_v61 = vpop.eup %3327  ;;  %3347 = vrcp.f32 %v844_v55  ;;  %v846_v62 = vadd.f32 1.0, %v3326_v57 }
  0x84   :  { %v3330_v1 = vpop.eup %3329  ;;  %1816 = vperm.xlu1 %3092, %v3328_v61   ;;  %3349 = vrcp.f32 %v843_v58 }
  0x85   :  { %v3332_v4 = vpop.eup %3331  ;;  %3351 = vrcp.f32 %v846_v62 }
  0x86   :  { %v3334_v7 = vpop.eup %3333  ;;  %1811 = vperm.xlu0 %3091, %v3330_v1   ;;  %3353 = vpow2.f32 %v2962_v59  ;;  %v2977_v1 = vmul.f32 -1.442695, %v92_v52 }
  0x87   :  { %v3336_v10 = vpop.eup %3335  ;;  %3355 = vpow2.f32 %v2965_v63 }
  0x88   :  { %v3338_v13 = vpop.eup %3337  ;;  %1826 = vperm.xlu1 %3092, %v3332_v4   ;;  %3357 = vpow2.f32 %v2964_v2  ;;  %v93_v2 = vld [vmem:[%s5845_s0 + $0x280] sm:$0xff] }
  0x89   :  { %v3340_v16 = vpop.eup %3339  ;;  %3359 = vpow2.f32 %v2967_v5  ;;  %v1360_v5 = vld [vmem:[%s5846_s1 + $0x18] sm:$0xff]  ;;  %v2978_v15 = vmul.f32 -1.442695, %v93_v2 }
  0x8a   :  { %v3342_v19 = vpop.eup %3341  ;;  %1821 = vperm.xlu0 %3091, %v3334_v7   ;;  %3361 = vpow2.f32 %v2966_v8  ;;  %v2976_v7 = vmul.f32 -1.442695, %v91_v56  ;;  %v96_v8 = vld [vmem:[%s5845_s0 + $0x298] sm:$0xff] }
  0x8b   :  { %v3344_v22 = vpop.eup %3343  ;;  %3363 = vpow2.f32 %v2969_v11  ;;  %v2979_v11 = vmul.f32 -1.442695, %v94_v60 }
  0x8c   :  { %v3346_v25 = vpop.eup %3345  ;;  %1836 = vperm.xlu1 %3092, %v3336_v10   ;;  %3365 = vpow2.f32 %v2968_v14  ;;  %v1358_v10 = vld [vmem:[%s5846_s1 + $0x8] sm:$0xff] }
  0x8d   :  { %v3348_v27 = vpop.eup %3347  ;;  %3367 = vpow2.f32 %v2971_v17 }
  0x8e   :  { %v3350_v29 = vpop.eup %3349  ;;  %1831 = vperm.xlu0 %3091, %v3338_v13   ;;  %3369 = vpow2.f32 %v2970_v20  ;;  %v2981_v20 = vmul.f32 -1.442695, %v96_v8  ;;  %v1367_v8 = vld [vmem:[%s5846_s1 + $0x50] sm:$0xff] }
  0x8f   :  { %v3352_v31 = vpop.eup %3351  ;;  %3371 = vpow2.f32 %v2973_v23 }
  0x90   :  { %v3354_v32 = vpop.eup %3353  ;;  %1846 = vperm.xlu1 %3092, %v3340_v16   ;;  %3373 = vpow2.f32 %v2972_v26  ;;  %v98_v16 = vld [vmem:[%s5845_s0 + $0x2a8] sm:$0xff]  ;;  %v100_v26 = vld [vmem:[%s5845_s0 + $0x2b8] sm:$0xff] }
  0x91   :  { %v3356_v33 = vpop.eup %3355  ;;  %v845_v34 = vadd.f32 1.0, %v3354_v32  ;;  %3375 = vpow2.f32 %v2975_v28  ;;  %v1361_v28 = vld [vmem:[%s5846_s1 + $0x20] sm:$0xff] }
  0x92   :  { %v3358_v35 = vpop.eup %3357  ;;  %1841 = vperm.xlu0 %3091, %v3342_v19   ;;  %v848_v36 = vadd.f32 1.0, %v3356_v33  ;;  %3377 = vpow2.f32 %v2974_v30  ;;  %v99_v30 = vld [vmem:[%s5845_s0 + $0x2b0] sm:$0xff]  ;;  %v2982_v33 = vmul.f32 -1.442695, %v97_v21 }
  0x93   :  { %v3360_v37 = vpop.eup %3359  ;;  %3379 = vrcp.f32 %v845_v34  ;;  %v847_v38 = vadd.f32 1.0, %v3358_v35  ;;  %v102_v34 = vld [vmem:[%s5845_s0 + $0x2c8] sm:$0xff] }
  0x94   :  { %v3362_v39 = vpop.eup %3361  ;;  %1856 = vperm.xlu1 %3092, %v3344_v22   ;;  %3381 = vrcp.f32 %v848_v36  ;;  %v850_v40 = vadd.f32 1.0, %v3360_v37 }
  0x95   :  { %v3364_v41 = vpop.eup %3363  ;;  %3383 = vrcp.f32 %v847_v38  ;;  %v849_v42 = vadd.f32 1.0, %v3362_v39  ;;  %v2985_v38 = vmul.f32 -1.442695, %v100_v26  ;;  %v101_v39 = vld [vmem:[%s5845_s0 + $0x2c0] sm:$0xff] }
  0x96   :  { %v3366_v43 = vpop.eup %3365  ;;  %1851 = vperm.xlu0 %3091, %v3346_v25   ;;  %3385 = vrcp.f32 %v850_v40  ;;  %v852_v44 = vadd.f32 1.0, %v3364_v41  ;;  %v2980_v25 = vmul.f32 -1.442695, %v95_v12 }
  0x97   :  { %v3368_v45 = vpop.eup %3367  ;;  %3387 = vrcp.f32 %v849_v42  ;;  %v851_v46 = vadd.f32 1.0, %v3366_v43  ;;  %v1364_v42 = vld [vmem:[%s5846_s1 + $0x38] sm:$0xff]  ;;  %v2984_v43 = vmul.f32 -1.442695, %v99_v30 }
  0x98   :  { %v3370_v47 = vpop.eup %3369  ;;  %1866 = vperm.xlu1 %3092, %v3348_v27   ;;  %3389 = vrcp.f32 %v852_v44  ;;  %v854_v48 = vadd.f32 1.0, %v3368_v45  ;;  %v104_v44 = vld [vmem:[%s5845_s0 + $0x2d8] sm:$0xff] }
  0x99   :  { %v3372_v49 = vpop.eup %3371  ;;  %3391 = vrcp.f32 %v851_v46  ;;  %v853_v51 = vadd.f32 1.0, %v3370_v47  ;;  %v1363_v46 = vld [vmem:[%s5846_s1 + $0x30] sm:$0xff]  ;;  %v2987_v47 = vmul.f32 -1.442695, %v102_v34  ;;  %v1372_v34 = vld [vmem:[%s5846_s1 + $0x78] sm:$0xff] }
  0x9a   :  { %v3374_v53 = vpop.eup %3373  ;;  %1861 = vperm.xlu0 %3091, %v3350_v29   ;;  %3393 = vrcp.f32 %v854_v48  ;;  %v856_v55 = vadd.f32 1.0, %v3372_v49  ;;  %v2983_v29 = vmul.f32 -1.442695, %v98_v16 }
  0x9b   :  { %v3376_v57 = vpop.eup %3375  ;;  %v1562_v58 = vpop.permute.xlu1 %1561  ;;  %3395 = vrcp.f32 %v853_v51  ;;  %v855_v59 = vadd.f32 1.0, %v3374_v53 }
  0x9c   :  { %v3378_v61 = vpop.eup %3377  ;;  %v2511_v62 = vmul.f32 %v1562_v58, %v1359_v50  ;;  %v1552_v63 = vpop.permute.xlu0 %1551  ;;  %1876 = vperm.xlu1 %3092, %v3352_v31   ;;  %3397 = vrcp.f32 %v856_v55  ;;  %v858_v0 = vadd.f32 1.0, %v3376_v57  ;;  %v2986_v50 = vmul.f32 -1.442695, %v101_v39  ;;  %v1366_v57 = vld [vmem:[%s5846_s1 + $0x48] sm:$0xff] }
  0x9d   :  { %v3380_v3 = vpop.eup %3379  ;;  %v2509_v4 = vmul.f32 %v1552_v63, %v1357_v54  ;;  %3399 = vrcp.f32 %v855_v59  ;;  %v857_v6 = vadd.f32 1.0, %v3378_v61  ;;  %v2989_v54 = vmul.f32 -1.442695, %v104_v44  ;;  %v1365_v59 = vld [vmem:[%s5846_s1 + $0x40] sm:$0xff]  ;;  %v1371_v44 = vld [vmem:[%s5846_s1 + $0x70] sm:$0xff] }
  0x9e   :  { %v3382_v9 = vpop.eup %3381  ;;  %2704 = vst.msk [vmem:[%s5847_s2 + $0x10] sm:$0xff] %vm2701_vm0, %v2511_v62  ;;  %1871 = vperm.xlu0 %3091, %v3380_v3   ;;  %3401 = vrcp.f32 %v858_v0 }
  0x9f   :  { %v3384_v13 = vpop.eup %3383  ;;  %2702 = vst.msk [vmem:[%s5847_s2] sm:$0xff] %vm2701_vm0, %v2509_v4  ;;  %v1567_v14 = vpop.permute.xlu1 %1566  ;;  %3403 = vrcp.f32 %v857_v6 }
  0xa0   :  { %v3386_v17 = vpop.eup %3385  ;;  %v2512_v18 = vmul.f32 %v1567_v14, %v1360_v5  ;;  %v1557_v19 = vpop.permute.xlu0 %1556  ;;  %1886 = vperm.xlu1 %3092, %v3382_v9   ;;  %3405 = vpow2.f32 %v2977_v1  ;;  %v1368_v5 = vld [vmem:[%s5846_s1 + $0x58] sm:$0xff] }
  0xa1   :  { %v3388_v22 = vpop.eup %3387  ;;  %v2510_v23 = vmul.f32 %v1557_v19, %v1358_v10  ;;  %3407 = vpow2.f32 %v2976_v7  ;;  %v1370_v19 = vld [vmem:[%s5846_s1 + $0x68] sm:$0xff] }
  0xa2   :  { %v3390_v27 = vpop.eup %3389  ;;  %2705 = vst.msk [vmem:[%s5847_s2 + $0x18] sm:$0xff] %vm2701_vm0, %v2512_v18  ;;  %1881 = vperm.xlu0 %3091, %v3384_v13   ;;  %3409 = vpow2.f32 %v2979_v11 }
  0xa3   :  { %v3392_v31 = vpop.eup %3391  ;;  %2703 = vst.msk [vmem:[%s5847_s2 + $0x8] sm:$0xff] %vm2701_vm0, %v2510_v23  ;;  %v1577_v32 = vpop.permute.xlu1 %1576  ;;  %3411 = vpow2.f32 %v2978_v15 }
  0xa4   :  { %v3394_v35 = vpop.eup %3393  ;;  %v2514_v36 = vmul.f32 %v1577_v32, %v1362_v24  ;;  %v1572_v37 = vpop.permute.xlu0 %1571  ;;  %1896 = vperm.xlu1 %3092, %v3386_v17   ;;  %3413 = vpow2.f32 %v2981_v20 }
  0xa5   :  { %v3396_v40 = vpop.eup %3395  ;;  %v2513_v41 = vmul.f32 %v1572_v37, %v1361_v28  ;;  %3415 = vpow2.f32 %v2980_v25  ;;  %v1369_v25 = vld [vmem:[%s5846_s1 + $0x60] sm:$0xff] }
  0xa6   :  { %v3398_v45 = vpop.eup %3397  ;;  %2707 = vst.msk [vmem:[%s5847_s2 + $0x28] sm:$0xff] %vm2701_vm0, %v2514_v36  ;;  %1891 = vperm.xlu0 %3091, %v3388_v22   ;;  %3417 = vpow2.f32 %v2983_v29  ;;  %v105_v36 = vld [vmem:[%s5845_s0 + $0x2e0] sm:$0xff] }
  0xa7   :  { %v3400_v48 = vpop.eup %3399  ;;  %2706 = vst.msk [vmem:[%s5847_s2 + $0x20] sm:$0xff] %vm2701_vm0, %v2513_v41  ;;  %v1587_v49 = vpop.permute.xlu1 %1586  ;;  %3419 = vpow2.f32 %v2982_v33  ;;  %v108_v41 = vld [vmem:[%s5845_s0 + $0x2f8] sm:$0xff] }
  0xa8   :  { %v4198_v51 = vpop.eup %3401  ;;  %v2516_v52 = vmul.f32 %v1587_v49, %v1364_v42  ;;  %v1582_v53 = vpop.permute.xlu0 %1581  ;;  %1906 = vperm.xlu1 %3092, %v3390_v27   ;;  %3421 = vpow2.f32 %v2985_v38  ;;  %v103_v27 = vld [vmem:[%s5845_s0 + $0x2d0] sm:$0xff] }
  0xa9   :  { %v4200_v55 = vpop.eup %3403  ;;  %v2515_v56 = vmul.f32 %v1582_v53, %v1363_v46  ;;  %3423 = vpow2.f32 %v2984_v43 }
  0xaa   :  { %v3406_v58 = vpop.eup %3405  ;;  %2709 = vst.msk [vmem:[%s5847_s2 + $0x38] sm:$0xff] %vm2701_vm0, %v2516_v52  ;;  %1901 = vperm.xlu0 %3091, %v3392_v31   ;;  %3425 = vpow2.f32 %v2987_v47  ;;  %v106_v31 = vld [vmem:[%s5845_s0 + $0x2e8] sm:$0xff]  ;;  %v107_v47 = vld [vmem:[%s5845_s0 + $0x2f0] sm:$0xff] }
  0xab   :  { %v3408_v60 = vpop.eup %3407  ;;  %2708 = vst.msk [vmem:[%s5847_s2 + $0x30] sm:$0xff] %vm2701_vm0, %v2515_v56  ;;  %v1597_v61 = vpop.permute.xlu1 %1596  ;;  %v860_v62 = vadd.f32 1.0, %v3406_v58  ;;  %3427 = vpow2.f32 %v2986_v50  ;;  %v2991_v46 = vmul.f32 -1.442695, %v106_v31  ;;  %v2990_v50 = vmul.f32 -1.442695, %v105_v36 }
  0xac   :  { %v3410_v63 = vpop.eup %3409  ;;  %v2518_v0 = vmul.f32 %v1597_v61, %v1366_v57  ;;  %v1592_v1 = vpop.permute.xlu0 %1591  ;;  %1916 = vperm.xlu1 %3092, %v3394_v35   ;;  %v859_v2 = vadd.f32 1.0, %v3408_v60  ;;  %3429 = vpow2.f32 %v2989_v54  ;;  %v1374_v54 = vld [vmem:[%s5846_s1 + $0x88] sm:$0xff]  ;;  %v109_v56 = vld [vmem:[%s5845_s0 + $0x300] sm:$0xff]  ;;  %v112_v60 = vld [vmem:[%s5845_s0 + $0x318] sm:$0xff] }
  0xad   :  { %v3412_v3 = vpop.eup %3411  ;;  %v2517_v4 = vmul.f32 %v1592_v1, %v1365_v59  ;;  %3431 = vrcp.f32 %v860_v62  ;;  %v862_v6 = vadd.f32 1.0, %v3410_v63  ;;  %v2992_v59 = vmul.f32 -1.442695, %v107_v47  ;;  %v1373_v63 = vld [vmem:[%s5846_s1 + $0x80] sm:$0xff]  ;;  %v111_v1 = vld [vmem:[%s5845_s0 + $0x310] sm:$0xff] }
  0xae   :  { %v3414_v7 = vpop.eup %3413  ;;  %2711 = vst.msk [vmem:[%s5847_s2 + $0x48] sm:$0xff] %vm2701_vm0, %v2518_v0  ;;  %1911 = vperm.xlu0 %3091, %v3396_v40   ;;  %3433 = vrcp.f32 %v859_v2  ;;  %v861_v9 = vadd.f32 1.0, %v3412_v3  ;;  %v2988_v40 = vmul.f32 -1.442695, %v103_v27 }
  0xaf   :  { %v3416_v10 = vpop.eup %3415  ;;  %2710 = vst.msk [vmem:[%s5847_s2 + $0x40] sm:$0xff] %vm2701_vm0, %v2517_v4  ;;  %v1607_v11 = vpop.permute.xlu1 %1606  ;;  %3435 = vrcp.f32 %v862_v6  ;;  %v864_v12 = vadd.f32 1.0, %v3414_v7  ;;  %v2994_v4 = vmul.f32 -1.442695, %v109_v56 }
  0xb0   :  { %v3418_v13 = vpop.eup %3417  ;;  %v2520_v14 = vmul.f32 %v1607_v11, %v1368_v5  ;;  %v1602_v15 = vpop.permute.xlu0 %1601  ;;  %1926 = vperm.xlu1 %3092, %v3398_v45   ;;  %3437 = vrcp.f32 %v861_v9  ;;  %v863_v16 = vadd.f32 1.0, %v3416_v10  ;;  %v114_v5 = vld [vmem:[%s5845_s0 + $0x328] sm:$0xff]  ;;  %v2997_v9 = vmul.f32 -1.442695, %v112_v60  ;;  %v113_v10 = vld [vmem:[%s5845_s0 + $0x320] sm:$0xff] }
  0xb1   :  { %v3420_v17 = vpop.eup %3419  ;;  %v2519_v18 = vmul.f32 %v1602_v15, %v1367_v8  ;;  %3439 = vrcp.f32 %v864_v12  ;;  %v866_v20 = vadd.f32 1.0, %v3418_v13  ;;  %v1376_v8 = vld [vmem:[%s5846_s1 + $0x98] sm:$0xff]  ;;  %v2996_v13 = vmul.f32 -1.442695, %v111_v1 }
  0xb2   :  { %v3422_v21 = vpop.eup %3421  ;;  %2713 = vst.msk [vmem:[%s5847_s2 + $0x58] sm:$0xff] %vm2701_vm0, %v2520_v14  ;;  %1921 = vperm.xlu0 %3091, %v3400_v48   ;;  %3441 = vrcp.f32 %v863_v16  ;;  %v865_v22 = vadd.f32 1.0, %v3420_v17  ;;  %v116_v14 = vld [vmem:[%s5845_s0 + $0x338] sm:$0xff]  ;;  %v1375_v17 = vld [vmem:[%s5846_s1 + $0x90] sm:$0xff] }
  0xb3   :  { %v3424_v23 = vpop.eup %3423  ;;  %2712 = vst.msk [vmem:[%s5847_s2 + $0x50] sm:$0xff] %vm2701_vm0, %v2519_v18  ;;  %v1617_v24 = vpop.permute.xlu1 %1616  ;;  %3443 = vrcp.f32 %v866_v20  ;;  %v868_v26 = vadd.f32 1.0, %v3422_v21  ;;  %v2999_v18 = vmul.f32 -1.442695, %v114_v5  ;;  %v1384_v1 = vld [vmem:[%s5846_s1 + $0xd8] sm:$0xff] }
  0xb4   :  { %v3426_v28 = vpop.eup %3425  ;;  %v2522_v29 = vmul.f32 %v1617_v24, %v1370_v19  ;;  %1936 = vperm.xlu1 %3092, %v4198_v51   ;;  %3445 = vrcp.f32 %v865_v22  ;;  %v867_v30 = vadd.f32 1.0, %v3424_v23  ;;  %v110_v51 = vld [vmem:[%s5845_s0 + $0x308] sm:$0xff]  ;;  %v115_v19 = vld [vmem:[%s5845_s0 + $0x330] sm:$0xff]  ;;  %v2998_v22 = vmul.f32 -1.442695, %v113_v10 }
  0xb5   :  { %v3428_v32 = vpop.eup %3427  ;;  %v1612_v33 = vpop.permute.xlu0 %1611  ;;  %3447 = vrcp.f32 %v868_v26  ;;  %v870_v35 = vadd.f32 1.0, %v3426_v28  ;;  %v2995_v0 = vmul.f32 -1.442695, %v110_v51  ;;  %v3001_v26 = vmul.f32 -1.442695, %v116_v14  ;;  %v1382_v51 = vld [vmem:[%s5846_s1 + $0xc8] sm:$0xff] }
  0xb6   :  { %v3430_v37 = vpop.eup %3429  ;;  %2715 = vst.msk [vmem:[%s5847_s2 + $0x68] sm:$0xff] %vm2701_vm0, %v2522_v29  ;;  %v2521_v38 = vmul.f32 %v1612_v33, %v1369_v25  ;;  %1931 = vperm.xlu0 %3091, %v4200_v55   ;;  %3449 = vrcp.f32 %v867_v30  ;;  %v869_v39 = vadd.f32 1.0, %v3428_v32  ;;  %v2993_v55 = vmul.f32 -1.442695, %v108_v41  ;;  %v1378_v25 = vld [vmem:[%s5846_s1 + $0xa8] sm:$0xff]  ;;  %v1377_v32 = vld [vmem:[%s5846_s1 + $0xa0] sm:$0xff] }
  0xb7   :  { %v3432_v42 = vpop.eup %3431  ;;  %v1627_v43 = vpop.permute.xlu1 %1626  ;;  %3451 = vrcp.f32 %v870_v35  ;;  %v872_v45 = vadd.f32 1.0, %v3430_v37  ;;  %v3000_v29 = vmul.f32 -1.442695, %v115_v19  ;;  %v1380_v37 = vld [vmem:[%s5846_s1 + $0xb8] sm:$0xff]  ;;  %v1383_v10 = vld [vmem:[%s5846_s1 + $0xd0] sm:$0xff] }
  0xb8   :  { %v3434_v48 = vpop.eup %3433  ;;  %2714 = vst.msk [vmem:[%s5847_s2 + $0x60] sm:$0xff] %vm2701_vm0, %v2521_v38  ;;  %v2524_v49 = vmul.f32 %v1627_v43, %v1372_v34  ;;  %1946 = vperm.xlu1 %3092, %v3432_v42   ;;  %3453 = vrcp.f32 %v869_v39 }
  0xb9   :  { %v3436_v52 = vpop.eup %3435  ;;  %v1622_v53 = vpop.permute.xlu0 %1621  ;;  %3455 = vrcp.f32 %v872_v45 }
  0xba   :  { %v3438_v57 = vpop.eup %3437  ;;  %2717 = vst.msk [vmem:[%s5847_s2 + $0x78] sm:$0xff] %vm2701_vm0, %v2524_v49  ;;  %v2523_v58 = vmul.f32 %v1622_v53, %v1371_v44  ;;  %1941 = vperm.xlu0 %3091, %v3434_v48   ;;  %3457 = vpow2.f32 %v2988_v40  ;;  %v1379_v44 = vld [vmem:[%s5846_s1 + $0xb0] sm:$0xff] }
  0xbb   :  { %v3440_v61 = vpop.eup %3439  ;;  %v1637_v62 = vpop.permute.xlu1 %1636  ;;  %3459 = vpow2.f32 %v2991_v46 }
  0xbc   :  { %v3442_v2 = vpop.eup %3441  ;;  %2716 = vst.msk [vmem:[%s5847_s2 + $0x70] sm:$0xff] %vm2701_vm0, %v2523_v58  ;;  %v2526_v3 = vmul.f32 %v1637_v62, %v1374_v54  ;;  %1956 = vperm.xlu1 %3092, %v3436_v52   ;;  %3461 = vpow2.f32 %v2990_v50  ;;  %v1381_v58 = vld [vmem:[%s5846_s1 + $0xc0] sm:$0xff] }
  0xbd   :  { %v3444_v6 = vpop.eup %3443  ;;  %v1632_v7 = vpop.permute.xlu0 %1631  ;;  %3463 = vpow2.f32 %v2993_v55 }
  0xbe   :  { %v3446_v11 = vpop.eup %3445  ;;  %2719 = vst.msk [vmem:[%s5847_s2 + $0x88] sm:$0xff] %vm2701_vm0, %v2526_v3  ;;  %v2525_v12 = vmul.f32 %v1632_v7, %v1373_v63  ;;  %1951 = vperm.xlu0 %3091, %v3438_v57   ;;  %3465 = vpow2.f32 %v2992_v59  ;;  %v118_v3 = vld [vmem:[%s5845_s0 + $0x348] sm:$0xff]  ;;  %v117_v7 = vld [vmem:[%s5845_s0 + $0x340] sm:$0xff] }
  0xbf   :  { %v3448_v15 = vpop.eup %3447  ;;  %v1647_v16 = vpop.permute.xlu1 %1646  ;;  %3467 = vpow2.f32 %v2995_v0 }
  0xc0   :  { %v3450_v20 = vpop.eup %3449  ;;  %2718 = vst.msk [vmem:[%s5847_s2 + $0x80] sm:$0xff] %vm2701_vm0, %v2525_v12  ;;  %v2528_v21 = vmul.f32 %v1647_v16, %v1376_v8  ;;  %1966 = vperm.xlu1 %3092, %v3440_v61   ;;  %3469 = vpow2.f32 %v2994_v4  ;;  %v120_v12 = vld [vmem:[%s5845_s0 + $0x358] sm:$0xff]  ;;  %v3003_v16 = vmul.f32 -1.442695, %v118_v3 }
  0xc1   :  { %v3452_v23 = vpop.eup %3451  ;;  %v1642_v24 = vpop.permute.xlu0 %1641  ;;  %3471 = vpow2.f32 %v2997_v9 }
  0xc2   :  { %v4330_v27 = vpop.eup %3453  ;;  %2721 = vst.msk [vmem:[%s5847_s2 + $0x98] sm:$0xff] %vm2701_vm0, %v2528_v21  ;;  %v2527_v28 = vmul.f32 %v1642_v24, %v1375_v17  ;;  %1961 = vperm.xlu0 %3091, %v3442_v2   ;;  %3473 = vpow2.f32 %v2996_v13  ;;  %v119_v17 = vld [vmem:[%s5845_s0 + $0x350] sm:$0xff] }
  0xc3   :  { %v4336_v30 = vpop.eup %3455  ;;  %v1657_v31 = vpop.permute.xlu1 %1656  ;;  %3475 = vpow2.f32 %v2999_v18 }
  0xc4   :  { %v3458_v33 = vpop.eup %3457  ;;  %2720 = vst.msk [vmem:[%s5847_s2 + $0x90] sm:$0xff] %vm2701_vm0, %v2527_v28  ;;  %v2530_v34 = vmul.f32 %v1657_v31, %v1378_v25  ;;  %1976 = vperm.xlu1 %3092, %v3444_v6   ;;  %3477 = vpow2.f32 %v2998_v22  ;;  %v3002_v22 = vmul.f32 -1.442695, %v117_v7  ;;  %v3004_v31 = vmul.f32 -1.442695, %v119_v17 }
  0xc5   :  { %v3460_v35 = vpop.eup %3459  ;;  %v1652_v36 = vpop.permute.xlu0 %1651  ;;  %v871_v38 = vadd.f32 1.0, %v3458_v33  ;;  %3479 = vpow2.f32 %v3001_v26  ;;  %v3005_v26 = vmul.f32 -1.442695, %v120_v12 }
  0xc6   :  { %v3462_v39 = vpop.eup %3461  ;;  %2723 = vst.msk [vmem:[%s5847_s2 + $0xa8] sm:$0xff] %vm2701_vm0, %v2530_v34  ;;  %v2529_v40 = vmul.f32 %v1652_v36, %v1377_v32  ;;  %1971 = vperm.xlu0 %3091, %v3446_v11   ;;  %v874_v41 = vadd.f32 1.0, %v3460_v35  ;;  %3481 = vpow2.f32 %v3000_v29  ;;  %v124_v32 = vld [vmem:[%s5845_s0 + $0x378] sm:$0xff]  ;;  %v123_v36 = vld [vmem:[%s5845_s0 + $0x370] sm:$0xff] }
  0xc7   :  { %v3464_v42 = vpop.eup %3463  ;;  %v1667_v43 = vpop.permute.xlu1 %1666  ;;  %3483 = vrcp.f32 %v871_v38  ;;  %v873_v45 = vadd.f32 1.0, %v3462_v39  ;;  %v1388_v39 = vld [vmem:[%s5846_s1 + $0xf8] sm:$0xff] }
  0xc8   :  { %v3466_v46 = vpop.eup %3465  ;;  %2722 = vst.msk [vmem:[%s5847_s2 + $0xa0] sm:$0xff] %vm2701_vm0, %v2529_v40  ;;  %v2532_v47 = vmul.f32 %v1667_v43, %v1380_v37  ;;  %1986 = vperm.xlu1 %3092, %v3448_v15   ;;  %3485 = vrcp.f32 %v874_v41  ;;  %v876_v48 = vadd.f32 1.0, %v3464_v42  ;;  %v126_v41 = vld [vmem:[%s5845_s0 + $0x388] sm:$0xff] }
  0xc9   :  { %v3468_v49 = vpop.eup %3467  ;;  %v1662_v50 = vpop.permute.xlu0 %1661  ;;  %3487 = vrcp.f32 %v873_v45  ;;  %v875_v52 = vadd.f32 1.0, %v3466_v46  ;;  %v125_v45 = vld [vmem:[%s5845_s0 + $0x380] sm:$0xff] }
  0xca   :  { %v3470_v53 = vpop.eup %3469  ;;  %2725 = vst.msk [vmem:[%s5847_s2 + $0xb8] sm:$0xff] %vm2701_vm0, %v2532_v47  ;;  %v2531_v54 = vmul.f32 %v1662_v50, %v1379_v44  ;;  %1981 = vperm.xlu0 %3091, %v3450_v20   ;;  %3489 = vrcp.f32 %v876_v48  ;;  %v878_v55 = vadd.f32 1.0, %v3468_v49  ;;  %v1386_v20 = vld [vmem:[%s5846_s1 + $0xe8] sm:$0xff]  ;;  %v3009_v44 = vmul.f32 -1.442695, %v124_v32  ;;  %v1387_v48 = vld [vmem:[%s5846_s1 + $0xf0] sm:$0xff] }
  0xcb   :  { %v3472_v56 = vpop.eup %3471  ;;  %v1677_v57 = vpop.permute.xlu1 %1676  ;;  %3491 = vrcp.f32 %v875_v52  ;;  %v877_v59 = vadd.f32 1.0, %v3470_v53  ;;  %v3008_v49 = vmul.f32 -1.442695, %v123_v36  ;;  %v128_v50 = vld [vmem:[%s5845_s0 + $0x398] sm:$0xff]  ;;  %v3011_v53 = vmul.f32 -1.442695, %v126_v41 }
  0xcc   :  { %v3474_v60 = vpop.eup %3473  ;;  %2724 = vst.msk [vmem:[%s5847_s2 + $0xb0] sm:$0xff] %vm2701_vm0, %v2531_v54  ;;  %v2534_v61 = vmul.f32 %v1677_v57, %v1382_v51  ;;  %1996 = vperm.xlu1 %3092, %v3452_v23   ;;  %3493 = vrcp.f32 %v878_v55  ;;  %v880_v62 = vadd.f32 1.0, %v3472_v56  ;;  %v122_v23 = vld [vmem:[%s5845_s0 + $0x368] sm:$0xff]  ;;  %v127_v54 = vld [vmem:[%s5845_s0 + $0x390] sm:$0xff] }
  0xcd   :  { %v3476_v63 = vpop.eup %3475  ;;  %v1672_v0 = vpop.permute.xlu0 %1671  ;;  %3495 = vrcp.f32 %v877_v59  ;;  %v879_v2 = vadd.f32 1.0, %v3474_v60  ;;  %v3007_v35 = vmul.f32 -1.442695, %v122_v23  ;;  %v1390_v57 = vld [vmem:[%s5846_s1 + $0x108] sm:$0xff]  ;;  %v1395_v41 = vld [vmem:[%s5846_s1 + $0x130] sm:$0xff] }
  0xce   :  { %v3478_v4 = vpop.eup %3477  ;;  %2727 = vst.msk [vmem:[%s5847_s2 + $0xc8] sm:$0xff] %vm2701_vm0, %v2534_v61  ;;  %v2533_v5 = vmul.f32 %v1672_v0, %v1381_v58  ;;  %1991 = vperm.xlu0 %3091, %v4330_v27   ;;  %3497 = vrcp.f32 %v880_v62  ;;  %v882_v6 = vadd.f32 1.0, %v3476_v63  ;;  %v121_v27 = vld [vmem:[%s5845_s0 + $0x360] sm:$0xff]  ;;  %v3010_v58 = vmul.f32 -1.442695, %v125_v45  ;;  %v130_v59 = vld [vmem:[%s5845_s0 + $0x3a8] sm:$0xff] }
  0xcf   :  { %v3480_v8 = vpop.eup %3479  ;;  %v1687_v9 = vpop.permute.xlu1 %1686  ;;  %3499 = vrcp.f32 %v879_v2  ;;  %v881_v11 = vadd.f32 1.0, %v3478_v4  ;;  %v3006_v40 = vmul.f32 -1.442695, %v121_v27  ;;  %v3013_v62 = vmul.f32 -1.442695, %v128_v50  ;;  %v1393_v27 = vld [vmem:[%s5846_s1 + $0x120] sm:$0xff] }
  0xd0   :  { %v3482_v13 = vpop.eup %3481  ;;  %2726 = vst.msk [vmem:[%s5847_s2 + $0xc0] sm:$0xff] %vm2701_vm0, %v2533_v5  ;;  %v2536_v14 = vmul.f32 %v1687_v9, %v1384_v1  ;;  %2006 = vperm.xlu1 %3092, %v4336_v30   ;;  %3501 = vrcp.f32 %v882_v6  ;;  %v884_v15 = vadd.f32 1.0, %v3480_v8  ;;  %v1385_v30 = vld [vmem:[%s5846_s1 + $0xe0] sm:$0xff]  ;;  %v3012_v2 = vmul.f32 -1.442695, %v127_v54  ;;  %v1392_v8 = vld [vmem:[%s5846_s1 + $0x118] sm:$0xff] }
  0xd1   :  { %v3484_v18 = vpop.eup %3483  ;;  %v1682_v19 = vpop.permute.xlu0 %1681  ;;  %3503 = vrcp.f32 %v881_v11  ;;  %v883_v21 = vadd.f32 1.0, %v3482_v13  ;;  %v1389_v1 = vld [vmem:[%s5846_s1 + $0x100] sm:$0xff]  ;;  %v3015_v5 = vmul.f32 -1.442695, %v130_v59  ;;  %v1391_v13 = vld [vmem:[%s5846_s1 + $0x110] sm:$0xff]  ;;  %v1398_v50 = vld [vmem:[%s5846_s1 + $0x148] sm:$0xff] }
  0xd2   :  { %v3486_v24 = vpop.eup %3485  ;;  %2729 = vst.msk [vmem:[%s5847_s2 + $0xd8] sm:$0xff] %vm2701_vm0, %v2536_v14  ;;  %v2535_v25 = vmul.f32 %v1682_v19, %v1383_v10  ;;  %2001 = vperm.xlu0 %3091, %v3484_v18   ;;  %3505 = vrcp.f32 %v884_v15 }
  0xd3   :  { %v3488_v28 = vpop.eup %3487  ;;  %v1697_v29 = vpop.permute.xlu1 %1696  ;;  %3507 = vrcp.f32 %v883_v21 }
  0xd4   :  { %v3490_v33 = vpop.eup %3489  ;;  %2728 = vst.msk [vmem:[%s5847_s2 + $0xd0] sm:$0xff] %vm2701_vm0, %v2535_v25  ;;  %v2538_v34 = vmul.f32 %v1697_v29, %v1386_v20  ;;  %2016 = vperm.xlu1 %3092, %v3486_v24   ;;  %3509 = vpow2.f32 %v3003_v16  ;;  %v1394_v20 = vld [vmem:[%s5846_s1 + $0x128] sm:$0xff] }
  0xd5   :  { %v3492_v37 = vpop.eup %3491  ;;  %v1692_v38 = vpop.permute.xlu0 %1691  ;;  %3511 = vpow2.f32 %v3002_v22 }
  0xd6   :  { %v3494_v42 = vpop.eup %3493  ;;  %2731 = vst.msk [vmem:[%s5847_s2 + $0xe8] sm:$0xff] %vm2701_vm0, %v2538_v34  ;;  %v2537_v43 = vmul.f32 %v1692_v38, %v1385_v30  ;;  %2011 = vperm.xlu0 %3091, %v3488_v28   ;;  %3513 = vpow2.f32 %v3005_v26  ;;  %v1396_v34 = vld [vmem:[%s5846_s1 + $0x138] sm:$0xff] }
  0xd7   :  { %v3496_v46 = vpop.eup %3495  ;;  %v1707_v47 = vpop.permute.xlu1 %1706  ;;  %3515 = vpow2.f32 %v3004_v31 }
  0xd8   :  { %v3498_v51 = vpop.eup %3497  ;;  %2730 = vst.msk [vmem:[%s5847_s2 + $0xe0] sm:$0xff] %vm2701_vm0, %v2537_v43  ;;  %v2540_v52 = vmul.f32 %v1707_v47, %v1388_v39  ;;  %2026 = vperm.xlu1 %3092, %v3490_v33   ;;  %3517 = vpow2.f32 %v3007_v35  ;;  %v129_v43 = vld [vmem:[%s5845_s0 + $0x3a0] sm:$0xff]  ;;  %v132_v47 = vld [vmem:[%s5845_s0 + $0x3b8] sm:$0xff] }
  0xd9   :  { %v3500_v55 = vpop.eup %3499  ;;  %v1702_v56 = vpop.permute.xlu0 %1701  ;;  %3519 = vpow2.f32 %v3006_v40 }
  0xda   :  { %v3502_v60 = vpop.eup %3501  ;;  %2733 = vst.msk [vmem:[%s5847_s2 + $0xf8] sm:$0xff] %vm2701_vm0, %v2540_v52  ;;  %v2539_v61 = vmul.f32 %v1702_v56, %v1387_v48  ;;  %2021 = vperm.xlu0 %3091, %v3492_v37   ;;  %3521 = vpow2.f32 %v3009_v44  ;;  %v131_v52 = vld [vmem:[%s5845_s0 + $0x3b0] sm:$0xff]  ;;  %v3014_v56 = vmul.f32 -1.442695, %v129_v43 }
  0xdb   :  { %v3504_v63 = vpop.eup %3503  ;;  %v1717_v0 = vpop.permute.xlu1 %1716  ;;  %3523 = vpow2.f32 %v3008_v49 }
  0xdc   :  { %v4466_v3 = vpop.eup %3505  ;;  %2732 = vst.msk [vmem:[%s5847_s2 + $0xf0] sm:$0xff] %vm2701_vm0, %v2539_v61  ;;  %v2542_v4 = vmul.f32 %v1717_v0, %v1390_v57  ;;  %2036 = vperm.xlu1 %3092, %v3494_v42   ;;  %3525 = vpow2.f32 %v3011_v53  ;;  %v134_v57 = vld [vmem:[%s5845_s0 + $0x3c8] sm:$0xff] }
  0xdd   :  { %v4472_v6 = vpop.eup %3507  ;;  %v1712_v7 = vpop.permute.xlu0 %1711  ;;  %3527 = vpow2.f32 %v3010_v58 }
  0xde   :  { %v3510_v9 = vpop.eup %3509  ;;  %2735 = vst.msk [vmem:[%s5847_s2 + $0x108] sm:$0xff] %vm2701_vm0, %v2542_v4  ;;  %v2541_v10 = vmul.f32 %v1712_v7, %v1389_v1  ;;  %2031 = vperm.xlu0 %3091, %v3496_v46   ;;  %3529 = vpow2.f32 %v3013_v62  ;;  %v3017_v62 = vmul.f32 -1.442695, %v132_v47  ;;  %v3019_v7 = vmul.f32 -1.442695, %v134_v57 }
  0xdf   :  { %v3512_v11 = vpop.eup %3511  ;;  %v1727_v12 = vpop.permute.xlu1 %1726  ;;  %v886_v14 = vadd.f32 1.0, %v3510_v9  ;;  %3531 = vpow2.f32 %v3012_v2  ;;  %v3016_v2 = vmul.f32 -1.442695, %v131_v52 }
  0xe0   :  { %v3514_v15 = vpop.eup %3513  ;;  %2734 = vst.msk [vmem:[%s5847_s2 + $0x100] sm:$0xff] %vm2701_vm0, %v2541_v10  ;;  %v2544_v16 = vmul.f32 %v1727_v12, %v1392_v8  ;;  %2046 = vperm.xlu1 %3092, %v3498_v51   ;;  %v885_v17 = vadd.f32 1.0, %v3512_v11  ;;  %3533 = vpow2.f32 %v3015_v5  ;;  %v135_v8 = vld [vmem:[%s5845_s0 + $0x3d0] sm:$0xff]  ;;  %v138_v12 = vld [vmem:[%s5845_s0 + $0x3e8] sm:$0xff] }
  0xe1   :  { %v3516_v18 = vpop.eup %3515  ;;  %v1722_v19 = vpop.permute.xlu0 %1721  ;;  %3535 = vrcp.f32 %v886_v14  ;;  %v888_v21 = vadd.f32 1.0, %v3514_v15  ;;  %v1399_v15 = vld [vmem:[%s5846_s1 + $0x150] sm:$0xff] }
  0xe2   :  { %v3518_v22 = vpop.eup %3517  ;;  %2737 = vst.msk [vmem:[%s5847_s2 + $0x118] sm:$0xff] %vm2701_vm0, %v2544_v16  ;;  %v2543_v23 = vmul.f32 %v1722_v19, %v1391_v13  ;;  %2041 = vperm.xlu0 %3091, %v3500_v55   ;;  %3537 = vrcp.f32 %v885_v17  ;;  %v887_v24 = vadd.f32 1.0, %v3516_v18  ;;  %v137_v17 = vld [vmem:[%s5845_s0 + $0x3e0] sm:$0xff] }
  0xe3   :  { %v3520_v25 = vpop.eup %3519  ;;  %v1737_v26 = vpop.permute.xlu1 %1736  ;;  %3539 = vrcp.f32 %v888_v21  ;;  %v890_v28 = vadd.f32 1.0, %v3518_v22  ;;  %v140_v21 = vld [vmem:[%s5845_s0 + $0x3f8] sm:$0xff] }
  0xe4   :  { %v3522_v29 = vpop.eup %3521  ;;  %2736 = vst.msk [vmem:[%s5847_s2 + $0x110] sm:$0xff] %vm2701_vm0, %v2543_v23  ;;  %v2546_v30 = vmul.f32 %v1737_v26, %v1394_v20  ;;  %2056 = vperm.xlu1 %3092, %v3502_v60   ;;  %3541 = vrcp.f32 %v887_v24  ;;  %v889_v31 = vadd.f32 1.0, %v3520_v25  ;;  %v1397_v60 = vld [vmem:[%s5846_s1 + $0x140] sm:$0xff]  ;;  %v3020_v20 = vmul.f32 -1.442695, %v135_v8  ;;  %v1402_v24 = vld [vmem:[%s5846_s1 + $0x168] sm:$0xff] }
  0xe5   :  { %v3524_v32 = vpop.eup %3523  ;;  %v1732_v33 = vpop.permute.xlu0 %1731  ;;  %3543 = vrcp.f32 %v890_v28  ;;  %v892_v35 = vadd.f32 1.0, %v3522_v29  ;;  %v3023_v25 = vmul.f32 -1.442695, %v138_v12  ;;  %v139_v26 = vld [vmem:[%s5845_s0 + $0x3f0] sm:$0xff]  ;;  %v3022_v29 = vmul.f32 -1.442695, %v137_v17 }
  0xe6   :  { %v3526_v36 = vpop.eup %3525  ;;  %2739 = vst.msk [vmem:[%s5847_s2 + $0x128] sm:$0xff] %vm2701_vm0, %v2546_v30  ;;  %v2545_v37 = vmul.f32 %v1732_v33, %v1393_v27  ;;  %2051 = vperm.xlu0 %3091, %v3504_v63   ;;  %3545 = vrcp.f32 %v889_v31  ;;  %v891_v38 = vadd.f32 1.0, %v3524_v32  ;;  %v133_v63 = vld [vmem:[%s5845_s0 + $0x3c0] sm:$0xff]  ;;  %v142_v30 = vld [vmem:[%s5845_s0 + $0x408] sm:$0xff] }
  0xe7   :  { %v3528_v39 = vpop.eup %3527  ;;  %v1747_v40 = vpop.permute.xlu1 %1746  ;;  %3547 = vrcp.f32 %v892_v35  ;;  %v894_v42 = vadd.f32 1.0, %v3526_v36  ;;  %v3018_v11 = vmul.f32 -1.442695, %v133_v63  ;;  %v1401_v33 = vld [vmem:[%s5846_s1 + $0x160] sm:$0xff]  ;;  %v1410_v17 = vld [vmem:[%s5846_s1 + $0x1a8] sm:$0xff] }
  0xe8   :  { %v3530_v44 = vpop.eup %3529  ;;  %2738 = vst.msk [vmem:[%s5847_s2 + $0x120] sm:$0xff] %vm2701_vm0, %v2545_v37  ;;  %v2548_v45 = vmul.f32 %v1747_v40, %v1396_v34  ;;  %2066 = vperm.xlu1 %3092, %v4466_v3   ;;  %3549 = vrcp.f32 %v891_v38  ;;  %v893_v46 = vadd.f32 1.0, %v3528_v39  ;;  %v136_v3 = vld [vmem:[%s5845_s0 + $0x3d8] sm:$0xff]  ;;  %v3025_v34 = vmul.f32 -1.442695, %v140_v21  ;;  %v141_v35 = vld [vmem:[%s5845_s0 + $0x400] sm:$0xff] }
  0xe9   :  { %v3532_v48 = vpop.eup %3531  ;;  %v1742_v49 = vpop.permute.xlu0 %1741  ;;  %3551 = vrcp.f32 %v894_v42  ;;  %v896_v51 = vadd.f32 1.0, %v3530_v44  ;;  %v3021_v16 = vmul.f32 -1.442695, %v136_v3  ;;  %v3024_v38 = vmul.f32 -1.442695, %v139_v26  ;;  %v1408_v3 = vld [vmem:[%s5846_s1 + $0x198] sm:$0xff] }
  0xea   :  { %v3534_v53 = vpop.eup %3533  ;;  %2741 = vst.msk [vmem:[%s5847_s2 + $0x138] sm:$0xff] %vm2701_vm0, %v2548_v45  ;;  %v2547_v54 = vmul.f32 %v1742_v49, %v1395_v41  ;;  %2061 = vperm.xlu0 %3091, %v4472_v6   ;;  %3553 = vrcp.f32 %v893_v46  ;;  %v895_v55 = vadd.f32 1.0, %v3532_v48  ;;  %v1400_v6 = vld [vmem:[%s5846_s1 + $0x158] sm:$0xff]  ;;  %v3027_v42 = vmul.f32 -1.442695, %v142_v30  ;;  %v1403_v48 = vld [vmem:[%s5846_s1 + $0x170] sm:$0xff] }
  0xeb   :  { %v3536_v58 = vpop.eup %3535  ;;  %v1757_v59 = vpop.permute.xlu1 %1756  ;;  %3555 = vrcp.f32 %v896_v51  ;;  %v898_v61 = vadd.f32 1.0, %v3534_v53  ;;  %v1404_v41 = vld [vmem:[%s5846_s1 + $0x178] sm:$0xff]  ;;  %v3026_v45 = vmul.f32 -1.442695, %v141_v35  ;;  %v1406_v53 = vld [vmem:[%s5846_s1 + $0x188] sm:$0xff]  ;;  %v1409_v26 = vld [vmem:[%s5846_s1 + $0x1a0] sm:$0xff] }
  0xec   :  { %v3538_v0 = vpop.eup %3537  ;;  %2740 = vst.msk [vmem:[%s5847_s2 + $0x130] sm:$0xff] %vm2701_vm0, %v2547_v54  ;;  %v2550_v1 = vmul.f32 %v1757_v59, %v1398_v50  ;;  %2076 = vperm.xlu1 %3092, %v3536_v58   ;;  %3557 = vrcp.f32 %v895_v55 }
  0xed   :  { %v3540_v4 = vpop.eup %3539  ;;  %v1752_v5 = vpop.permute.xlu0 %1751  ;;  %3559 = vrcp.f32 %v898_v61 }
  0xee   :  { %v3542_v9 = vpop.eup %3541  ;;  %2743 = vst.msk [vmem:[%s5847_s2 + $0x148] sm:$0xff] %vm2701_vm0, %v2550_v1  ;;  %v2549_v10 = vmul.f32 %v1752_v5, %v1397_v60  ;;  %2071 = vperm.xlu0 %3091, %v3538_v0   ;;  %3561 = vpow2.f32 %v3014_v56  ;;  %v1405_v60 = vld [vmem:[%s5846_s1 + $0x180] sm:$0xff] }
  0xef   :  { %v3544_v13 = vpop.eup %3543  ;;  %v1767_v14 = vpop.permute.xlu1 %1766  ;;  %3563 = vpow2.f32 %v3017_v62 }
  0xf0   :  { %v3546_v18 = vpop.eup %3545  ;;  %2742 = vst.msk [vmem:[%s5847_s2 + $0x140] sm:$0xff] %vm2701_vm0, %v2549_v10  ;;  %v2552_v19 = vmul.f32 %v1767_v14, %v1400_v6  ;;  %2086 = vperm.xlu1 %3092, %v3540_v4   ;;  %3565 = vpow2.f32 %v3016_v2  ;;  %v1407_v10 = vld [vmem:[%s5846_s1 + $0x190] sm:$0xff] }
  0xf1   :  { %v3548_v22 = vpop.eup %3547  ;;  %v1762_v23 = vpop.permute.xlu0 %1761  ;;  %3567 = vpow2.f32 %v3019_v7 }
  0xf2   :  { %v3550_v27 = vpop.eup %3549  ;;  %2745 = vst.msk [vmem:[%s5847_s2 + $0x158] sm:$0xff] %vm2701_vm0, %v2552_v19  ;;  %v2551_v28 = vmul.f32 %v1762_v23, %v1399_v15  ;;  %2081 = vperm.xlu0 %3091, %v3542_v9   ;;  %3569 = vpow2.f32 %v3018_v11  ;;  %v144_v19 = vld [vmem:[%s5845_s0 + $0x418] sm:$0xff]  ;;  %v143_v23 = vld [vmem:[%s5845_s0 + $0x410] sm:$0xff] }
  0xf3   :  { %v3552_v31 = vpop.eup %3551  ;;  %v1777_v32 = vpop.permute.xlu1 %1776  ;;  %3571 = vpow2.f32 %v3021_v16 }
  0xf4   :  { %v3554_v36 = vpop.eup %3553  ;;  %2744 = vst.msk [vmem:[%s5847_s2 + $0x150] sm:$0xff] %vm2701_vm0, %v2551_v28  ;;  %v2554_v37 = vmul.f32 %v1777_v32, %v1402_v24  ;;  %2096 = vperm.xlu1 %3092, %v3544_v13   ;;  %3573 = vpow2.f32 %v3020_v20  ;;  %v146_v28 = vld [vmem:[%s5845_s0 + $0x428] sm:$0xff]  ;;  %v3029_v32 = vmul.f32 -1.442695, %v144_v19 }
  0xf5   :  { %v3556_v39 = vpop.eup %3555  ;;  %v1772_v40 = vpop.permute.xlu0 %1771  ;;  %3575 = vpow2.f32 %v3023_v25 }
  0xf6   :  { %v4602_v43 = vpop.eup %3557  ;;  %2747 = vst.msk [vmem:[%s5847_s2 + $0x168] sm:$0xff] %vm2701_vm0, %v2554_v37  ;;  %v2553_v44 = vmul.f32 %v1772_v40, %v1401_v33  ;;  %2091 = vperm.xlu0 %3091, %v3546_v18   ;;  %3577 = vpow2.f32 %v3022_v29  ;;  %v145_v33 = vld [vmem:[%s5845_s0 + $0x420] sm:$0xff] }
  0xf7   :  { %v4608_v46 = vpop.eup %3559  ;;  %v1787_v47 = vpop.permute.xlu1 %1786  ;;  %3579 = vpow2.f32 %v3025_v34 }
  0xf8   :  { %v3562_v49 = vpop.eup %3561  ;;  %2746 = vst.msk [vmem:[%s5847_s2 + $0x160] sm:$0xff] %vm2701_vm0, %v2553_v44  ;;  %v2556_v50 = vmul.f32 %v1787_v47, %v1404_v41  ;;  %2106 = vperm.xlu1 %3092, %v3548_v22   ;;  %3581 = vpow2.f32 %v3024_v38  ;;  %v3028_v38 = vmul.f32 -1.442695, %v143_v23  ;;  %v3030_v47 = vmul.f32 -1.442695, %v145_v33 }
  0xf9   :  { %v3564_v51 = vpop.eup %3563  ;;  %v1782_v52 = vpop.permute.xlu0 %1781  ;;  %v897_v54 = vadd.f32 1.0, %v3562_v49  ;;  %3583 = vpow2.f32 %v3027_v42  ;;  %v3031_v42 = vmul.f32 -1.442695, %v146_v28 }
  0xfa   :  { %v3566_v55 = vpop.eup %3565  ;;  %2749 = vst.msk [vmem:[%s5847_s2 + $0x178] sm:$0xff] %vm2701_vm0, %v2556_v50  ;;  %v2555_v56 = vmul.f32 %v1782_v52, %v1403_v48  ;;  %2101 = vperm.xlu0 %3091, %v3550_v27   ;;  %v900_v57 = vadd.f32 1.0, %v3564_v51  ;;  %3585 = vpow2.f32 %v3026_v45  ;;  %v150_v48 = vld [vmem:[%s5845_s0 + $0x448] sm:$0xff]  ;;  %v149_v52 = vld [vmem:[%s5845_s0 + $0x440] sm:$0xff] }
  0xfb   :  { %v3568_v58 = vpop.eup %3567  ;;  %v1797_v59 = vpop.permute.xlu1 %1796  ;;  %3587 = vrcp.f32 %v897_v54  ;;  %v899_v61 = vadd.f32 1.0, %v3566_v55  ;;  %v1414_v55 = vld [vmem:[%s5846_s1 + $0x1c8] sm:$0xff] }
  0xfc   :  { %v3570_v62 = vpop.eup %3569  ;;  %2748 = vst.msk [vmem:[%s5847_s2 + $0x170] sm:$0xff] %vm2701_vm0, %v2555_v56  ;;  %v2558_v63 = vmul.f32 %v1797_v59, %v1406_v53  ;;  %2116 = vperm.xlu1 %3092, %v3552_v31   ;;  %3589 = vrcp.f32 %v900_v57  ;;  %v902_v0 = vadd.f32 1.0, %v3568_v58  ;;  %v152_v57 = vld [vmem:[%s5845_s0 + $0x458] sm:$0xff] }
  0xfd   :  { %v3572_v1 = vpop.eup %3571  ;;  %v1792_v2 = vpop.permute.xlu0 %1791  ;;  %3591 = vrcp.f32 %v899_v61  ;;  %v901_v4 = vadd.f32 1.0, %v3570_v62  ;;  %v151_v61 = vld [vmem:[%s5845_s0 + $0x450] sm:$0xff] }
  0xfe   :  { %v3574_v5 = vpop.eup %3573  ;;  %2751 = vst.msk [vmem:[%s5847_s2 + $0x188] sm:$0xff] %vm2701_vm0, %v2558_v63  ;;  %v2557_v6 = vmul.f32 %v1792_v2, %v1405_v60  ;;  %2111 = vperm.xlu0 %3091, %v3554_v36   ;;  %3593 = vrcp.f32 %v902_v0  ;;  %v904_v7 = vadd.f32 1.0, %v3572_v1  ;;  %v1412_v36 = vld [vmem:[%s5846_s1 + $0x1b8] sm:$0xff]  ;;  %v3035_v60 = vmul.f32 -1.442695, %v150_v48  ;;  %v1413_v0 = vld [vmem:[%s5846_s1 + $0x1c0] sm:$0xff] }
  0xff   :  { %v3576_v8 = vpop.eup %3575  ;;  %v1807_v9 = vpop.permute.xlu1 %1806  ;;  %3595 = vrcp.f32 %v901_v4  ;;  %v903_v11 = vadd.f32 1.0, %v3574_v5  ;;  %v3034_v1 = vmul.f32 -1.442695, %v149_v52  ;;  %v154_v2 = vld [vmem:[%s5845_s0 + $0x468] sm:$0xff]  ;;  %v3037_v5 = vmul.f32 -1.442695, %v152_v57 }
 0x100   :  { %v3578_v12 = vpop.eup %3577  ;;  %2750 = vst.msk [vmem:[%s5847_s2 + $0x180] sm:$0xff] %vm2701_vm0, %v2557_v6  ;;  %v2560_v13 = vmul.f32 %v1807_v9, %v1408_v3  ;;  %2126 = vperm.xlu1 %3092, %v3556_v39   ;;  %3597 = vrcp.f32 %v904_v7  ;;  %v906_v14 = vadd.f32 1.0, %v3576_v8  ;;  %v148_v39 = vld [vmem:[%s5845_s0 + $0x438] sm:$0xff]  ;;  %v153_v6 = vld [vmem:[%s5845_s0 + $0x460] sm:$0xff] }
 0x101   :  { %v3580_v15 = vpop.eup %3579  ;;  %v1802_v16 = vpop.permute.xlu0 %1801  ;;  %3599 = vrcp.f32 %v903_v11  ;;  %v905_v18 = vadd.f32 1.0, %v3578_v12  ;;  %v3033_v51 = vmul.f32 -1.442695, %v148_v39  ;;  %v1416_v9 = vld [vmem:[%s5846_s1 + $0x1d8] sm:$0xff]  ;;  %v1421_v57 = vld [vmem:[%s5846_s1 + $0x200] sm:$0xff] }
 0x102   :  { %v3582_v20 = vpop.eup %3581  ;;  %2753 = vst.msk [vmem:[%s5847_s2 + $0x198] sm:$0xff] %vm2701_vm0, %v2560_v13  ;;  %v2559_v21 = vmul.f32 %v1802_v16, %v1407_v10  ;;  %2121 = vperm.xlu0 %3091, %v4602_v43   ;;  %3601 = vrcp.f32 %v906_v14  ;;  %v908_v22 = vadd.f32 1.0, %v3580_v15  ;;  %v147_v43 = vld [vmem:[%s5845_s0 + $0x430] sm:$0xff]  ;;  %v3036_v10 = vmul.f32 -1.442695, %v151_v61  ;;  %v156_v11 = vld [vmem:[%s5845_s0 + $0x478] sm:$0xff] }
 0x103   :  { %v3584_v24 = vpop.eup %3583  ;;  %v1817_v25 = vpop.permute.xlu1 %1816  ;;  %3603 = vrcp.f32 %v905_v18  ;;  %v907_v27 = vadd.f32 1.0, %v3582_v20  ;;  %v3032_v56 = vmul.f32 -1.442695, %v147_v43  ;;  %v3039_v14 = vmul.f32 -1.442695, %v154_v2  ;;  %v1419_v43 = vld [vmem:[%s5846_s1 + $0x1f0] sm:$0xff] }
 0x104   :  { %v3586_v29 = vpop.eup %3585  ;;  %2752 = vst.msk [vmem:[%s5847_s2 + $0x190] sm:$0xff] %vm2701_vm0, %v2559_v21  ;;  %v2562_v30 = vmul.f32 %v1817_v25, %v1410_v17  ;;  %2136 = vperm.xlu1 %3092, %v4608_v46   ;;  %3605 = vrcp.f32 %v908_v22  ;;  %v910_v31 = vadd.f32 1.0, %v3584_v24  ;;  %v1411_v46 = vld [vmem:[%s5846_s1 + $0x1b0] sm:$0xff]  ;;  %v3038_v18 = vmul.f32 -1.442695, %v153_v6  ;;  %v1418_v24 = vld [vmem:[%s5846_s1 + $0x1e8] sm:$0xff] }
 0x105   :  { %v3588_v34 = vpop.eup %3587  ;;  %v1812_v35 = vpop.permute.xlu0 %1811  ;;  %3607 = vrcp.f32 %v907_v27  ;;  %v909_v37 = vadd.f32 1.0, %v3586_v29  ;;  %v1415_v17 = vld [vmem:[%s5846_s1 + $0x1d0] sm:$0xff]  ;;  %v3041_v21 = vmul.f32 -1.442695, %v156_v11  ;;  %v1417_v29 = vld [vmem:[%s5846_s1 + $0x1e0] sm:$0xff]  ;;  %v1424_v2 = vld [vmem:[%s5846_s1 + $0x218] sm:$0xff] }
 0x106   :  { %v3590_v40 = vpop.eup %3589  ;;  %2755 = vst.msk [vmem:[%s5847_s2 + $0x1a8] sm:$0xff] %vm2701_vm0, %v2562_v30  ;;  %v2561_v41 = vmul.f32 %v1812_v35, %v1409_v26  ;;  %2131 = vperm.xlu0 %3091, %v3588_v34   ;;  %3609 = vrcp.f32 %v910_v31 }
 0x107   :  { %v3592_v44 = vpop.eup %3591  ;;  %v1827_v45 = vpop.permute.xlu1 %1826  ;;  %3611 = vrcp.f32 %v909_v37 }
 0x108   :  { %v3594_v49 = vpop.eup %3593  ;;  %2754 = vst.msk [vmem:[%s5847_s2 + $0x1a0] sm:$0xff] %vm2701_vm0, %v2561_v41  ;;  %v2564_v50 = vmul.f32 %v1827_v45, %v1412_v36  ;;  %2146 = vperm.xlu1 %3092, %v3590_v40   ;;  %3613 = vpow2.f32 %v3029_v32  ;;  %v1420_v36 = vld [vmem:[%s5846_s1 + $0x1f8] sm:$0xff] }
 0x109   :  { %v3596_v53 = vpop.eup %3595  ;;  %v1822_v54 = vpop.permute.xlu0 %1821  ;;  %3615 = vpow2.f32 %v3028_v38 }
 0x10a   :  { %v3598_v58 = vpop.eup %3597  ;;  %2757 = vst.msk [vmem:[%s5847_s2 + $0x1b8] sm:$0xff] %vm2701_vm0, %v2564_v50  ;;  %v2563_v59 = vmul.f32 %v1822_v54, %v1411_v46  ;;  %2141 = vperm.xlu0 %3091, %v3592_v44   ;;  %3617 = vpow2.f32 %v3031_v42  ;;  %v1422_v50 = vld [vmem:[%s5846_s1 + $0x208] sm:$0xff] }
 0x10b   :  { %v3600_v62 = vpop.eup %3599  ;;  %v1837_v63 = vpop.permute.xlu1 %1836  ;;  %3619 = vpow2.f32 %v3030_v47 }
 0x10c   :  { %v3602_v3 = vpop.eup %3601  ;;  %2756 = vst.msk [vmem:[%s5847_s2 + $0x1b0] sm:$0xff] %vm2701_vm0, %v2563_v59  ;;  %v2566_v4 = vmul.f32 %v1837_v63, %v1414_v55  ;;  %2156 = vperm.xlu1 %3092, %v3594_v49   ;;  %3621 = vpow2.f32 %v3033_v51  ;;  %v155_v59 = vld [vmem:[%s5845_s0 + $0x470] sm:$0xff]  ;;  %v158_v63 = vld [vmem:[%s5845_s0 + $0x488] sm:$0xff] }
 0x10d   :  { %v3604_v7 = vpop.eup %3603  ;;  %v1832_v8 = vpop.permute.xlu0 %1831  ;;  %3623 = vpow2.f32 %v3032_v56 }
 0x10e   :  { %v3606_v12 = vpop.eup %3605  ;;  %2759 = vst.msk [vmem:[%s5847_s2 + $0x1c8] sm:$0xff] %vm2701_vm0, %v2566_v4  ;;  %v2565_v13 = vmul.f32 %v1832_v8, %v1413_v0  ;;  %2151 = vperm.xlu0 %3091, %v3596_v53   ;;  %3625 = vpow2.f32 %v3035_v60  ;;  %v157_v4 = vld [vmem:[%s5845_s0 + $0x480] sm:$0xff]  ;;  %v3040_v8 = vmul.f32 -1.442695, %v155_v59 }
 0x10f   :  { %v3608_v15 = vpop.eup %3607  ;;  %v1847_v16 = vpop.permute.xlu1 %1846  ;;  %3627 = vpow2.f32 %v3034_v1 }
 0x110   :  { %v4738_v19 = vpop.eup %3609  ;;  %2758 = vst.msk [vmem:[%s5847_s2 + $0x1c0] sm:$0xff] %vm2701_vm0, %v2565_v13  ;;  %v2568_v20 = vmul.f32 %v1847_v16, %v1416_v9  ;;  %2166 = vperm.xlu1 %3092, %v3598_v58   ;;  %3629 = vpow2.f32 %v3037_v5  ;;  %v160_v9 = vld [vmem:[%s5845_s0 + $0x498] sm:$0xff] }
 0x111   :  { %v4744_v22 = vpop.eup %3611  ;;  %v1842_v23 = vpop.permute.xlu0 %1841  ;;  %3631 = vpow2.f32 %v3036_v10 }
 0x112   :  { %v3614_v25 = vpop.eup %3613  ;;  %2761 = vst.msk [vmem:[%s5847_s2 + $0x1d8] sm:$0xff] %vm2701_vm0, %v2568_v20  ;;  %v2567_v26 = vmul.f32 %v1842_v23, %v1415_v17  ;;  %2161 = vperm.xlu0 %3091, %v3600_v62   ;;  %3633 = vpow2.f32 %v3039_v14  ;;  %v3043_v14 = vmul.f32 -1.442695, %v158_v63  ;;  %v3045_v23 = vmul.f32 -1.442695, %v160_v9 }
 0x113   :  { %v3616_v27 = vpop.eup %3615  ;;  %v1857_v28 = vpop.permute.xlu1 %1856  ;;  %v912_v30 = vadd.f32 1.0, %v3614_v25  ;;  %3635 = vpow2.f32 %v3038_v18  ;;  %v3042_v18 = vmul.f32 -1.442695, %v157_v4 }
 0x114   :  { %v3618_v31 = vpop.eup %3617  ;;  %2760 = vst.msk [vmem:[%s5847_s2 + $0x1d0] sm:$0xff] %vm2701_vm0, %v2567_v26  ;;  %v2570_v32 = vmul.f32 %v1857_v28, %v1418_v24  ;;  %2176 = vperm.xlu1 %3092, %v3602_v3   ;;  %v911_v33 = vadd.f32 1.0, %v3616_v27  ;;  %3637 = vpow2.f32 %v3041_v21  ;;  %v161_v24 = vld [vmem:[%s5845_s0 + $0x4a0] sm:$0xff]  ;;  %v164_v28 = vld [vmem:[%s5845_s0 + $0x4b8] sm:$0xff] }
 0x115   :  { %v3620_v34 = vpop.eup %3619  ;;  %v1852_v35 = vpop.permute.xlu0 %1851  ;;  %3639 = vrcp.f32 %v912_v30  ;;  %v914_v37 = vadd.f32 1.0, %v3618_v31  ;;  %v1425_v31 = vld [vmem:[%s5846_s1 + $0x220] sm:$0xff] }
 0x116   :  { %v3622_v38 = vpop.eup %3621  ;;  %2763 = vst.msk [vmem:[%s5847_s2 + $0x1e8] sm:$0xff] %vm2701_vm0, %v2570_v32  ;;  %v2569_v39 = vmul.f32 %v1852_v35, %v1417_v29  ;;  %2171 = vperm.xlu0 %3091, %v3604_v7   ;;  %3641 = vrcp.f32 %v911_v33  ;;  %v913_v40 = vadd.f32 1.0, %v3620_v34  ;;  %v163_v33 = vld [vmem:[%s5845_s0 + $0x4b0] sm:$0xff] }
 0x117   :  { %v3624_v41 = vpop.eup %3623  ;;  %v1867_v42 = vpop.permute.xlu1 %1866  ;;  %3643 = vrcp.f32 %v914_v37  ;;  %v916_v44 = vadd.f32 1.0, %v3622_v38  ;;  %v166_v37 = vld [vmem:[%s5845_s0 + $0x4c8] sm:$0xff] }
 0x118   :  { %v3626_v45 = vpop.eup %3625  ;;  %2762 = vst.msk [vmem:[%s5847_s2 + $0x1e0] sm:$0xff] %vm2701_vm0, %v2569_v39  ;;  %v2572_v46 = vmul.f32 %v1867_v42, %v1420_v36  ;;  %2186 = vperm.xlu1 %3092, %v3606_v12   ;;  %3645 = vrcp.f32 %v913_v40  ;;  %v915_v47 = vadd.f32 1.0, %v3624_v41  ;;  %v1423_v12 = vld [vmem:[%s5846_s1 + $0x210] sm:$0xff]  ;;  %v3046_v36 = vmul.f32 -1.442695, %v161_v24  ;;  %v1428_v40 = vld [vmem:[%s5846_s1 + $0x238] sm:$0xff] }
 0x119   :  { %v3628_v48 = vpop.eup %3627  ;;  %v1862_v49 = vpop.permute.xlu0 %1861  ;;  %3647 = vrcp.f32 %v916_v44  ;;  %v918_v51 = vadd.f32 1.0, %v3626_v45  ;;  %v3049_v41 = vmul.f32 -1.442695, %v164_v28  ;;  %v165_v42 = vld [vmem:[%s5845_s0 + $0x4c0] sm:$0xff]  ;;  %v3048_v45 = vmul.f32 -1.442695, %v163_v33 }
 0x11a   :  { %v3630_v52 = vpop.eup %3629  ;;  %2765 = vst.msk [vmem:[%s5847_s2 + $0x1f8] sm:$0xff] %vm2701_vm0, %v2572_v46  ;;  %v2571_v53 = vmul.f32 %v1862_v49, %v1419_v43  ;;  %2181 = vperm.xlu0 %3091, %v3608_v15   ;;  %3649 = vrcp.f32 %v915_v47  ;;  %v917_v54 = vadd.f32 1.0, %v3628_v48  ;;  %v159_v15 = vld [vmem:[%s5845_s0 + $0x490] sm:$0xff]  ;;  %v168_v46 = vld [vmem:[%s5845_s0 + $0x4d8] sm:$0xff] }
 0x11b   :  { %v3632_v55 = vpop.eup %3631  ;;  %v1877_v56 = vpop.permute.xlu1 %1876  ;;  %3651 = vrcp.f32 %v918_v51  ;;  %v920_v58 = vadd.f32 1.0, %v3630_v52  ;;  %v3044_v27 = vmul.f32 -1.442695, %v159_v15  ;;  %v1427_v49 = vld [vmem:[%s5846_s1 + $0x230] sm:$0xff]  ;;  %v1436_v33 = vld [vmem:[%s5846_s1 + $0x278] sm:$0xff] }
 0x11c   :  { %v3634_v60 = vpop.eup %3633  ;;  %2764 = vst.msk [vmem:[%s5847_s2 + $0x1f0] sm:$0xff] %vm2701_vm0, %v2571_v53  ;;  %v2574_v61 = vmul.f32 %v1877_v56, %v1422_v50  ;;  %2196 = vperm.xlu1 %3092, %v4738_v19   ;;  %3653 = vrcp.f32 %v917_v54  ;;  %v919_v62 = vadd.f32 1.0, %v3632_v55  ;;  %v162_v19 = vld [vmem:[%s5845_s0 + $0x4a8] sm:$0xff]  ;;  %v3051_v50 = vmul.f32 -1.442695, %v166_v37  ;;  %v167_v51 = vld [vmem:[%s5845_s0 + $0x4d0] sm:$0xff] }
 0x11d   :  { %v3636_v0 = vpop.eup %3635  ;;  %v1872_v1 = vpop.permute.xlu0 %1871  ;;  %3655 = vrcp.f32 %v920_v58  ;;  %v922_v3 = vadd.f32 1.0, %v3634_v60  ;;  %v3047_v32 = vmul.f32 -1.442695, %v162_v19  ;;  %v3050_v54 = vmul.f32 -1.442695, %v165_v42  ;;  %v1434_v19 = vld [vmem:[%s5846_s1 + $0x268] sm:$0xff] }
 0x11e   :  { %v3638_v5 = vpop.eup %3637  ;;  %2767 = vst.msk [vmem:[%s5847_s2 + $0x208] sm:$0xff] %vm2701_vm0, %v2574_v61  ;;  %v2573_v6 = vmul.f32 %v1872_v1, %v1421_v57  ;;  %2191 = vperm.xlu0 %3091, %v4744_v22   ;;  %3657 = vrcp.f32 %v919_v62  ;;  %v921_v7 = vadd.f32 1.0, %v3636_v0  ;;  %v1426_v22 = vld [vmem:[%s5846_s1 + $0x228] sm:$0xff]  ;;  %v3053_v58 = vmul.f32 -1.442695, %v168_v46  ;;  %v1429_v0 = vld [vmem:[%s5846_s1 + $0x240] sm:$0xff] }
 0x11f   :  { %v3640_v10 = vpop.eup %3639  ;;  %v1887_v11 = vpop.permute.xlu1 %1886  ;;  %3659 = vrcp.f32 %v922_v3  ;;  %v924_v13 = vadd.f32 1.0, %v3638_v5  ;;  %v1430_v57 = vld [vmem:[%s5846_s1 + $0x248] sm:$0xff]  ;;  %v3052_v61 = vmul.f32 -1.442695, %v167_v51  ;;  %v1432_v5 = vld [vmem:[%s5846_s1 + $0x258] sm:$0xff]  ;;  %v1435_v42 = vld [vmem:[%s5846_s1 + $0x270] sm:$0xff] }
 0x120   :  { %v3642_v16 = vpop.eup %3641  ;;  %2766 = vst.msk [vmem:[%s5847_s2 + $0x200] sm:$0xff] %vm2701_vm0, %v2573_v6  ;;  %v2576_v17 = vmul.f32 %v1887_v11, %v1424_v2  ;;  %2206 = vperm.xlu1 %3092, %v3640_v10   ;;  %3661 = vrcp.f32 %v921_v7 }
 0x121   :  { %v3644_v20 = vpop.eup %3643  ;;  %v1882_v21 = vpop.permute.xlu0 %1881  ;;  %3663 = vrcp.f32 %v924_v13 }
 0x122   :  { %v3646_v25 = vpop.eup %3645  ;;  %2769 = vst.msk [vmem:[%s5847_s2 + $0x218] sm:$0xff] %vm2701_vm0, %v2576_v17  ;;  %v2575_v26 = vmul.f32 %v1882_v21, %v1423_v12  ;;  %2201 = vperm.xlu0 %3091, %v3642_v16   ;;  %3665 = vpow2.f32 %v3040_v8  ;;  %v1431_v12 = vld [vmem:[%s5846_s1 + $0x250] sm:$0xff] }
 0x123   :  { %v3648_v29 = vpop.eup %3647  ;;  %v1897_v30 = vpop.permute.xlu1 %1896  ;;  %3667 = vpow2.f32 %v3043_v14 }
 0x124   :  { %v3650_v34 = vpop.eup %3649  ;;  %2768 = vst.msk [vmem:[%s5847_s2 + $0x210] sm:$0xff] %vm2701_vm0, %v2575_v26  ;;  %v2578_v35 = vmul.f32 %v1897_v30, %v1426_v22  ;;  %2216 = vperm.xlu1 %3092, %v3644_v20   ;;  %3669 = vpow2.f32 %v3042_v18  ;;  %v1433_v26 = vld [vmem:[%s5846_s1 + $0x260] sm:$0xff] }
 0x125   :  { %v3652_v38 = vpop.eup %3651  ;;  %v1892_v39 = vpop.permute.xlu0 %1891  ;;  %3671 = vpow2.f32 %v3045_v23 }
 0x126   :  { %v3654_v43 = vpop.eup %3653  ;;  %2771 = vst.msk [vmem:[%s5847_s2 + $0x228] sm:$0xff] %vm2701_vm0, %v2578_v35  ;;  %v2577_v44 = vmul.f32 %v1892_v39, %v1425_v31  ;;  %2211 = vperm.xlu0 %3091, %v3646_v25   ;;  %3673 = vpow2.f32 %v3044_v27  ;;  %v170_v35 = vld [vmem:[%s5845_s0 + $0x4e8] sm:$0xff]  ;;  %v169_v39 = vld [vmem:[%s5845_s0 + $0x4e0] sm:$0xff] }
 0x127   :  { %v3656_v47 = vpop.eup %3655  ;;  %v1907_v48 = vpop.permute.xlu1 %1906  ;;  %3675 = vpow2.f32 %v3047_v32 }
 0x128   :  { %v3658_v52 = vpop.eup %3657  ;;  %2770 = vst.msk [vmem:[%s5847_s2 + $0x220] sm:$0xff] %vm2701_vm0, %v2577_v44  ;;  %v2580_v53 = vmul.f32 %v1907_v48, %v1428_v40  ;;  %2226 = vperm.xlu1 %3092, %v3648_v29   ;;  %3677 = vpow2.f32 %v3046_v36  ;;  %v172_v44 = vld [vmem:[%s5845_s0 + $0x4f8] sm:$0xff]  ;;  %v3055_v48 = vmul.f32 -1.442695, %v170_v35 }
 0x129   :  { %v3660_v55 = vpop.eup %3659  ;;  %v1902_v56 = vpop.permute.xlu0 %1901  ;;  %3679 = vpow2.f32 %v3049_v41 }
 0x12a   :  { %v4874_v59 = vpop.eup %3661  ;;  %2773 = vst.msk [vmem:[%s5847_s2 + $0x238] sm:$0xff] %vm2701_vm0, %v2580_v53  ;;  %v2579_v60 = vmul.f32 %v1902_v56, %v1427_v49  ;;  %2221 = vperm.xlu0 %3091, %v3650_v34   ;;  %3681 = vpow2.f32 %v3048_v45  ;;  %v171_v49 = vld [vmem:[%s5845_s0 + $0x4f0] sm:$0xff] }
 0x12b   :  { %v4880_v62 = vpop.eup %3663  ;;  %v1917_v63 = vpop.permute.xlu1 %1916  ;;  %3683 = vpow2.f32 %v3051_v50 }
 0x12c   :  { %v3666_v1 = vpop.eup %3665  ;;  %2772 = vst.msk [vmem:[%s5847_s2 + $0x230] sm:$0xff] %vm2701_vm0, %v2579_v60  ;;  %v2582_v2 = vmul.f32 %v1917_v63, %v1430_v57  ;;  %2236 = vperm.xlu1 %3092, %v3652_v38   ;;  %3685 = vpow2.f32 %v3050_v54  ;;  %v3054_v54 = vmul.f32 -1.442695, %v169_v39  ;;  %v3056_v63 = vmul.f32 -1.442695, %v171_v49 }
 0x12d   :  { %v3668_v3 = vpop.eup %3667  ;;  %v1912_v4 = vpop.permute.xlu0 %1911  ;;  %v923_v6 = vadd.f32 1.0, %v3666_v1  ;;  %3687 = vpow2.f32 %v3053_v58  ;;  %v3057_v58 = vmul.f32 -1.442695, %v172_v44 }
 0x12e   :  { %v3670_v7 = vpop.eup %3669  ;;  %2775 = vst.msk [vmem:[%s5847_s2 + $0x248] sm:$0xff] %vm2701_vm0, %v2582_v2  ;;  %v2581_v8 = vmul.f32 %v1912_v4, %v1429_v0  ;;  %2231 = vperm.xlu0 %3091, %v3654_v43   ;;  %v926_v9 = vadd.f32 1.0, %v3668_v3  ;;  %3689 = vpow2.f32 %v3052_v61  ;;  %v176_v0 = vld [vmem:[%s5845_s0 + $0x518] sm:$0xff]  ;;  %v175_v4 = vld [vmem:[%s5845_s0 + $0x510] sm:$0xff] }
 0x12f   :  { %v3672_v10 = vpop.eup %3671  ;;  %v1927_v11 = vpop.permute.xlu1 %1926  ;;  %3691 = vrcp.f32 %v923_v6  ;;  %v925_v13 = vadd.f32 1.0, %v3670_v7  ;;  %v1440_v7 = vld [vmem:[%s5846_s1 + $0x298] sm:$0xff] }
 0x130   :  { %v3674_v14 = vpop.eup %3673  ;;  %2774 = vst.msk [vmem:[%s5847_s2 + $0x240] sm:$0xff] %vm2701_vm0, %v2581_v8  ;;  %v2584_v15 = vmul.f32 %v1927_v11, %v1432_v5  ;;  %2246 = vperm.xlu1 %3092, %v3656_v47   ;;  %3693 = vrcp.f32 %v926_v9  ;;  %v928_v16 = vadd.f32 1.0, %v3672_v10  ;;  %v178_v9 = vld [vmem:[%s5845_s0 + $0x528] sm:$0xff] }
 0x131   :  { %v3676_v17 = vpop.eup %3675  ;;  %v1922_v18 = vpop.permute.xlu0 %1921  ;;  %3695 = vrcp.f32 %v925_v13  ;;  %v927_v20 = vadd.f32 1.0, %v3674_v14  ;;  %v177_v13 = vld [vmem:[%s5845_s0 + $0x520] sm:$0xff] }
 0x132   :  { %v3678_v21 = vpop.eup %3677  ;;  %2777 = vst.msk [vmem:[%s5847_s2 + $0x258] sm:$0xff] %vm2701_vm0, %v2584_v15  ;;  %v2583_v22 = vmul.f32 %v1922_v18, %v1431_v12  ;;  %2241 = vperm.xlu0 %3091, %v3658_v52   ;;  %3697 = vrcp.f32 %v928_v16  ;;  %v930_v23 = vadd.f32 1.0, %v3676_v17  ;;  %v1438_v52 = vld [vmem:[%s5846_s1 + $0x288] sm:$0xff]  ;;  %v3061_v12 = vmul.f32 -1.442695, %v176_v0  ;;  %v1439_v16 = vld [vmem:[%s5846_s1 + $0x290] sm:$0xff] }
 0x133   :  { %v3680_v24 = vpop.eup %3679  ;;  %v1937_v25 = vpop.permute.xlu1 %1936  ;;  %3699 = vrcp.f32 %v927_v20  ;;  %v929_v27 = vadd.f32 1.0, %v3678_v21  ;;  %v3060_v17 = vmul.f32 -1.442695, %v175_v4  ;;  %v180_v18 = vld [vmem:[%s5845_s0 + $0x538] sm:$0xff]  ;;  %v3063_v21 = vmul.f32 -1.442695, %v178_v9 }
 0x134   :  { %v3682_v28 = vpop.eup %3681  ;;  %2776 = vst.msk [vmem:[%s5847_s2 + $0x250] sm:$0xff] %vm2701_vm0, %v2583_v22  ;;  %v2586_v29 = vmul.f32 %v1937_v25, %v1434_v19  ;;  %2256 = vperm.xlu1 %3092, %v3660_v55   ;;  %3701 = vrcp.f32 %v930_v23  ;;  %v932_v30 = vadd.f32 1.0, %v3680_v24  ;;  %v174_v55 = vld [vmem:[%s5845_s0 + $0x508] sm:$0xff]  ;;  %v179_v22 = vld [vmem:[%s5845_s0 + $0x530] sm:$0xff] }
 0x135   :  { %v3684_v31 = vpop.eup %3683  ;;  %v1932_v32 = vpop.permute.xlu0 %1931  ;;  %3703 = vrcp.f32 %v929_v27  ;;  %v931_v34 = vadd.f32 1.0, %v3682_v28  ;;  %v3059_v3 = vmul.f32 -1.442695, %v174_v55  ;;  %v1442_v25 = vld [vmem:[%s5846_s1 + $0x2a8] sm:$0xff]  ;;  %v1447_v9 = vld [vmem:[%s5846_s1 + $0x2d0] sm:$0xff] }
 0x136   :  { %v3686_v36 = vpop.eup %3685  ;;  %2779 = vst.msk [vmem:[%s5847_s2 + $0x268] sm:$0xff] %vm2701_vm0, %v2586_v29  ;;  %v2585_v37 = vmul.f32 %v1932_v32, %v1433_v26  ;;  %2251 = vperm.xlu0 %3091, %v4874_v59   ;;  %3705 = vrcp.f32 %v932_v30  ;;  %v934_v38 = vadd.f32 1.0, %v3684_v31  ;;  %v173_v59 = vld [vmem:[%s5845_s0 + $0x500] sm:$0xff]  ;;  %v3062_v26 = vmul.f32 -1.442695, %v177_v13  ;;  %v182_v27 = vld [vmem:[%s5845_s0 + $0x548] sm:$0xff] }
 0x137   :  { %v3688_v40 = vpop.eup %3687  ;;  %v1947_v41 = vpop.permute.xlu1 %1946  ;;  %3707 = vrcp.f32 %v931_v34  ;;  %v933_v43 = vadd.f32 1.0, %v3686_v36  ;;  %v3058_v8 = vmul.f32 -1.442695, %v173_v59  ;;  %v3065_v30 = vmul.f32 -1.442695, %v180_v18  ;;  %v1445_v59 = vld [vmem:[%s5846_s1 + $0x2c0] sm:$0xff] }
 0x138   :  { %v3690_v45 = vpop.eup %3689  ;;  %2778 = vst.msk [vmem:[%s5847_s2 + $0x260] sm:$0xff] %vm2701_vm0, %v2585_v37  ;;  %v2588_v46 = vmul.f32 %v1947_v41, %v1436_v33  ;;  %2266 = vperm.xlu1 %3092, %v4880_v62   ;;  %3709 = vrcp.f32 %v934_v38  ;;  %v936_v47 = vadd.f32 1.0, %v3688_v40  ;;  %v1437_v62 = vld [vmem:[%s5846_s1 + $0x280] sm:$0xff]  ;;  %v3064_v34 = vmul.f32 -1.442695, %v179_v22  ;;  %v1444_v40 = vld [vmem:[%s5846_s1 + $0x2b8] sm:$0xff] }
 0x139   :  { %v3692_v50 = vpop.eup %3691  ;;  %v1942_v51 = vpop.permute.xlu0 %1941  ;;  %3711 = vrcp.f32 %v933_v43  ;;  %v935_v53 = vadd.f32 1.0, %v3690_v45  ;;  %v1441_v33 = vld [vmem:[%s5846_s1 + $0x2a0] sm:$0xff]  ;;  %v3067_v37 = vmul.f32 -1.442695, %v182_v27  ;;  %v1443_v45 = vld [vmem:[%s5846_s1 + $0x2b0] sm:$0xff]  ;;  %v1450_v18 = vld [vmem:[%s5846_s1 + $0x2e8] sm:$0xff] }
 0x13a   :  { %v3694_v56 = vpop.eup %3693  ;;  %2781 = vst.msk [vmem:[%s5847_s2 + $0x278] sm:$0xff] %vm2701_vm0, %v2588_v46  ;;  %v2587_v57 = vmul.f32 %v1942_v51, %v1435_v42  ;;  %2261 = vperm.xlu0 %3091, %v3692_v50   ;;  %3713 = vrcp.f32 %v936_v47 }
 0x13b   :  { %v3696_v60 = vpop.eup %3695  ;;  %v1957_v61 = vpop.permute.xlu1 %1956  ;;  %3715 = vrcp.f32 %v935_v53 }
 0x13c   :  { %v3698_v1 = vpop.eup %3697  ;;  %2780 = vst.msk [vmem:[%s5847_s2 + $0x270] sm:$0xff] %vm2701_vm0, %v2587_v57  ;;  %v2590_v2 = vmul.f32 %v1957_v61, %v1438_v52  ;;  %2276 = vperm.xlu1 %3092, %v3694_v56   ;;  %3717 = vpow2.f32 %v3055_v48  ;;  %v1446_v52 = vld [vmem:[%s5846_s1 + $0x2c8] sm:$0xff] }
 0x13d   :  { %v3700_v5 = vpop.eup %3699  ;;  %v1952_v6 = vpop.permute.xlu0 %1951  ;;  %3719 = vpow2.f32 %v3054_v54 }
 0x13e   :  { %v3702_v10 = vpop.eup %3701  ;;  %2783 = vst.msk [vmem:[%s5847_s2 + $0x288] sm:$0xff] %vm2701_vm0, %v2590_v2  ;;  %v2589_v11 = vmul.f32 %v1952_v6, %v1437_v62  ;;  %2271 = vperm.xlu0 %3091, %v3696_v60   ;;  %3721 = vpow2.f32 %v3057_v58  ;;  %v1448_v2 = vld [vmem:[%s5846_s1 + $0x2d8] sm:$0xff] }
 0x13f   :  { %v3704_v14 = vpop.eup %3703  ;;  %v1967_v15 = vpop.permute.xlu1 %1966  ;;  %3723 = vpow2.f32 %v3056_v63 }
 0x140   :  { %v3706_v19 = vpop.eup %3705  ;;  %2782 = vst.msk [vmem:[%s5847_s2 + $0x280] sm:$0xff] %vm2701_vm0, %v2589_v11  ;;  %v2592_v20 = vmul.f32 %v1967_v15, %v1440_v7  ;;  %2286 = vperm.xlu1 %3092, %v3698_v1   ;;  %3725 = vpow2.f32 %v3059_v3  ;;  %v181_v11 = vld [vmem:[%s5845_s0 + $0x540] sm:$0xff]  ;;  %v184_v15 = vld [vmem:[%s5845_s0 + $0x558] sm:$0xff] }
 0x141   :  { %v3708_v23 = vpop.eup %3707  ;;  %v1962_v24 = vpop.permute.xlu0 %1961  ;;  %3727 = vpow2.f32 %v3058_v8 }
 0x142   :  { %v3710_v28 = vpop.eup %3709  ;;  %2785 = vst.msk [vmem:[%s5847_s2 + $0x298] sm:$0xff] %vm2701_vm0, %v2592_v20  ;;  %v2591_v29 = vmul.f32 %v1962_v24, %v1439_v16  ;;  %2281 = vperm.xlu0 %3091, %v3700_v5   ;;  %3729 = vpow2.f32 %v3061_v12  ;;  %v183_v20 = vld [vmem:[%s5845_s0 + $0x550] sm:$0xff]  ;;  %v3066_v24 = vmul.f32 -1.442695, %v181_v11 }
 0x143   :  { %v3712_v31 = vpop.eup %3711  ;;  %v1977_v32 = vpop.permute.xlu1 %1976  ;;  %3731 = vpow2.f32 %v3060_v17 }
 0x144   :  { %v5010_v35 = vpop.eup %3713  ;;  %2784 = vst.msk [vmem:[%s5847_s2 + $0x290] sm:$0xff] %vm2701_vm0, %v2591_v29  ;;  %v2594_v36 = vmul.f32 %v1977_v32, %v1442_v25  ;;  %2296 = vperm.xlu1 %3092, %v3702_v10   ;;  %3733 = vpow2.f32 %v3063_v21  ;;  %v186_v25 = vld [vmem:[%s5845_s0 + $0x568] sm:$0xff] }
 0x145   :  { %v5016_v38 = vpop.eup %3715  ;;  %v1972_v39 = vpop.permute.xlu0 %1971  ;;  %3735 = vpow2.f32 %v3062_v26 }
 0x146   :  { %v3718_v41 = vpop.eup %3717  ;;  %2787 = vst.msk [vmem:[%s5847_s2 + $0x2a8] sm:$0xff] %vm2701_vm0, %v2594_v36  ;;  %v2593_v42 = vmul.f32 %v1972_v39, %v1441_v33  ;;  %2291 = vperm.xlu0 %3091, %v3704_v14   ;;  %3737 = vpow2.f32 %v3065_v30  ;;  %v3069_v30 = vmul.f32 -1.442695, %v184_v15  ;;  %v3071_v39 = vmul.f32 -1.442695, %v186_v25 }
 0x147   :  { %v3720_v43 = vpop.eup %3719  ;;  %v1987_v44 = vpop.permute.xlu1 %1986  ;;  %v938_v46 = vadd.f32 1.0, %v3718_v41  ;;  %3739 = vpow2.f32 %v3064_v34  ;;  %v3068_v34 = vmul.f32 -1.442695, %v183_v20  ;;  %v193_v20 = vld [vmem:[%s5845_s0 + $0x5a0] sm:$0xff] }
 0x148   :  { %v3722_v47 = vpop.eup %3721  ;;  %2786 = vst.msk [vmem:[%s5847_s2 + $0x2a0] sm:$0xff] %vm2701_vm0, %v2593_v42  ;;  %v2596_v48 = vmul.f32 %v1987_v44, %v1444_v40  ;;  %2306 = vperm.xlu1 %3092, %v3706_v19   ;;  %v937_v49 = vadd.f32 1.0, %v3720_v43  ;;  %3741 = vpow2.f32 %v3067_v37  ;;  %v187_v40 = vld [vmem:[%s5845_s0 + $0x570] sm:$0xff]  ;;  %v190_v44 = vld [vmem:[%s5845_s0 + $0x588] sm:$0xff] }
 0x149   :  { %v3724_v50 = vpop.eup %3723  ;;  %v1982_v51 = vpop.permute.xlu0 %1981  ;;  %3743 = vrcp.f32 %v938_v46  ;;  %v940_v53 = vadd.f32 1.0, %v3722_v47  ;;  %v1451_v47 = vld [vmem:[%s5846_s1 + $0x2f0] sm:$0xff] }
 0x14a   :  { %v3726_v54 = vpop.eup %3725  ;;  %2789 = vst.msk [vmem:[%s5847_s2 + $0x2b8] sm:$0xff] %vm2701_vm0, %v2596_v48  ;;  %v2595_v55 = vmul.f32 %v1982_v51, %v1443_v45  ;;  %2301 = vperm.xlu0 %3091, %v3708_v23   ;;  %3745 = vrcp.f32 %v937_v49  ;;  %v939_v56 = vadd.f32 1.0, %v3724_v50  ;;  %v189_v49 = vld [vmem:[%s5845_s0 + $0x580] sm:$0xff] }
 0x14b   :  { %v3728_v57 = vpop.eup %3727  ;;  %v1997_v58 = vpop.permute.xlu1 %1996  ;;  %3747 = vrcp.f32 %v940_v53  ;;  %v942_v60 = vadd.f32 1.0, %v3726_v54  ;;  %v192_v53 = vld [vmem:[%s5845_s0 + $0x598] sm:$0xff] }
 0x14c   :  { %v3730_v61 = vpop.eup %3729  ;;  %2788 = vst.msk [vmem:[%s5847_s2 + $0x2b0] sm:$0xff] %vm2701_vm0, %v2595_v55  ;;  %v2598_v62 = vmul.f32 %v1997_v58, %v1446_v52  ;;  %2316 = vperm.xlu1 %3092, %v3710_v28   ;;  %3749 = vrcp.f32 %v939_v56  ;;  %v941_v63 = vadd.f32 1.0, %v3728_v57  ;;  %v1449_v28 = vld [vmem:[%s5846_s1 + $0x2e0] sm:$0xff]  ;;  %v3072_v52 = vmul.f32 -1.442695, %v187_v40  ;;  %v1454_v56 = vld [vmem:[%s5846_s1 + $0x308] sm:$0xff] }
 0x14d   :  { %v3732_v0 = vpop.eup %3731  ;;  %v1992_v1 = vpop.permute.xlu0 %1991  ;;  %3751 = vrcp.f32 %v942_v60  ;;  %v944_v3 = vadd.f32 1.0, %v3730_v61  ;;  %v3075_v57 = vmul.f32 -1.442695, %v190_v44  ;;  %v191_v58 = vld [vmem:[%s5845_s0 + $0x590] sm:$0xff]  ;;  %v3074_v61 = vmul.f32 -1.442695, %v189_v49 }
 0x14e   :  { %v3734_v4 = vpop.eup %3733  ;;  %2791 = vst.msk [vmem:[%s5847_s2 + $0x2c8] sm:$0xff] %vm2701_vm0, %v2598_v62  ;;  %v2597_v5 = vmul.f32 %v1992_v1, %v1445_v59  ;;  %2311 = vperm.xlu0 %3091, %v3712_v31   ;;  %3753 = vrcp.f32 %v941_v63  ;;  %v943_v6 = vadd.f32 1.0, %v3732_v0  ;;  %v185_v31 = vld [vmem:[%s5845_s0 + $0x560] sm:$0xff]  ;;  %v3077_v1 = vmul.f32 -1.442695, %v192_v53  ;;  %v1462_v49 = vld [vmem:[%s5846_s1 + $0x348] sm:$0xff] }
 0x14f   :  { %v3736_v7 = vpop.eup %3735  ;;  %v2007_v8 = vpop.permute.xlu1 %2006  ;;  %3755 = vrcp.f32 %v944_v3  ;;  %v946_v10 = vadd.f32 1.0, %v3734_v4  ;;  %v3070_v43 = vmul.f32 -1.442695, %v185_v31  ;;  %v1453_v0 = vld [vmem:[%s5846_s1 + $0x300] sm:$0xff]  ;;  %v3076_v4 = vmul.f32 -1.442695, %v191_v58 }
 0x150   :  { %v3738_v12 = vpop.eup %3737  ;;  %2790 = vst.msk [vmem:[%s5847_s2 + $0x2c0] sm:$0xff] %vm2701_vm0, %v2597_v5  ;;  %v2600_v13 = vmul.f32 %v2007_v8, %v1448_v2  ;;  %2326 = vperm.xlu1 %3092, %v5010_v35   ;;  %3757 = vrcp.f32 %v943_v6  ;;  %v945_v14 = vadd.f32 1.0, %v3736_v7  ;;  %v188_v35 = vld [vmem:[%s5845_s0 + $0x578] sm:$0xff] }
 0x151   :  { %v3740_v16 = vpop.eup %3739  ;;  %v2002_v17 = vpop.permute.xlu0 %2001  ;;  %3759 = vrcp.f32 %v946_v10  ;;  %v948_v19 = vadd.f32 1.0, %v3738_v12  ;;  %v3073_v48 = vmul.f32 -1.442695, %v188_v35  ;;  %v1456_v7 = vld [vmem:[%s5846_s1 + $0x318] sm:$0xff]  ;;  %v1455_v12 = vld [vmem:[%s5846_s1 + $0x310] sm:$0xff] }
 0x152   :  { %v3742_v21 = vpop.eup %3741  ;;  %2793 = vst.msk [vmem:[%s5847_s2 + $0x2d8] sm:$0xff] %vm2701_vm0, %v2600_v13  ;;  %v2599_v22 = vmul.f32 %v2002_v17, %v1447_v9  ;;  %2321 = vperm.xlu0 %3091, %v5016_v38   ;;  %3761 = vrcp.f32 %v945_v14  ;;  %v947_v23 = vadd.f32 1.0, %v3740_v16  ;;  %v1452_v38 = vld [vmem:[%s5846_s1 + $0x2f8] sm:$0xff]  ;;  %v194_v13 = vld [vmem:[%s5845_s0 + $0x5a8] sm:$0xff] }
 0x153   :  { %v3744_v26 = vpop.eup %3743  ;;  %v2017_v27 = vpop.permute.xlu1 %2016  ;;  %3763 = vrcp.f32 %v948_v19  ;;  %v950_v29 = vadd.f32 1.0, %v3742_v21  ;;  %v1460_v35 = vld [vmem:[%s5846_s1 + $0x338] sm:$0xff] }
 0x154   :  { %v3746_v32 = vpop.eup %3745  ;;  %2792 = vst.msk [vmem:[%s5847_s2 + $0x2d0] sm:$0xff] %vm2701_vm0, %v2599_v22  ;;  %v2602_v33 = vmul.f32 %v2017_v27, %v1450_v18  ;;  %2336 = vperm.xlu1 %3092, %v3744_v26   ;;  %3765 = vrcp.f32 %v947_v23  ;;  %v1458_v18 = vld [vmem:[%s5846_s1 + $0x328] sm:$0xff]  ;;  %v1457_v27 = vld [vmem:[%s5846_s1 + $0x320] sm:$0xff] }
 0x155   :  { %v3748_v36 = vpop.eup %3747  ;;  %v2012_v37 = vpop.permute.xlu0 %2011  ;;  %3767 = vrcp.f32 %v950_v29 }
 0x156   :  { %v3750_v41 = vpop.eup %3749  ;;  %2795 = vst.msk [vmem:[%s5847_s2 + $0x2e8] sm:$0xff] %vm2701_vm0, %v2602_v33  ;;  %v2601_v42 = vmul.f32 %v2012_v37, %v1449_v28  ;;  %2331 = vperm.xlu0 %3091, %v3746_v32   ;;  %3769 = vpow2.f32 %v3066_v24  ;;  %v3079_v24 = vmul.f32 -1.442695, %v194_v13  ;;  %v3078_v32 = vmul.f32 -1.442695, %v193_v20  ;;  %v201_v20 = vld [vmem:[%s5845_s0 + $0x5e0] sm:$0xff] }
 0x157   :  { %v3752_v45 = vpop.eup %3751  ;;  %v2027_v46 = vpop.permute.xlu1 %2026  ;;  %3771 = vpow2.f32 %v3069_v30 }
 0x158   :  { %v3754_v50 = vpop.eup %3753  ;;  %2794 = vst.msk [vmem:[%s5847_s2 + $0x2e0] sm:$0xff] %vm2701_vm0, %v2601_v42  ;;  %v2604_v51 = vmul.f32 %v2027_v46, %v1452_v38  ;;  %2346 = vperm.xlu1 %3092, %v3748_v36   ;;  %3773 = vpow2.f32 %v3068_v34  ;;  %v1459_v42 = vld [vmem:[%s5846_s1 + $0x330] sm:$0xff] }
 0x159   :  { %v3756_v54 = vpop.eup %3755  ;;  %v2022_v55 = vpop.permute.xlu0 %2021  ;;  %3775 = vpow2.f32 %v3071_v39 }
 0x15a   :  { %v3758_v59 = vpop.eup %3757  ;;  %2797 = vst.msk [vmem:[%s5847_s2 + $0x2f8] sm:$0xff] %vm2701_vm0, %v2604_v51  ;;  %v2603_v60 = vmul.f32 %v2022_v55, %v1451_v47  ;;  %2341 = vperm.xlu0 %3091, %v3750_v41   ;;  %3777 = vpow2.f32 %v3070_v43  ;;  %v196_v51 = vld [vmem:[%s5845_s0 + $0x5b8] sm:$0xff]  ;;  %v195_v55 = vld [vmem:[%s5845_s0 + $0x5b0] sm:$0xff] }
 0x15b   :  { %v3760_v62 = vpop.eup %3759  ;;  %v2037_v63 = vpop.permute.xlu1 %2036  ;;  %3779 = vpow2.f32 %v3073_v48 }
 0x15c   :  { %v3762_v2 = vpop.eup %3761  ;;  %2796 = vst.msk [vmem:[%s5847_s2 + $0x2f0] sm:$0xff] %vm2701_vm0, %v2603_v60  ;;  %v2606_v3 = vmul.f32 %v2037_v63, %v1454_v56  ;;  %2356 = vperm.xlu1 %3092, %v3752_v45   ;;  %3781 = vpow2.f32 %v3072_v52 }
 0x15d   :  { %v3764_v5 = vpop.eup %3763  ;;  %v2032_v6 = vpop.permute.xlu0 %2031  ;;  %3783 = vpow2.f32 %v3075_v57  ;;  %v1461_v57 = vld [vmem:[%s5846_s1 + $0x340] sm:$0xff] }
 0x15e   :  { %v5140_v8 = vpop.eup %3765  ;;  %2799 = vst.msk [vmem:[%s5847_s2 + $0x308] sm:$0xff] %vm2701_vm0, %v2606_v3  ;;  %v2605_v9 = vmul.f32 %v2032_v6, %v1453_v0  ;;  %2351 = vperm.xlu0 %3091, %v3754_v50   ;;  %3785 = vpow2.f32 %v3074_v61  ;;  %v3081_v61 = vmul.f32 -1.442695, %v196_v51  ;;  %v200_v3 = vld [vmem:[%s5845_s0 + $0x5d8] sm:$0xff] }
 0x15f   :  { %v5146_v10 = vpop.eup %3767  ;;  %v2047_v11 = vpop.permute.xlu1 %2046  ;;  %3787 = vpow2.f32 %v3077_v1  ;;  %v1464_v1 = vld [vmem:[%s5846_s1 + $0x358] sm:$0xff] }
 0x160   :  { %v3770_v14 = vpop.eup %3769  ;;  %2798 = vst.msk [vmem:[%s5847_s2 + $0x300] sm:$0xff] %vm2701_vm0, %v2605_v9  ;;  %v2608_v15 = vmul.f32 %v2047_v11, %v1456_v7  ;;  %2366 = vperm.xlu1 %3092, %v3756_v54   ;;  %3789 = vpow2.f32 %v3076_v4  ;;  %v199_v7 = vld [vmem:[%s5845_s0 + $0x5d0] sm:$0xff] }
 0x161   :  { %v3772_v16 = vpop.eup %3771  ;;  %v2042_v17 = vpop.permute.xlu0 %2041  ;;  %v949_v19 = vadd.f32 1.0, %v3770_v14 }
 0x162   :  { %v3774_v21 = vpop.eup %3773  ;;  %2801 = vst.msk [vmem:[%s5847_s2 + $0x318] sm:$0xff] %vm2701_vm0, %v2608_v15  ;;  %v2607_v22 = vmul.f32 %v2042_v17, %v1455_v12  ;;  %2361 = vperm.xlu0 %3091, %v3758_v59   ;;  %v952_v23 = vadd.f32 1.0, %v3772_v16  ;;  %v198_v59 = vld [vmem:[%s5845_s0 + $0x5c8] sm:$0xff]  ;;  %v3085_v15 = vmul.f32 -1.442695, %v200_v3  ;;  %v1471_v3 = vld [vmem:[%s5846_s1 + $0x390] sm:$0xff] }
 0x163   :  { %v3776_v25 = vpop.eup %3775  ;;  %v2057_v26 = vpop.permute.xlu1 %2056  ;;  %3791 = vrcp.f32 %v949_v19  ;;  %v951_v28 = vadd.f32 1.0, %v3774_v21  ;;  %v3083_v6 = vmul.f32 -1.442695, %v198_v59  ;;  %v202_v12 = vld [vmem:[%s5845_s0 + $0x5e8] sm:$0xff]  ;;  %v3084_v19 = vmul.f32 -1.442695, %v199_v7 }
 0x164   :  { %v3778_v29 = vpop.eup %3777  ;;  %2800 = vst.msk [vmem:[%s5847_s2 + $0x310] sm:$0xff] %vm2701_vm0, %v2607_v22  ;;  %v2610_v30 = vmul.f32 %v2057_v26, %v1458_v18  ;;  %2376 = vperm.xlu1 %3092, %v3760_v62   ;;  %3793 = vrcp.f32 %v952_v23  ;;  %v954_v31 = vadd.f32 1.0, %v3776_v25  ;;  %v197_v62 = vld [vmem:[%s5845_s0 + $0x5c0] sm:$0xff]  ;;  %v1466_v18 = vld [vmem:[%s5846_s1 + $0x368] sm:$0xff]  ;;  %v3087_v23 = vmul.f32 -1.442695, %v202_v12 }
 0x165   :  { %v3780_v33 = vpop.eup %3779  ;;  %v2052_v34 = vpop.permute.xlu0 %2051  ;;  %3795 = vrcp.f32 %v951_v28  ;;  %v953_v36 = vadd.f32 1.0, %v3778_v29  ;;  %v3082_v11 = vmul.f32 -1.442695, %v197_v62  ;;  %v1465_v26 = vld [vmem:[%s5846_s1 + $0x360] sm:$0xff]  ;;  %v204_v28 = vld [vmem:[%s5845_s0 + $0x5f8] sm:$0xff] }
 0x166   :  { %v3782_v37 = vpop.eup %3781  ;;  %2803 = vst.msk [vmem:[%s5847_s2 + $0x328] sm:$0xff] %vm2701_vm0, %v2610_v30  ;;  %v2609_v38 = vmul.f32 %v2052_v34, %v1457_v27  ;;  %2371 = vperm.xlu0 %3091, %v3762_v2   ;;  %v956_v39 = vadd.f32 1.0, %v3780_v33  ;;  %3797 = vpow2.f32 %v3079_v24  ;;  %v3080_v2 = vmul.f32 -1.442695, %v195_v55  ;;  %v1468_v34 = vld [vmem:[%s5846_s1 + $0x378] sm:$0xff] }
 0x167   :  { %v3784_v40 = vpop.eup %3783  ;;  %v2067_v41 = vpop.permute.xlu1 %2066  ;;  %3799 = vrcp.f32 %v954_v31  ;;  %v955_v43 = vadd.f32 1.0, %v3782_v37  ;;  %v3086_v31 = vmul.f32 -1.442695, %v201_v20  ;;  %v1476_v20 = vld [vmem:[%s5846_s1 + $0x3b8] sm:$0xff] }
 0x168   :  { %v3786_v44 = vpop.eup %3785  ;;  %2802 = vst.msk [vmem:[%s5847_s2 + $0x320] sm:$0xff] %vm2701_vm0, %v2609_v38  ;;  %v2612_v45 = vmul.f32 %v2067_v41, %v1460_v35  ;;  %2386 = vperm.xlu1 %3092, %v3764_v5   ;;  %v958_v46 = vadd.f32 1.0, %v3784_v40  ;;  %3801 = vpow2.f32 %v3078_v32 }
 0x169   :  { %v3788_v47 = vpop.eup %3787  ;;  %v2062_v48 = vpop.permute.xlu0 %2061  ;;  %3803 = vrcp.f32 %v953_v36  ;;  %v957_v50 = vadd.f32 1.0, %v3786_v44  ;;  %v203_v36 = vld [vmem:[%s5845_s0 + $0x5f0] sm:$0xff] }
 0x16a   :  { %v3790_v52 = vpop.eup %3789  ;;  %2805 = vst.msk [vmem:[%s5847_s2 + $0x338] sm:$0xff] %vm2701_vm0, %v2612_v45  ;;  %v2611_v53 = vmul.f32 %v2062_v48, %v1459_v42  ;;  %2381 = vperm.xlu0 %3091, %v5140_v8   ;;  %3805 = vrcp.f32 %v956_v39  ;;  %v960_v54 = vadd.f32 1.0, %v3788_v47  ;;  %v3089_v39 = vmul.f32 -1.442695, %v204_v28  ;;  %v1467_v42 = vld [vmem:[%s5846_s1 + $0x370] sm:$0xff]  ;;  %v1470_v48 = vld [vmem:[%s5846_s1 + $0x388] sm:$0xff] }
 0x16b   :  { %v2077_v56 = vpop.permute.xlu1 %2076  ;;  %3807 = vrcp.f32 %v955_v43  ;;  %v959_v58 = vadd.f32 1.0, %v3790_v52  ;;  %v3088_v45 = vmul.f32 -1.442695, %v203_v36 }
 0x16c   :  { %2804 = vst.msk [vmem:[%s5847_s2 + $0x330] sm:$0xff] %vm2701_vm0, %v2611_v53  ;;  %v2614_v60 = vmul.f32 %v2077_v56, %v1462_v49  ;;  %2396 = vperm.xlu1 %3092, %v5146_v10   ;;  %3809 = vrcp.f32 %v958_v46  ;;  %v1463_v10 = vld [vmem:[%s5846_s1 + $0x350] sm:$0xff]  ;;  %v1469_v53 = vld [vmem:[%s5846_s1 + $0x380] sm:$0xff] }
 0x16d   :  { %v3792_v63 = vpop.eup %3791  ;;  %v2072_v0 = vpop.permute.xlu0 %2071  ;;  %3811 = vrcp.f32 %v957_v50 }
 0x16e   :  { %v3794_v4 = vpop.eup %3793  ;;  %2807 = vst.msk [vmem:[%s5847_s2 + $0x348] sm:$0xff] %vm2701_vm0, %v2614_v60  ;;  %v2613_v5 = vmul.f32 %v2072_v0, %v1461_v57  ;;  %2391 = vperm.xlu0 %3091, %v3792_v63   ;;  %3813 = vrcp.f32 %v960_v54  ;;  %v1472_v60 = vld [vmem:[%s5846_s1 + $0x398] sm:$0xff] }
 0x16f   :  { %v3796_v8 = vpop.eup %3795  ;;  %v2087_v9 = vpop.permute.xlu1 %2086  ;;  %3815 = vrcp.f32 %v959_v58 }
 0x170   :  { %v3798_v13 = vpop.eup %3797  ;;  %2806 = vst.msk [vmem:[%s5847_s2 + $0x340] sm:$0xff] %vm2701_vm0, %v2613_v5  ;;  %v2616_v14 = vmul.f32 %v2087_v9, %v1464_v1  ;;  %2406 = vperm.xlu1 %3092, %v3794_v4   ;;  %3817 = vpow2.f32 %v3081_v61  ;;  %v1474_v9 = vld [vmem:[%s5846_s1 + $0x3a8] sm:$0xff] }
 0x171   :  { %v3800_v16 = vpop.eup %3799  ;;  %v2082_v17 = vpop.permute.xlu0 %2081  ;;  %3819 = vpow2.f32 %v3080_v2  ;;  %v962_v27 = vadd.f32 1.0, %v3798_v13 }
 0x172   :  { %v3802_v21 = vpop.eup %3801  ;;  %2809 = vst.msk [vmem:[%s5847_s2 + $0x358] sm:$0xff] %vm2701_vm0, %v2616_v14  ;;  %v2615_v22 = vmul.f32 %v2082_v17, %v1463_v10  ;;  %2401 = vperm.xlu0 %3091, %v3796_v8   ;;  %3821 = vpow2.f32 %v3083_v6 }
 0x173   :  { %v3804_v24 = vpop.eup %3803  ;;  %v2097_v25 = vpop.permute.xlu1 %2096  ;;  %3823 = vpow2.f32 %v3082_v11  ;;  %v961_v35 = vadd.f32 1.0, %v3802_v21 }
 0x174   :  { %v3806_v29 = vpop.eup %3805  ;;  %2808 = vst.msk [vmem:[%s5847_s2 + $0x350] sm:$0xff] %vm2701_vm0, %v2615_v22  ;;  %v2618_v30 = vmul.f32 %v2097_v25, %v1466_v18  ;;  %2416 = vperm.xlu1 %3092, %v3800_v16   ;;  %3825 = vpow2.f32 %v3085_v15  ;;  %v1473_v15 = vld [vmem:[%s5846_s1 + $0x3a0] sm:$0xff] }
 0x175   :  { %v3808_v32 = vpop.eup %3807  ;;  %v2092_v33 = vpop.permute.xlu0 %2091  ;;  %3827 = vpow2.f32 %v3084_v19 }
 0x176   :  { %v3810_v37 = vpop.eup %3809  ;;  %2811 = vst.msk [vmem:[%s5847_s2 + $0x368] sm:$0xff] %vm2701_vm0, %v2618_v30  ;;  %v2617_v38 = vmul.f32 %v2092_v33, %v1465_v26  ;;  %2411 = vperm.xlu0 %3091, %v3804_v24   ;;  %3829 = vpow2.f32 %v3087_v23  ;;  %v1475_v26 = vld [vmem:[%s5846_s1 + $0x3b0] sm:$0xff] }
 0x177   :  { %v3812_v40 = vpop.eup %3811  ;;  %v2107_v41 = vpop.permute.xlu1 %2106  ;;  %3831 = vrcp.f32 %v962_v27 }
 0x178   :  { %v3814_v43 = vpop.eup %3813  ;;  %2810 = vst.msk [vmem:[%s5847_s2 + $0x360] sm:$0xff] %vm2701_vm0, %v2617_v38  ;;  %v2620_v44 = vmul.f32 %v2107_v41, %v1468_v34  ;;  %2426 = vperm.xlu1 %3092, %v3806_v29   ;;  %3833 = vpow2.f32 %v3086_v31  ;;  %v1480_v41 = vld [vmem:[%s5846_s1 + $0x3d8] sm:$0xff] }
 0x179   :  { %v3816_v46 = vpop.eup %3815  ;;  %v2102_v47 = vpop.permute.xlu0 %2101  ;;  %3835 = vrcp.f32 %v961_v35 }
 0x17a   :  { %v3818_v49 = vpop.eup %3817  ;;  %2813 = vst.msk [vmem:[%s5847_s2 + $0x378] sm:$0xff] %vm2701_vm0, %v2620_v44  ;;  %v2619_v50 = vmul.f32 %v2102_v47, %v1467_v42  ;;  %2421 = vperm.xlu0 %3091, %v3808_v32   ;;  %3837 = vpow2.f32 %v3089_v39  ;;  %v1478_v32 = vld [vmem:[%s5846_s1 + $0x3c8] sm:$0xff] }
 0x17b   :  { %v3820_v51 = vpop.eup %3819  ;;  %v2117_v52 = vpop.permute.xlu1 %2116  ;;  %v964_v54 = vadd.f32 1.0, %v3818_v49  ;;  %3839 = vpow2.f32 %v3088_v45  ;;  %v1479_v45 = vld [vmem:[%s5846_s1 + $0x3d0] sm:$0xff]  ;;  %v1482_v49 = vld [vmem:[%s5846_s1 + $0x3e8] sm:$0xff] }
 0x17c   :  { %v3822_v55 = vpop.eup %3821  ;;  %2812 = vst.msk [vmem:[%s5847_s2 + $0x370] sm:$0xff] %vm2701_vm0, %v2619_v50  ;;  %v2622_v56 = vmul.f32 %v2117_v52, %v1470_v48  ;;  %2436 = vperm.xlu1 %3092, %v3810_v37   ;;  %v963_v57 = vadd.f32 1.0, %v3820_v51  ;;  %v1477_v37 = vld [vmem:[%s5846_s1 + $0x3c0] sm:$0xff] }
 0x17d   :  { %v3824_v58 = vpop.eup %3823  ;;  %v2112_v59 = vpop.permute.xlu0 %2111  ;;  %3841 = vrcp.f32 %v964_v54  ;;  %v966_v61 = vadd.f32 1.0, %v3822_v55 }
 0x17e   :  { %v3826_v62 = vpop.eup %3825  ;;  %2815 = vst.msk [vmem:[%s5847_s2 + $0x388] sm:$0xff] %vm2701_vm0, %v2622_v56  ;;  %v2621_v63 = vmul.f32 %v2112_v59, %v1469_v53  ;;  %2431 = vperm.xlu0 %3091, %v3812_v40   ;;  %3843 = vrcp.f32 %v963_v57  ;;  %v965_v0 = vadd.f32 1.0, %v3824_v58  ;;  %v1481_v53 = vld [vmem:[%s5846_s1 + $0x3e0] sm:$0xff]  ;;  %v1484_v57 = vld [vmem:[%s5846_s1 + $0x3f8] sm:$0xff] }
 0x17f   :  { %v3828_v1 = vpop.eup %3827  ;;  %v2127_v2 = vpop.permute.xlu1 %2126  ;;  %3845 = vrcp.f32 %v966_v61  ;;  %v968_v4 = vadd.f32 1.0, %v3826_v62  ;;  %v1483_v61 = vld [vmem:[%s5846_s1 + $0x3f0] sm:$0xff] }
 0x180   :  { %v3830_v5 = vpop.eup %3829  ;;  %2814 = vst.msk [vmem:[%s5847_s2 + $0x380] sm:$0xff] %vm2701_vm0, %v2621_v63  ;;  %v2624_v6 = vmul.f32 %v2127_v2, %v1472_v60  ;;  %2446 = vperm.xlu1 %3092, %v3814_v43   ;;  %3847 = vrcp.f32 %v965_v0  ;;  %v967_v10 = vadd.f32 1.0, %v3828_v1  ;;  %v1486_v0 = vld [vmem:[%s5846_s1 + $0x408] sm:$0xff] }
 0x181   :  { %v3832_v7 = vpop.eup %3831  ;;  %v2122_v8 = vpop.permute.xlu0 %2121  ;;  %3849 = vrcp.f32 %v968_v4  ;;  %v970_v16 = vadd.f32 1.0, %v3830_v5 }
 0x182   :  { %v3834_v11 = vpop.eup %3833  ;;  %2817 = vst.msk [vmem:[%s5847_s2 + $0x398] sm:$0xff] %vm2701_vm0, %v2624_v6  ;;  %v2623_v12 = vmul.f32 %v2122_v8, %v1471_v3  ;;  %2441 = vperm.xlu0 %3091, %v3816_v46   ;;  %3851 = vrcp.f32 %v967_v10  ;;  %v1485_v3 = vld [vmem:[%s5846_s1 + $0x400] sm:$0xff]  ;;  %v1488_v6 = vld [vmem:[%s5846_s1 + $0x418] sm:$0xff] }
 0x183   :  { %v3836_v13 = vpop.eup %3835  ;;  %v2137_v14 = vpop.permute.xlu1 %2136  ;;  %v969_v21 = vadd.f32 1.0, %v3834_v11  ;;  %3853 = vrcp.f32 %v970_v16 }
 0x184   :  { %v3838_v17 = vpop.eup %3837  ;;  %2816 = vst.msk [vmem:[%s5847_s2 + $0x390] sm:$0xff] %vm2701_vm0, %v2623_v12  ;;  %v2626_v18 = vmul.f32 %v2137_v14, %v1474_v9  ;;  %2456 = vperm.xlu1 %3092, %v3832_v7   ;;  %v1487_v9 = vld [vmem:[%s5846_s1 + $0x410] sm:$0xff]  ;;  %v1490_v12 = vld [vmem:[%s5846_s1 + $0x428] sm:$0xff] }
 0x185   :  { %v2132_v19 = vpop.permute.xlu0 %2131  ;;  %v3840_v22 = vpop.eup %3839  ;;  %v972_v27 = vadd.f32 1.0, %v3838_v17  ;;  %3855 = vrcp.f32 %v969_v21  ;;  %v1491_v21 = vld [vmem:[%s5846_s1 + $0x430] sm:$0xff] }
 0x186   :  { %2819 = vst.msk [vmem:[%s5847_s2 + $0x3a8] sm:$0xff] %vm2701_vm0, %v2626_v18  ;;  %v2625_v23 = vmul.f32 %v2132_v19, %v1473_v15  ;;  %2451 = vperm.xlu0 %3091, %v3836_v13   ;;  %v971_v33 = vadd.f32 1.0, %v3840_v22  ;;  %v1489_v15 = vld [vmem:[%s5846_s1 + $0x420] sm:$0xff]  ;;  %v1492_v18 = vld [vmem:[%s5846_s1 + $0x438] sm:$0xff] }
 0x187   :  { %v3842_v24 = vpop.eup %3841  ;;  %v2147_v25 = vpop.permute.xlu1 %2146  ;;  %3857 = vrcp.f32 %v972_v27  ;;  %v1493_v27 = vld [vmem:[%s5846_s1 + $0x440] sm:$0xff] }
 0x188   :  { %v3844_v28 = vpop.eup %3843  ;;  %2818 = vst.msk [vmem:[%s5847_s2 + $0x3a0] sm:$0xff] %vm2701_vm0, %v2625_v23  ;;  %v2628_v29 = vmul.f32 %v2147_v25, %v1476_v20  ;;  %2466 = vperm.xlu1 %3092, %v3842_v24   ;;  %3859 = vrcp.f32 %v971_v33  ;;  %v1494_v24 = vld [vmem:[%s5846_s1 + $0x448] sm:$0xff]  ;;  %v1495_v33 = vld [vmem:[%s5846_s1 + $0x450] sm:$0xff] }
 0x189   :  { %v3846_v30 = vpop.eup %3845  ;;  %v2142_v31 = vpop.permute.xlu0 %2141 }
 0x18a   :  { %2821 = vst.msk [vmem:[%s5847_s2 + $0x3b8] sm:$0xff] %vm2701_vm0, %v2628_v29  ;;  %v2627_v34 = vmul.f32 %v2142_v31, %v1475_v26  ;;  %2461 = vperm.xlu0 %3091, %v3844_v28   ;;  %v3848_v35 = vpop.eup %3847 }
 0x18b   :  { %v2157_v36 = vpop.permute.xlu1 %2156  ;;  %v3850_v39 = vpop.eup %3849 }
 0x18c   :  { %2820 = vst.msk [vmem:[%s5847_s2 + $0x3b0] sm:$0xff] %vm2701_vm0, %v2627_v34  ;;  %v2630_v38 = vmul.f32 %v2157_v36, %v1478_v32  ;;  %2476 = vperm.xlu1 %3092, %v3846_v30   ;;  %v3852_v43 = vpop.eup %3851  ;;  %v1496_v30 = vld [vmem:[%s5846_s1 + $0x458] sm:$0xff]  ;;  %v1498_v36 = vld [vmem:[%s5846_s1 + $0x468] sm:$0xff] }
 0x18d   :  { %v2152_v40 = vpop.permute.xlu0 %2151  ;;  %v3854_v47 = vpop.eup %3853 }
 0x18e   :  { %2823 = vst.msk [vmem:[%s5847_s2 + $0x3c8] sm:$0xff] %vm2701_vm0, %v2630_v38  ;;  %v2629_v42 = vmul.f32 %v2152_v40, %v1477_v37  ;;  %2471 = vperm.xlu0 %3091, %v3848_v35  }
 0x18f   :  { %v2167_v44 = vpop.permute.xlu1 %2166  ;;  %v3856_v51 = vpop.eup %3855 }
 0x190   :  { %2822 = vst.msk [vmem:[%s5847_s2 + $0x3c0] sm:$0xff] %vm2701_vm0, %v2629_v42  ;;  %v2632_v46 = vmul.f32 %v2167_v44, %v1480_v41  ;;  %2486 = vperm.xlu1 %3092, %v3850_v39   ;;  %v1497_v39 = vld [vmem:[%s5846_s1 + $0x460] sm:$0xff]  ;;  %v1500_v42 = vld [vmem:[%s5846_s1 + $0x478] sm:$0xff] }
 0x191   :  { %v2162_v48 = vpop.permute.xlu0 %2161  ;;  %v3858_v55 = vpop.eup %3857 }
 0x192   :  { %2825 = vst.msk [vmem:[%s5847_s2 + $0x3d8] sm:$0xff] %vm2701_vm0, %v2632_v46  ;;  %v2631_v50 = vmul.f32 %v2162_v48, %v1479_v45  ;;  %2481 = vperm.xlu0 %3091, %v3852_v43   ;;  %v3860_v59 = vpop.eup %3859  ;;  %v1499_v45 = vld [vmem:[%s5846_s1 + $0x470] sm:$0xff]  ;;  %v1502_v48 = vld [vmem:[%s5846_s1 + $0x488] sm:$0xff] }
 0x193   :  { %v2177_v52 = vpop.permute.xlu1 %2176 }
 0x194   :  { %2824 = vst.msk [vmem:[%s5847_s2 + $0x3d0] sm:$0xff] %vm2701_vm0, %v2631_v50  ;;  %v2634_v54 = vmul.f32 %v2177_v52, %v1482_v49  ;;  %2496 = vperm.xlu1 %3092, %v3854_v47  }
 0x195   :  { %v2172_v56 = vpop.permute.xlu0 %2171 }
 0x196   :  { %2827 = vst.msk [vmem:[%s5847_s2 + $0x3e8] sm:$0xff] %vm2701_vm0, %v2634_v54  ;;  %v2633_v58 = vmul.f32 %v2172_v56, %v1481_v53  ;;  %2491 = vperm.xlu0 %3091, %v3856_v51   ;;  %v1501_v51 = vld [vmem:[%s5846_s1 + $0x480] sm:$0xff]  ;;  %v1504_v54 = vld [vmem:[%s5846_s1 + $0x498] sm:$0xff] }
 0x197   :  { %v2187_v60 = vpop.permute.xlu1 %2186 }
 0x198   :  { %2826 = vst.msk [vmem:[%s5847_s2 + $0x3e0] sm:$0xff] %vm2701_vm0, %v2633_v58  ;;  %v2636_v62 = vmul.f32 %v2187_v60, %v1484_v57  ;;  %2506 = vperm.xlu1 %3092, %v3858_v55   ;;  %v1503_v57 = vld [vmem:[%s5846_s1 + $0x490] sm:$0xff]  ;;  %v1506_v60 = vld [vmem:[%s5846_s1 + $0x4a8] sm:$0xff] }
 0x199   :  { %v2182_v63 = vpop.permute.xlu0 %2181 }
 0x19a   :  { %2829 = vst.msk [vmem:[%s5847_s2 + $0x3f8] sm:$0xff] %vm2701_vm0, %v2636_v62  ;;  %v2635_v1 = vmul.f32 %v2182_v63, %v1483_v61  ;;  %2501 = vperm.xlu0 %3091, %v3860_v59   ;;  %v1505_v63 = vld [vmem:[%s5846_s1 + $0x4a0] sm:$0xff] }
 0x19b   :  { %v2197_v2 = vpop.permute.xlu1 %2196 }
 0x19c   :  { %2828 = vst.msk [vmem:[%s5847_s2 + $0x3f0] sm:$0xff] %vm2701_vm0, %v2635_v1  ;;  %v2638_v4 = vmul.f32 %v2197_v2, %v1486_v0  ;;  %v1508_v2 = vld [vmem:[%s5846_s1 + $0x4b8] sm:$0xff] }
 0x19d   :  { %v2192_v5 = vpop.permute.xlu0 %2191 }
 0x19e   :  { %2831 = vst.msk [vmem:[%s5847_s2 + $0x408] sm:$0xff] %vm2701_vm0, %v2638_v4  ;;  %v2637_v7 = vmul.f32 %v2192_v5, %v1485_v3  ;;  %v1507_v5 = vld [vmem:[%s5846_s1 + $0x4b0] sm:$0xff] }
 0x19f   :  { %v2207_v8 = vpop.permute.xlu1 %2206 }
 0x1a0   :  { %2830 = vst.msk [vmem:[%s5847_s2 + $0x400] sm:$0xff] %vm2701_vm0, %v2637_v7  ;;  %v2640_v10 = vmul.f32 %v2207_v8, %v1488_v6  ;;  %v1510_v8 = vld [vmem:[%s5846_s1 + $0x4c8] sm:$0xff] }
 0x1a1   :  { %v2202_v11 = vpop.permute.xlu0 %2201 }
 0x1a2   :  { %2833 = vst.msk [vmem:[%s5847_s2 + $0x418] sm:$0xff] %vm2701_vm0, %v2640_v10  ;;  %v2639_v13 = vmul.f32 %v2202_v11, %v1487_v9  ;;  %v1509_v11 = vld [vmem:[%s5846_s1 + $0x4c0] sm:$0xff] }
 0x1a3   :  { %v2217_v14 = vpop.permute.xlu1 %2216 }
 0x1a4   :  { %2832 = vst.msk [vmem:[%s5847_s2 + $0x410] sm:$0xff] %vm2701_vm0, %v2639_v13  ;;  %v2642_v16 = vmul.f32 %v2217_v14, %v1490_v12  ;;  %v1512_v14 = vld [vmem:[%s5846_s1 + $0x4d8] sm:$0xff] }
 0x1a5   :  { %v2212_v17 = vpop.permute.xlu0 %2211 }
 0x1a6   :  { %2835 = vst.msk [vmem:[%s5847_s2 + $0x428] sm:$0xff] %vm2701_vm0, %v2642_v16  ;;  %v2641_v19 = vmul.f32 %v2212_v17, %v1489_v15  ;;  %v1511_v17 = vld [vmem:[%s5846_s1 + $0x4d0] sm:$0xff] }
 0x1a7   :  { %v2227_v20 = vpop.permute.xlu1 %2226 }
 0x1a8   :  { %2834 = vst.msk [vmem:[%s5847_s2 + $0x420] sm:$0xff] %vm2701_vm0, %v2641_v19  ;;  %v2644_v22 = vmul.f32 %v2227_v20, %v1492_v18  ;;  %v1514_v20 = vld [vmem:[%s5846_s1 + $0x4e8] sm:$0xff] }
 0x1a9   :  { %v2222_v23 = vpop.permute.xlu0 %2221 }
 0x1aa   :  { %2837 = vst.msk [vmem:[%s5847_s2 + $0x438] sm:$0xff] %vm2701_vm0, %v2644_v22  ;;  %v2643_v25 = vmul.f32 %v2222_v23, %v1491_v21  ;;  %v1513_v23 = vld [vmem:[%s5846_s1 + $0x4e0] sm:$0xff] }
 0x1ab   :  { %v2237_v26 = vpop.permute.xlu1 %2236 }
 0x1ac   :  { %2836 = vst.msk [vmem:[%s5847_s2 + $0x430] sm:$0xff] %vm2701_vm0, %v2643_v25  ;;  %v2646_v28 = vmul.f32 %v2237_v26, %v1494_v24  ;;  %v1516_v26 = vld [vmem:[%s5846_s1 + $0x4f8] sm:$0xff] }
 0x1ad   :  { %v2232_v29 = vpop.permute.xlu0 %2231 }
 0x1ae   :  { %2839 = vst.msk [vmem:[%s5847_s2 + $0x448] sm:$0xff] %vm2701_vm0, %v2646_v28  ;;  %v2645_v31 = vmul.f32 %v2232_v29, %v1493_v27  ;;  %v1515_v29 = vld [vmem:[%s5846_s1 + $0x4f0] sm:$0xff] }
 0x1af   :  { %v2247_v32 = vpop.permute.xlu1 %2246 }
 0x1b0   :  { %2838 = vst.msk [vmem:[%s5847_s2 + $0x440] sm:$0xff] %vm2701_vm0, %v2645_v31  ;;  %v2648_v34 = vmul.f32 %v2247_v32, %v1496_v30  ;;  %v1518_v32 = vld [vmem:[%s5846_s1 + $0x508] sm:$0xff] }
 0x1b1   :  { %v2242_v35 = vpop.permute.xlu0 %2241 }
 0x1b2   :  { %2841 = vst.msk [vmem:[%s5847_s2 + $0x458] sm:$0xff] %vm2701_vm0, %v2648_v34  ;;  %v2647_v37 = vmul.f32 %v2242_v35, %v1495_v33  ;;  %v1517_v35 = vld [vmem:[%s5846_s1 + $0x500] sm:$0xff] }
 0x1b3   :  { %v2257_v38 = vpop.permute.xlu1 %2256 }
 0x1b4   :  { %2840 = vst.msk [vmem:[%s5847_s2 + $0x450] sm:$0xff] %vm2701_vm0, %v2647_v37  ;;  %v2650_v40 = vmul.f32 %v2257_v38, %v1498_v36  ;;  %v1520_v38 = vld [vmem:[%s5846_s1 + $0x518] sm:$0xff] }
 0x1b5   :  { %v2252_v41 = vpop.permute.xlu0 %2251 }
 0x1b6   :  { %2843 = vst.msk [vmem:[%s5847_s2 + $0x468] sm:$0xff] %vm2701_vm0, %v2650_v40  ;;  %v2649_v43 = vmul.f32 %v2252_v41, %v1497_v39  ;;  %v1519_v41 = vld [vmem:[%s5846_s1 + $0x510] sm:$0xff] }
 0x1b7   :  { %v2267_v44 = vpop.permute.xlu1 %2266 }
 0x1b8   :  { %2842 = vst.msk [vmem:[%s5847_s2 + $0x460] sm:$0xff] %vm2701_vm0, %v2649_v43  ;;  %v2652_v46 = vmul.f32 %v2267_v44, %v1500_v42  ;;  %v1522_v44 = vld [vmem:[%s5846_s1 + $0x528] sm:$0xff] }
 0x1b9   :  { %v2262_v47 = vpop.permute.xlu0 %2261 }
 0x1ba   :  { %2845 = vst.msk [vmem:[%s5847_s2 + $0x478] sm:$0xff] %vm2701_vm0, %v2652_v46  ;;  %v2651_v49 = vmul.f32 %v2262_v47, %v1499_v45  ;;  %v1521_v47 = vld [vmem:[%s5846_s1 + $0x520] sm:$0xff] }
 0x1bb   :  { %v2277_v50 = vpop.permute.xlu1 %2276 }
 0x1bc   :  { %2844 = vst.msk [vmem:[%s5847_s2 + $0x470] sm:$0xff] %vm2701_vm0, %v2651_v49  ;;  %v2654_v52 = vmul.f32 %v2277_v50, %v1502_v48  ;;  %v1524_v50 = vld [vmem:[%s5846_s1 + $0x538] sm:$0xff] }
 0x1bd   :  { %v2272_v53 = vpop.permute.xlu0 %2271 }
 0x1be   :  { %2847 = vst.msk [vmem:[%s5847_s2 + $0x488] sm:$0xff] %vm2701_vm0, %v2654_v52  ;;  %v2653_v55 = vmul.f32 %v2272_v53, %v1501_v51  ;;  %v1523_v53 = vld [vmem:[%s5846_s1 + $0x530] sm:$0xff] }
 0x1bf   :  { %v2287_v56 = vpop.permute.xlu1 %2286 }
 0x1c0   :  { %2846 = vst.msk [vmem:[%s5847_s2 + $0x480] sm:$0xff] %vm2701_vm0, %v2653_v55  ;;  %v2656_v58 = vmul.f32 %v2287_v56, %v1504_v54  ;;  %v1526_v56 = vld [vmem:[%s5846_s1 + $0x548] sm:$0xff] }
 0x1c1   :  { %v2282_v59 = vpop.permute.xlu0 %2281 }
 0x1c2   :  { %2849 = vst.msk [vmem:[%s5847_s2 + $0x498] sm:$0xff] %vm2701_vm0, %v2656_v58  ;;  %v2655_v61 = vmul.f32 %v2282_v59, %v1503_v57  ;;  %v1525_v59 = vld [vmem:[%s5846_s1 + $0x540] sm:$0xff] }
 0x1c3   :  { %v2297_v62 = vpop.permute.xlu1 %2296 }
 0x1c4   :  { %2848 = vst.msk [vmem:[%s5847_s2 + $0x490] sm:$0xff] %vm2701_vm0, %v2655_v61  ;;  %v2658_v0 = vmul.f32 %v2297_v62, %v1506_v60  ;;  %v1528_v62 = vld [vmem:[%s5846_s1 + $0x558] sm:$0xff] }
 0x1c5   :  { %v2292_v1 = vpop.permute.xlu0 %2291 }
 0x1c6   :  { %2851 = vst.msk [vmem:[%s5847_s2 + $0x4a8] sm:$0xff] %vm2701_vm0, %v2658_v0  ;;  %v2657_v3 = vmul.f32 %v2292_v1, %v1505_v63  ;;  %v1527_v1 = vld [vmem:[%s5846_s1 + $0x550] sm:$0xff] }
 0x1c7   :  { %v2307_v4 = vpop.permute.xlu1 %2306 }
 0x1c8   :  { %2850 = vst.msk [vmem:[%s5847_s2 + $0x4a0] sm:$0xff] %vm2701_vm0, %v2657_v3  ;;  %v2660_v6 = vmul.f32 %v2307_v4, %v1508_v2  ;;  %v1530_v4 = vld [vmem:[%s5846_s1 + $0x568] sm:$0xff] }
 0x1c9   :  { %v2302_v7 = vpop.permute.xlu0 %2301 }
 0x1ca   :  { %2853 = vst.msk [vmem:[%s5847_s2 + $0x4b8] sm:$0xff] %vm2701_vm0, %v2660_v6  ;;  %v2659_v9 = vmul.f32 %v2302_v7, %v1507_v5  ;;  %v1529_v7 = vld [vmem:[%s5846_s1 + $0x560] sm:$0xff] }
 0x1cb   :  { %v2317_v10 = vpop.permute.xlu1 %2316 }
 0x1cc   :  { %2852 = vst.msk [vmem:[%s5847_s2 + $0x4b0] sm:$0xff] %vm2701_vm0, %v2659_v9  ;;  %v2662_v12 = vmul.f32 %v2317_v10, %v1510_v8  ;;  %v1532_v10 = vld [vmem:[%s5846_s1 + $0x578] sm:$0xff] }
 0x1cd   :  { %v2312_v13 = vpop.permute.xlu0 %2311 }
 0x1ce   :  { %2855 = vst.msk [vmem:[%s5847_s2 + $0x4c8] sm:$0xff] %vm2701_vm0, %v2662_v12  ;;  %v2661_v15 = vmul.f32 %v2312_v13, %v1509_v11  ;;  %v1531_v13 = vld [vmem:[%s5846_s1 + $0x570] sm:$0xff] }
 0x1cf   :  { %v2327_v16 = vpop.permute.xlu1 %2326 }
 0x1d0   :  { %2854 = vst.msk [vmem:[%s5847_s2 + $0x4c0] sm:$0xff] %vm2701_vm0, %v2661_v15  ;;  %v2664_v18 = vmul.f32 %v2327_v16, %v1512_v14  ;;  %v1534_v16 = vld [vmem:[%s5846_s1 + $0x588] sm:$0xff] }
 0x1d1   :  { %v2322_v19 = vpop.permute.xlu0 %2321 }
 0x1d2   :  { %2857 = vst.msk [vmem:[%s5847_s2 + $0x4d8] sm:$0xff] %vm2701_vm0, %v2664_v18  ;;  %v2663_v21 = vmul.f32 %v2322_v19, %v1511_v17  ;;  %v1533_v19 = vld [vmem:[%s5846_s1 + $0x580] sm:$0xff] }
 0x1d3   :  { %v2337_v22 = vpop.permute.xlu1 %2336 }
 0x1d4   :  { %2856 = vst.msk [vmem:[%s5847_s2 + $0x4d0] sm:$0xff] %vm2701_vm0, %v2663_v21  ;;  %v2666_v24 = vmul.f32 %v2337_v22, %v1514_v20  ;;  %v1536_v22 = vld [vmem:[%s5846_s1 + $0x598] sm:$0xff] }
 0x1d5   :  { %v2332_v25 = vpop.permute.xlu0 %2331 }
 0x1d6   :  { %2859 = vst.msk [vmem:[%s5847_s2 + $0x4e8] sm:$0xff] %vm2701_vm0, %v2666_v24  ;;  %v2665_v27 = vmul.f32 %v2332_v25, %v1513_v23  ;;  %v1535_v25 = vld [vmem:[%s5846_s1 + $0x590] sm:$0xff] }
 0x1d7   :  { %v2347_v28 = vpop.permute.xlu1 %2346 }
 0x1d8   :  { %2858 = vst.msk [vmem:[%s5847_s2 + $0x4e0] sm:$0xff] %vm2701_vm0, %v2665_v27  ;;  %v2668_v30 = vmul.f32 %v2347_v28, %v1516_v26  ;;  %v1538_v28 = vld [vmem:[%s5846_s1 + $0x5a8] sm:$0xff] }
 0x1d9   :  { %v2342_v31 = vpop.permute.xlu0 %2341 }
 0x1da   :  { %2861 = vst.msk [vmem:[%s5847_s2 + $0x4f8] sm:$0xff] %vm2701_vm0, %v2668_v30  ;;  %v2667_v33 = vmul.f32 %v2342_v31, %v1515_v29  ;;  %v1537_v31 = vld [vmem:[%s5846_s1 + $0x5a0] sm:$0xff] }
 0x1db   :  { %v2357_v34 = vpop.permute.xlu1 %2356 }
 0x1dc   :  { %2860 = vst.msk [vmem:[%s5847_s2 + $0x4f0] sm:$0xff] %vm2701_vm0, %v2667_v33  ;;  %v2670_v36 = vmul.f32 %v2357_v34, %v1518_v32  ;;  %v1540_v34 = vld [vmem:[%s5846_s1 + $0x5b8] sm:$0xff] }
 0x1dd   :  { %v2352_v37 = vpop.permute.xlu0 %2351 }
 0x1de   :  { %2863 = vst.msk [vmem:[%s5847_s2 + $0x508] sm:$0xff] %vm2701_vm0, %v2670_v36  ;;  %v2669_v39 = vmul.f32 %v2352_v37, %v1517_v35  ;;  %v1539_v37 = vld [vmem:[%s5846_s1 + $0x5b0] sm:$0xff] }
 0x1df   :  { %v2367_v40 = vpop.permute.xlu1 %2366 }
 0x1e0   :  { %2862 = vst.msk [vmem:[%s5847_s2 + $0x500] sm:$0xff] %vm2701_vm0, %v2669_v39  ;;  %v2672_v42 = vmul.f32 %v2367_v40, %v1520_v38  ;;  %v1542_v40 = vld [vmem:[%s5846_s1 + $0x5c8] sm:$0xff] }
 0x1e1   :  { %v2362_v43 = vpop.permute.xlu0 %2361 }
 0x1e2   :  { %2865 = vst.msk [vmem:[%s5847_s2 + $0x518] sm:$0xff] %vm2701_vm0, %v2672_v42  ;;  %v2671_v45 = vmul.f32 %v2362_v43, %v1519_v41  ;;  %v1541_v43 = vld [vmem:[%s5846_s1 + $0x5c0] sm:$0xff] }
 0x1e3   :  { %v2377_v46 = vpop.permute.xlu1 %2376 }
 0x1e4   :  { %2864 = vst.msk [vmem:[%s5847_s2 + $0x510] sm:$0xff] %vm2701_vm0, %v2671_v45  ;;  %v2674_v48 = vmul.f32 %v2377_v46, %v1522_v44  ;;  %v1544_v46 = vld [vmem:[%s5846_s1 + $0x5d8] sm:$0xff] }
 0x1e5   :  { %v2372_v49 = vpop.permute.xlu0 %2371 }
 0x1e6   :  { %2867 = vst.msk [vmem:[%s5847_s2 + $0x528] sm:$0xff] %vm2701_vm0, %v2674_v48  ;;  %v2673_v51 = vmul.f32 %v2372_v49, %v1521_v47  ;;  %v1543_v49 = vld [vmem:[%s5846_s1 + $0x5d0] sm:$0xff] }
 0x1e7   :  { %v2387_v52 = vpop.permute.xlu1 %2386 }
 0x1e8   :  { %2866 = vst.msk [vmem:[%s5847_s2 + $0x520] sm:$0xff] %vm2701_vm0, %v2673_v51  ;;  %v2676_v54 = vmul.f32 %v2387_v52, %v1524_v50  ;;  %v1546_v52 = vld [vmem:[%s5846_s1 + $0x5e8] sm:$0xff] }
 0x1e9   :  { %v2382_v55 = vpop.permute.xlu0 %2381 }
 0x1ea   :  { %2869 = vst.msk [vmem:[%s5847_s2 + $0x538] sm:$0xff] %vm2701_vm0, %v2676_v54  ;;  %v2675_v57 = vmul.f32 %v2382_v55, %v1523_v53  ;;  %v1545_v55 = vld [vmem:[%s5846_s1 + $0x5e0] sm:$0xff] }
 0x1eb   :  { %v2397_v58 = vpop.permute.xlu1 %2396 }
 0x1ec   :  { %2868 = vst.msk [vmem:[%s5847_s2 + $0x530] sm:$0xff] %vm2701_vm0, %v2675_v57  ;;  %v2678_v60 = vmul.f32 %v2397_v58, %v1526_v56  ;;  %v1548_v58 = vld [vmem:[%s5846_s1 + $0x5f8] sm:$0xff] }
 0x1ed   :  { %v2392_v61 = vpop.permute.xlu0 %2391 }
 0x1ee   :  { %2871 = vst.msk [vmem:[%s5847_s2 + $0x548] sm:$0xff] %vm2701_vm0, %v2678_v60  ;;  %v2677_v63 = vmul.f32 %v2392_v61, %v1525_v59  ;;  %v1547_v61 = vld [vmem:[%s5846_s1 + $0x5f0] sm:$0xff] }
 0x1ef   :  { %v2407_v0 = vpop.permute.xlu1 %2406 }
 0x1f0   :  { %2870 = vst.msk [vmem:[%s5847_s2 + $0x540] sm:$0xff] %vm2701_vm0, %v2677_v63  ;;  %v2680_v2 = vmul.f32 %v2407_v0, %v1528_v62 }
 0x1f1   :  { %v2402_v3 = vpop.permute.xlu0 %2401 }
 0x1f2   :  { %2873 = vst.msk [vmem:[%s5847_s2 + $0x558] sm:$0xff] %vm2701_vm0, %v2680_v2  ;;  %v2679_v5 = vmul.f32 %v2402_v3, %v1527_v1 }
 0x1f3   :  { %v2417_v6 = vpop.permute.xlu1 %2416 }
 0x1f4   :  { %2872 = vst.msk [vmem:[%s5847_s2 + $0x550] sm:$0xff] %vm2701_vm0, %v2679_v5  ;;  %v2682_v8 = vmul.f32 %v2417_v6, %v1530_v4 }
 0x1f5   :  { %v2412_v9 = vpop.permute.xlu0 %2411 }
 0x1f6   :  { %2875 = vst.msk [vmem:[%s5847_s2 + $0x568] sm:$0xff] %vm2701_vm0, %v2682_v8  ;;  %v2681_v11 = vmul.f32 %v2412_v9, %v1529_v7 }
 0x1f7   :  { %v2427_v12 = vpop.permute.xlu1 %2426 }
 0x1f8   :  { %2874 = vst.msk [vmem:[%s5847_s2 + $0x560] sm:$0xff] %vm2701_vm0, %v2681_v11  ;;  %v2684_v14 = vmul.f32 %v2427_v12, %v1532_v10 }
 0x1f9   :  { %v2422_v15 = vpop.permute.xlu0 %2421 }
 0x1fa   :  { %2877 = vst.msk [vmem:[%s5847_s2 + $0x578] sm:$0xff] %vm2701_vm0, %v2684_v14  ;;  %v2683_v17 = vmul.f32 %v2422_v15, %v1531_v13 }
 0x1fb   :  { %v2437_v18 = vpop.permute.xlu1 %2436 }
 0x1fc   :  { %2876 = vst.msk [vmem:[%s5847_s2 + $0x570] sm:$0xff] %vm2701_vm0, %v2683_v17  ;;  %v2686_v20 = vmul.f32 %v2437_v18, %v1534_v16 }
 0x1fd   :  { %v2432_v21 = vpop.permute.xlu0 %2431 }
 0x1fe   :  { %2879 = vst.msk [vmem:[%s5847_s2 + $0x588] sm:$0xff] %vm2701_vm0, %v2686_v20  ;;  %v2685_v23 = vmul.f32 %v2432_v21, %v1533_v19 }
 0x1ff   :  { %v2447_v24 = vpop.permute.xlu1 %2446 }
 0x200   :  { %2878 = vst.msk [vmem:[%s5847_s2 + $0x580] sm:$0xff] %vm2701_vm0, %v2685_v23  ;;  %v2688_v26 = vmul.f32 %v2447_v24, %v1536_v22 }
 0x201   :  { %v2442_v27 = vpop.permute.xlu0 %2441 }
 0x202   :  { %2881 = vst.msk [vmem:[%s5847_s2 + $0x598] sm:$0xff] %vm2701_vm0, %v2688_v26  ;;  %v2687_v29 = vmul.f32 %v2442_v27, %v1535_v25 }
 0x203   :  { %v2457_v30 = vpop.permute.xlu1 %2456 }
 0x204   :  { %2880 = vst.msk [vmem:[%s5847_s2 + $0x590] sm:$0xff] %vm2701_vm0, %v2687_v29  ;;  %v2690_v32 = vmul.f32 %v2457_v30, %v1538_v28 }
 0x205   :  { %v2452_v33 = vpop.permute.xlu0 %2451 }
 0x206   :  { %2883 = vst.msk [vmem:[%s5847_s2 + $0x5a8] sm:$0xff] %vm2701_vm0, %v2690_v32  ;;  %v2689_v35 = vmul.f32 %v2452_v33, %v1537_v31 }
 0x207   :  { %v2467_v36 = vpop.permute.xlu1 %2466 }
 0x208   :  { %2882 = vst.msk [vmem:[%s5847_s2 + $0x5a0] sm:$0xff] %vm2701_vm0, %v2689_v35  ;;  %v2692_v38 = vmul.f32 %v2467_v36, %v1540_v34 }
 0x209   :  { %v2462_v39 = vpop.permute.xlu0 %2461 }
 0x20a   :  { %2885 = vst.msk [vmem:[%s5847_s2 + $0x5b8] sm:$0xff] %vm2701_vm0, %v2692_v38  ;;  %v2691_v41 = vmul.f32 %v2462_v39, %v1539_v37 }
 0x20b   :  { %v2477_v42 = vpop.permute.xlu1 %2476 }
 0x20c   :  { %2884 = vst.msk [vmem:[%s5847_s2 + $0x5b0] sm:$0xff] %vm2701_vm0, %v2691_v41  ;;  %v2694_v44 = vmul.f32 %v2477_v42, %v1542_v40 }
 0x20d   :  { %v2472_v45 = vpop.permute.xlu0 %2471 }
 0x20e   :  { %2887 = vst.msk [vmem:[%s5847_s2 + $0x5c8] sm:$0xff] %vm2701_vm0, %v2694_v44  ;;  %v2693_v47 = vmul.f32 %v2472_v45, %v1541_v43 }
 0x20f   :  { %v2487_v48 = vpop.permute.xlu1 %2486 }
 0x210   :  { %2886 = vst.msk [vmem:[%s5847_s2 + $0x5c0] sm:$0xff] %vm2701_vm0, %v2693_v47  ;;  %v2696_v50 = vmul.f32 %v2487_v48, %v1544_v46 }
 0x211   :  { %v2482_v51 = vpop.permute.xlu0 %2481 }
 0x212   :  { %2889 = vst.msk [vmem:[%s5847_s2 + $0x5d8] sm:$0xff] %vm2701_vm0, %v2696_v50  ;;  %v2695_v53 = vmul.f32 %v2482_v51, %v1543_v49 }
 0x213   :  { %v2497_v54 = vpop.permute.xlu1 %2496 }
 0x214   :  { %2888 = vst.msk [vmem:[%s5847_s2 + $0x5d0] sm:$0xff] %vm2701_vm0, %v2695_v53  ;;  %v2698_v56 = vmul.f32 %v2497_v54, %v1546_v52 }
 0x215   :  { %v2492_v57 = vpop.permute.xlu0 %2491 }
 0x216   :  { %2891 = vst.msk [vmem:[%s5847_s2 + $0x5e8] sm:$0xff] %vm2701_vm0, %v2698_v56  ;;  %v2697_v59 = vmul.f32 %v2492_v57, %v1545_v55 }
 0x217   :  { %v2507_v60 = vpop.permute.xlu1 %2506 }
 0x218   :  { %2890 = vst.msk [vmem:[%s5847_s2 + $0x5e0] sm:$0xff] %vm2701_vm0, %v2697_v59  ;;  %v2700_v62 = vmul.f32 %v2507_v60, %v1548_v58 }
 0x219   :  { %v2502_v63 = vpop.permute.xlu0 %2501 }
 0x21a   :  { %2893 = vst.msk [vmem:[%s5847_s2 + $0x5f8] sm:$0xff] %vm2701_vm0, %v2700_v62  ;;  %v2699_v0 = vmul.f32 %v2502_v63, %v1547_v61 }
 0x21c   :  { %2892 = vst.msk [vmem:[%s5847_s2 + $0x5f0] sm:$0xff] %vm2701_vm0, %v2699_v0 }

</bundles_post_ra>
